<compile_context>
chip_gen: v6e
topology: v6e:2x2x1
jax: 0.10.0
libtpu: 0.0.40
codegen_flags: <defaults>
</compile_context>

<pallas_src>
import jax
import jax.numpy as jnp
from jax.experimental import pallas as pl
from jax.experimental.pallas import tpu as pltpu

_LATENT = 100
_LATENT_PAD = 128          # pad K=100 -> 128 (8/128-aligned)
_OUT = 12288               # 3 * 64 * 64
_TN = 3072                 # layer-5 output-column tile: 12288 = 4 * 3072, multiple of 256


# ---------------- Pallas kernel: one (B, TN) output slab per grid step ----------------

def _g_o_kernel(x_ref,
                w1_ref, b1_ref,
                w2_ref, b2_ref,
                w3_ref, b3_ref,
                w4_ref, b4_ref,
                w5_ref, b5_ref,
                out_ref):
    # Layers 1-4: tiny, recomputed every grid step (only 4 steps now, so the
    # recompute is ~2x cheaper than before). Their weights have constant block
    # indices so they are fetched into VMEM once (no extra HBM traffic), and
    # recomputation keeps the grid axis free of carried state ("parallel"-safe).
    h = x_ref[...]                                                         # (B, 128) bf16
    h = jnp.dot(h, w1_ref[...], preferred_element_type=jnp.float32) + b1_ref[...]
    h = jnp.maximum(h, 0.0).astype(jnp.bfloat16)
    h = jnp.dot(h, w2_ref[...], preferred_element_type=jnp.float32) + b2_ref[...]
    h = jnp.maximum(h, 0.0).astype(jnp.bfloat16)
    h = jnp.dot(h, w3_ref[...], preferred_element_type=jnp.float32) + b3_ref[...]
    h = jnp.maximum(h, 0.0).astype(jnp.bfloat16)
    h = jnp.dot(h, w4_ref[...], preferred_element_type=jnp.float32) + b4_ref[...]
    h = jnp.maximum(h, 0.0).astype(jnp.bfloat16)                           # (B, 256) bf16

    # Dominant layer 5: (B, 256) @ (256, TN) on the MXU, f32 accumulation, then tanh.
    y = jnp.dot(h, w5_ref[...], preferred_element_type=jnp.float32) + b5_ref[...]
    out_ref[...] = jnp.tanh(y).astype(out_ref.dtype)


def _resident(shape):
    # Whole-array block whose block index never changes across the grid:
    # Pallas DMAs it once and it stays resident in VMEM for every grid step.
    return pl.BlockSpec(shape, lambda j: tuple(0 for _ in shape))


@jax.jit
def g_o_forward(x, params):
    """x: (B, 100) float32, params: list of (w: (in,out) f32, b: (1,out) f32).

    Returns (B, 3, 64, 64) float32."""
    B = x.shape[0]
    (w1, b1), (w2, b2), (w3, b3), (w4, b4), (w5, b5) = params

    # One-time layout / dtype prep (wrapper-side, negligible cost).
    x_p = jnp.pad(x, ((0, 0), (0, _LATENT_PAD - _LATENT))).astype(jnp.bfloat16)
    w1_p = jnp.pad(w1, ((0, _LATENT_PAD - _LATENT), (0, 0))).astype(jnp.bfloat16)
    w2_b = w2.astype(jnp.bfloat16)
    w3_b = w3.astype(jnp.bfloat16)
    w4_b = w4.astype(jnp.bfloat16)
    w5_b = w5.astype(jnp.bfloat16)
    # Biases stay f32 (tiny; added directly to the f32 accumulators).

    n_tiles = _OUT // _TN   # 4 grid steps (2 per TensorCore after v7x parallel split)

    flat = pl.pallas_call(
        _g_o_kernel,
        out_shape=jax.ShapeDtypeStruct((B, _OUT), jnp.float32),
        grid=(n_tiles,),
        in_specs=[
            _resident(x_p.shape),
            _resident(w1_p.shape), _resident(b1.shape),
            _resident(w2_b.shape), _resident(b2.shape),
            _resident(w3_b.shape), _resident(b3.shape),
            _resident(w4_b.shape), _resident(b4.shape),
            # Layer-5 weight / bias are streamed tile-by-tile over N=12288;
            # the Pallas pipeline double-buffers them so DMA overlaps the MXU.
            pl.BlockSpec((256, _TN), lambda j: (0, j)),
            pl.BlockSpec((1, _TN), lambda j: (0, j)),
        ],
        out_specs=pl.BlockSpec((B, _TN), lambda j: (0, j)),
        compiler_params=pltpu.CompilerParams(
            # Output tiles are independent -> shard the N axis across both
            # TensorCores on v7x (no effect on single-TC v5e/v6e).
            dimension_semantics=("parallel",),
            # No vmem_limit_bytes: peak VMEM at TN=3072 is ~4 MiB, well under
            # every generation's default scoped limit.
        ),
    )(x_p, w1_p, b1, w2_b, b2, w3_b, b3, w4_b, b4, w5_b, b5)

    # Matches PyTorch output.view(-1, 3, 64, 64): row-major reshape, NCHW.
    return flat.reshape(B, 3, 64, 64)


# ---------------- init + reference ----------------

def init_params(key):
    """nn.Linear-style init: U(-1/sqrt(fan_in), +1/sqrt(fan_in)).
    Weights stored as (in_features, out_features); biases as (1, out_features)."""
    dims = [(100, 128), (128, 256), (256, 256), (256, 256), (256, 12288)]
    params = []
    for (fan_in, fan_out) in dims:
        key, kw, kb = jax.random.split(key, 3)
        bound = 1.0 / jnp.sqrt(jnp.float32(fan_in))
        w = jax.random.uniform(kw, (fan_in, fan_out), jnp.float32, -bound, bound)
        b = jax.random.uniform(kb, (1, fan_out), jnp.float32, -bound, bound)
        params.append((w, b))
    return params


def _reference_forward(x, params):
    # Mirrors the kernel's numerics (bf16 weights/activations, f32 accumulation).
    (w1, b1), (w2, b2), (w3, b3), (w4, b4), (w5, b5) = params
    h = jnp.pad(x, ((0, 0), (0, _LATENT_PAD - _LATENT))).astype(jnp.bfloat16)
    w1_p = jnp.pad(w1, ((0, _LATENT_PAD - _LATENT), (0, 0))).astype(jnp.bfloat16)
    h = jnp.dot(h, w1_p, preferred_element_type=jnp.float32) + b1
    h = jnp.maximum(h, 0.0).astype(jnp.bfloat16)
    h = jnp.dot(h, w2.astype(jnp.bfloat16), preferred_element_type=jnp.float32) + b2
    h = jnp.maximum(h, 0.0).astype(jnp.bfloat16)
    h = jnp.dot(h, w3.astype(jnp.bfloat16), preferred_element_type=jnp.float32) + b3
    h = jnp.maximum(h, 0.0).astype(jnp.bfloat16)
    h = jnp.dot(h, w4.astype(jnp.bfloat16), preferred_element_type=jnp.float32) + b4
    h = jnp.maximum(h, 0.0).astype(jnp.bfloat16)
    y = jnp.dot(h, w5.astype(jnp.bfloat16), preferred_element_type=jnp.float32) + b5
    return jnp.tanh(y).reshape(-1, 3, 64, 64)


if __name__ == "__main__":
    key = jax.random.PRNGKey(0)
    key, kx = jax.random.split(key)

    B = 2  # small batch of latent vectors
    x = jax.random.normal(kx, (B, _LATENT), dtype=jnp.float32)

    params = init_params(key)

    out = jax.block_until_ready(g_o_forward(x, params))

    assert out.shape == (B, 3, 64, 64), out.shape
    assert out.dtype == jnp.float32

    ref = _reference_forward(x, params)
    max_err = float(jnp.max(jnp.abs(out - ref)))
    assert jnp.allclose(out, ref, atol=1e-2, rtol=1e-2), max_err

    print("KERNEL_OK")
</pallas_src>

<mosaic_0001>
module attributes {stable_mosaic.version = 11 : i64} {
  func.func @_g_o_kernel(%arg0: i32, %arg1: memref<2x128xbf16, #tpu.memory_space<vmem>>, %arg2: memref<128x128xbf16, #tpu.memory_space<vmem>>, %arg3: memref<1x128xf32, #tpu.memory_space<vmem>>, %arg4: memref<128x256xbf16, #tpu.memory_space<vmem>>, %arg5: memref<1x256xf32, #tpu.memory_space<vmem>>, %arg6: memref<256x256xbf16, #tpu.memory_space<vmem>>, %arg7: memref<1x256xf32, #tpu.memory_space<vmem>>, %arg8: memref<256x256xbf16, #tpu.memory_space<vmem>>, %arg9: memref<1x256xf32, #tpu.memory_space<vmem>>, %arg10: memref<256x3072xbf16, #tpu.memory_space<vmem>>, %arg11: memref<1x3072xf32, #tpu.memory_space<vmem>>, %arg12: memref<2x3072xf32, #tpu.memory_space<vmem>>) attributes {dimension_semantics = [#tpu.dimension_semantics<parallel>], iteration_bounds = array<i64: 4>, scalar_prefetch = 0 : i64, scratch_operands = 0 : i64, tpu.core_type = #tpu.core_type<tc>, window_params = [{pipeline_mode = #tpu.pipeline_mode<synchronous>, transform_indices = @transform_0, window_bounds = array<i64: 2, 128>}, {pipeline_mode = #tpu.pipeline_mode<synchronous>, transform_indices = @transform_1, window_bounds = array<i64: 128, 128>}, {pipeline_mode = #tpu.pipeline_mode<synchronous>, transform_indices = @transform_2, window_bounds = array<i64: 1, 128>}, {pipeline_mode = #tpu.pipeline_mode<synchronous>, transform_indices = @transform_3, window_bounds = array<i64: 128, 256>}, {pipeline_mode = #tpu.pipeline_mode<synchronous>, transform_indices = @transform_4, window_bounds = array<i64: 1, 256>}, {pipeline_mode = #tpu.pipeline_mode<synchronous>, transform_indices = @transform_5, window_bounds = array<i64: 256, 256>}, {pipeline_mode = #tpu.pipeline_mode<synchronous>, transform_indices = @transform_6, window_bounds = array<i64: 1, 256>}, {pipeline_mode = #tpu.pipeline_mode<synchronous>, transform_indices = @transform_7, window_bounds = array<i64: 256, 256>}, {pipeline_mode = #tpu.pipeline_mode<synchronous>, transform_indices = @transform_8, window_bounds = array<i64: 1, 256>}, {transform_indices = @transform_9, window_bounds = array<i64: 256, 3072>}, {transform_indices = @transform_10, window_bounds = array<i64: 1, 3072>}, {transform_indices = @transform_11, window_bounds = array<i64: 2, 3072>}]} {
    %c0 = arith.constant 0 : index
    %c0_0 = arith.constant 0 : index
    %0 = vector.load %arg1[%c0, %c0_0] : memref<2x128xbf16, #tpu.memory_space<vmem>>, vector<2x128xbf16>
    %c0_1 = arith.constant 0 : index
    %c0_2 = arith.constant 0 : index
    %1 = vector.load %arg2[%c0_1, %c0_2] : memref<128x128xbf16, #tpu.memory_space<vmem>>, vector<128x128xbf16>
    %cst = arith.constant dense<0.000000e+00> : vector<2x128xf32>
    %2 = tpu.matmul %0, %1, %cst {dimension_numbers = #tpu.dot_dimension_numbers<[1], [0], [0], [1], [0, 0, 1, 1], [], []>} : vector<2x128xbf16>, vector<128x128xbf16>, vector<2x128xf32> -> vector<2x128xf32>
    %c0_3 = arith.constant 0 : index
    %c0_4 = arith.constant 0 : index
    %3 = vector.load %arg3[%c0_3, %c0_4] : memref<1x128xf32, #tpu.memory_space<vmem>>, vector<1x128xf32>
    %4 = vector.broadcast %3 : vector<1x128xf32> to vector<2x128xf32>
    %5 = arith.addf %2, %4 : vector<2x128xf32>
    %cst_5 = arith.constant 0.000000e+00 : f32
    %6 = vector.broadcast %cst_5 : f32 to vector<2x128xf32>
    %7 = arith.maximumf %5, %6 : vector<2x128xf32>
    %8 = arith.truncf %7 : vector<2x128xf32> to vector<2x128xbf16>
    %c0_6 = arith.constant 0 : index
    %c0_7 = arith.constant 0 : index
    %9 = vector.load %arg4[%c0_6, %c0_7] : memref<128x256xbf16, #tpu.memory_space<vmem>>, vector<128x256xbf16>
    %cst_8 = arith.constant dense<0.000000e+00> : vector<2x256xf32>
    %10 = tpu.matmul %8, %9, %cst_8 {dimension_numbers = #tpu.dot_dimension_numbers<[1], [0], [0], [1], [0, 0, 1, 1], [], []>} : vector<2x128xbf16>, vector<128x256xbf16>, vector<2x256xf32> -> vector<2x256xf32>
    %c0_9 = arith.constant 0 : index
    %c0_10 = arith.constant 0 : index
    %11 = vector.load %arg5[%c0_9, %c0_10] : memref<1x256xf32, #tpu.memory_space<vmem>>, vector<1x256xf32>
    %12 = vector.broadcast %11 : vector<1x256xf32> to vector<2x256xf32>
    %13 = arith.addf %10, %12 : vector<2x256xf32>
    %cst_11 = arith.constant 0.000000e+00 : f32
    %14 = vector.broadcast %cst_11 : f32 to vector<2x256xf32>
    %15 = arith.maximumf %13, %14 : vector<2x256xf32>
    %16 = arith.truncf %15 : vector<2x256xf32> to vector<2x256xbf16>
    %c0_12 = arith.constant 0 : index
    %c0_13 = arith.constant 0 : index
    %17 = vector.load %arg6[%c0_12, %c0_13] : memref<256x256xbf16, #tpu.memory_space<vmem>>, vector<256x256xbf16>
    %cst_14 = arith.constant dense<0.000000e+00> : vector<2x256xf32>
    %18 = tpu.matmul %16, %17, %cst_14 {dimension_numbers = #tpu.dot_dimension_numbers<[1], [0], [0], [1], [0, 0, 1, 1], [], []>} : vector<2x256xbf16>, vector<256x256xbf16>, vector<2x256xf32> -> vector<2x256xf32>
    %c0_15 = arith.constant 0 : index
    %c0_16 = arith.constant 0 : index
    %19 = vector.load %arg7[%c0_15, %c0_16] : memref<1x256xf32, #tpu.memory_space<vmem>>, vector<1x256xf32>
    %20 = vector.broadcast %19 : vector<1x256xf32> to vector<2x256xf32>
    %21 = arith.addf %18, %20 : vector<2x256xf32>
    %cst_17 = arith.constant 0.000000e+00 : f32
    %22 = vector.broadcast %cst_17 : f32 to vector<2x256xf32>
    %23 = arith.maximumf %21, %22 : vector<2x256xf32>
    %24 = arith.truncf %23 : vector<2x256xf32> to vector<2x256xbf16>
    %c0_18 = arith.constant 0 : index
    %c0_19 = arith.constant 0 : index
    %25 = vector.load %arg8[%c0_18, %c0_19] : memref<256x256xbf16, #tpu.memory_space<vmem>>, vector<256x256xbf16>
    %cst_20 = arith.constant dense<0.000000e+00> : vector<2x256xf32>
    %26 = tpu.matmul %24, %25, %cst_20 {dimension_numbers = #tpu.dot_dimension_numbers<[1], [0], [0], [1], [0, 0, 1, 1], [], []>} : vector<2x256xbf16>, vector<256x256xbf16>, vector<2x256xf32> -> vector<2x256xf32>
    %c0_21 = arith.constant 0 : index
    %c0_22 = arith.constant 0 : index
    %27 = vector.load %arg9[%c0_21, %c0_22] : memref<1x256xf32, #tpu.memory_space<vmem>>, vector<1x256xf32>
    %28 = vector.broadcast %27 : vector<1x256xf32> to vector<2x256xf32>
    %29 = arith.addf %26, %28 : vector<2x256xf32>
    %cst_23 = arith.constant 0.000000e+00 : f32
    %30 = vector.broadcast %cst_23 : f32 to vector<2x256xf32>
    %31 = arith.maximumf %29, %30 : vector<2x256xf32>
    %32 = arith.truncf %31 : vector<2x256xf32> to vector<2x256xbf16>
    %c0_24 = arith.constant 0 : index
    %c0_25 = arith.constant 0 : index
    %33 = vector.load %arg10[%c0_24, %c0_25] : memref<256x3072xbf16, #tpu.memory_space<vmem>>, vector<256x3072xbf16>
    %cst_26 = arith.constant dense<0.000000e+00> : vector<2x3072xf32>
    %34 = tpu.matmul %32, %33, %cst_26 {dimension_numbers = #tpu.dot_dimension_numbers<[1], [0], [0], [1], [0, 0, 1, 1], [], []>} : vector<2x256xbf16>, vector<256x3072xbf16>, vector<2x3072xf32> -> vector<2x3072xf32>
    %c0_27 = arith.constant 0 : index
    %c0_28 = arith.constant 0 : index
    %35 = vector.load %arg11[%c0_27, %c0_28] : memref<1x3072xf32, #tpu.memory_space<vmem>>, vector<1x3072xf32>
    %36 = vector.broadcast %35 : vector<1x3072xf32> to vector<2x3072xf32>
    %37 = arith.addf %34, %36 : vector<2x3072xf32>
    %38 = math.tanh %37 : vector<2x3072xf32>
    %c0_29 = arith.constant 0 : index
    %c0_30 = arith.constant 0 : index
    %39 = vector.load %arg12[%c0_29, %c0_30] : memref<2x3072xf32, #tpu.memory_space<vmem>>, vector<2x3072xf32>
    tpu.vector_store %arg12[%c0_29, %c0_30], %38 {strides = array<i32>} : memref<2x3072xf32, #tpu.memory_space<vmem>>, vector<2x3072xf32>,
    return
  }
  func.func @transform_0(%arg0: i32) -> (i32, i32) {
    %c0_i32 = arith.constant 0 : i32
    %c0_i32_0 = arith.constant 0 : i32
    %c0_i32_1 = arith.constant 0 : i32
    return %c0_i32, %c0_i32_0 : i32, i32
  }
  func.func @transform_1(%arg0: i32) -> (i32, i32) {
    %c0_i32 = arith.constant 0 : i32
    %c0_i32_0 = arith.constant 0 : i32
    %c0_i32_1 = arith.constant 0 : i32
    return %c0_i32, %c0_i32_0 : i32, i32
  }
  func.func @transform_2(%arg0: i32) -> (i32, i32) {
    %c0_i32 = arith.constant 0 : i32
    %c0_i32_0 = arith.constant 0 : i32
    %c0_i32_1 = arith.constant 0 : i32
    return %c0_i32, %c0_i32_0 : i32, i32
  }
  func.func @transform_3(%arg0: i32) -> (i32, i32) {
    %c0_i32 = arith.constant 0 : i32
    %c0_i32_0 = arith.constant 0 : i32
    %c0_i32_1 = arith.constant 0 : i32
    return %c0_i32, %c0_i32_0 : i32, i32
  }
  func.func @transform_4(%arg0: i32) -> (i32, i32) {
    %c0_i32 = arith.constant 0 : i32
    %c0_i32_0 = arith.constant 0 : i32
    %c0_i32_1 = arith.constant 0 : i32
    return %c0_i32, %c0_i32_0 : i32, i32
  }
  func.func @transform_5(%arg0: i32) -> (i32, i32) {
    %c0_i32 = arith.constant 0 : i32
    %c0_i32_0 = arith.constant 0 : i32
    %c0_i32_1 = arith.constant 0 : i32
    return %c0_i32, %c0_i32_0 : i32, i32
  }
  func.func @transform_6(%arg0: i32) -> (i32, i32) {
    %c0_i32 = arith.constant 0 : i32
    %c0_i32_0 = arith.constant 0 : i32
    %c0_i32_1 = arith.constant 0 : i32
    return %c0_i32, %c0_i32_0 : i32, i32
  }
  func.func @transform_7(%arg0: i32) -> (i32, i32) {
    %c0_i32 = arith.constant 0 : i32
    %c0_i32_0 = arith.constant 0 : i32
    %c0_i32_1 = arith.constant 0 : i32
    return %c0_i32, %c0_i32_0 : i32, i32
  }
  func.func @transform_8(%arg0: i32) -> (i32, i32) {
    %c0_i32 = arith.constant 0 : i32
    %c0_i32_0 = arith.constant 0 : i32
    %c0_i32_1 = arith.constant 0 : i32
    return %c0_i32, %c0_i32_0 : i32, i32
  }
  func.func @transform_9(%arg0: i32) -> (i32, i32) {
    %c0_i32 = arith.constant 0 : i32
    %c0_i32_0 = arith.constant 0 : i32
    return %c0_i32, %arg0 : i32, i32
  }
  func.func @transform_10(%arg0: i32) -> (i32, i32) {
    %c0_i32 = arith.constant 0 : i32
    %c0_i32_0 = arith.constant 0 : i32
    return %c0_i32, %arg0 : i32, i32
  }
  func.func @transform_11(%arg0: i32) -> (i32, i32) {
    %c0_i32 = arith.constant 0 : i32
    %c0_i32_0 = arith.constant 0 : i32
    return %c0_i32, %arg0 : i32, i32
  }
}

</mosaic_0001>

<bundles_post_ra>
// kernel: g_o_forward.1
= control target key start
LH: loop header
LB: loop body
LE: loop exit
PB: predicated region body
PF: predicated region fallthrough
CT: control target
= control target key end

     0   :  { %s5921_s17 = smov 0   ;;  %s5923_s18 = smov 0   ;;  %s7550_s0 = inlined_call_operand.vmem [shape: bf16[2,128], index: 0, kind: input, shape index: {}]   ;;  %s7551_s1 = inlined_call_operand.vmem [shape: bf16[128,128], index: 1, kind: input, shape index: {}]   ;;  %s7552_s2 = inlined_call_operand.vmem [shape: f32[1,128], index: 2, kind: input, shape index: {}]   ;;  %s7553_s3 = inlined_call_operand.vmem [shape: bf16[128,256], index: 3, kind: input, shape index: {}]   ;;  %s7554_s4 = inlined_call_operand.vmem [shape: f32[1,256], index: 4, kind: input, shape index: {}]   ;;  %s7555_s5 = inlined_call_operand.vmem [shape: bf16[256,256], index: 5, kind: input, shape index: {}]   ;;  %s7556_s6 = inlined_call_operand.vmem [shape: f32[1,256], index: 6, kind: input, shape index: {}]   ;;  %s7557_s7 = inlined_call_operand.vmem [shape: bf16[256,256], index: 7, kind: input, shape index: {}]   ;;  %s7558_s8 = inlined_call_operand.vmem [shape: f32[1,256], index: 8, kind: input, shape index: {}]   ;;  %s7559_s9 = inlined_call_operand.vmem [shape: bf16[256,12288], index: 9, kind: input, shape index: {}]   ;;  %s7560_s10 = inlined_call_operand.vmem [shape: f32[1,12288], index: 10, kind: input, shape index: {}]   ;;  %s7561_s11 = inlined_call_operand.vmem [shape: f32[2,12288], index: 11, kind: output, shape index: {}]  }
   0x1   :  { %s5925_s19 = smov 0  }
   0x2 LB: > { %s5115_s20 = sadd.s32 4294967295, %s5855_s19   ;;  %s5938_s21 = sadd.s32 1, %s5855_s19   ;;  %s5855_s19 = sphi %s5925_s19, %s7564_s19   ;;  %s5851_s18 = sphi %s5923_s18, %s7563_s18   ;;  %s5847_s17 = sphi %s5921_s17, %s7562_s17  }
   0x3   : > { %s214_s22 = ssub.s32 %s5855_s19, %s5938_s21  ;;  %s217_s23 = sadd.s32 1, %s5851_s18 }
   0x4   : > { %p215_p0 = scmp.eq.s32.totalorder %s214_s22, 0  ;;  %p224_p1 = scmp.ne.s32.totalorder %s5851_s18, %s5847_s17 }
   0x5   : > { %p225_p2 = scmp.eq.s32.totalorder %s5855_s19, 0  ;;  %p5118_p4 = scmp.ge.s32.totalorder %s5855_s19, 4 }
   0x6   : > { %s5947_s24 = scalar_select %p215_p0, %s5851_s18, %s217_s23  }
   0x7   : > { %p226_p3 = por %p225_p2, %p224_p1  ;;  %329 = sbr.rel (%p5118_p4) target bundleno = 209 (0xd1), region = 52 }
   0xc   : > { %332 = sbr.rel (!%p226_p3) target bundleno = 209 (0xd1), region = 56  ;;  %s334_s25 = sand.u32 (%p226_p3), 1, %s5851_s18  }
   0xd   : > { %s5597_s26 = smul.u32 (%p226_p3), 96, %s5855_s19 }
   0xe   : > { %s5627_s27 = smul.u32 (%p226_p3), 3072, %s334_s25 }
   0xf   : > { %s5955_s30 = scalar_lea.vmem (%p226_p3), %s7559_s9, %s5597_s26 }
  0x10   : > { %v352_v0 = vld [vmem:[%s5955_s30] sm:$0xff] (%p226_p3)  ;;  %v354_v1 = vld [vmem:[%s5955_s30 + $0x8] sm:$0xff] (%p226_p3)  ;;  %v356_v2 = vld [vmem:[%s5955_s30 + $0x10] sm:$0xff] (%p226_p3)  ;;  %s5960_s12 = scalar_lea.vmem (%p226_p3), [#allocation2], %s5627_s27 }
  0x11   : > { %353 = vst [vmem:[%s5960_s12] sm:$0xff] %v352_v0  ;;  %355 = vst [vmem:[%s5960_s12 + $0x8] sm:$0xff] %v354_v1  ;;  %v358_v3 = vld [vmem:[%s5955_s30 + $0x18] sm:$0xff]  ;;  %v360_v4 = vld [vmem:[%s5955_s30 + $0x20] sm:$0xff] }
  0x12   : > { %357 = vst [vmem:[%s5960_s12 + $0x10] sm:$0xff] %v356_v2  ;;  %v362_v5 = vld [vmem:[%s5955_s30 + $0x28] sm:$0xff]  ;;  %359 = vst [vmem:[%s5960_s12 + $0x18] sm:$0xff] %v358_v3  ;;  %v364_v6 = vld [vmem:[%s5955_s30 + $0x30] sm:$0xff] }
  0x13   : > { %361 = vst [vmem:[%s5960_s12 + $0x20] sm:$0xff] %v360_v4  ;;  %363 = vst [vmem:[%s5960_s12 + $0x28] sm:$0xff] %v362_v5  ;;  %v366_v7 = vld [vmem:[%s5955_s30 + $0x38] sm:$0xff]  ;;  %v368_v8 = vld [vmem:[%s5955_s30 + $0x40] sm:$0xff] }
  0x14   : > { %365 = vst [vmem:[%s5960_s12 + $0x30] sm:$0xff] %v364_v6  ;;  %367 = vst [vmem:[%s5960_s12 + $0x38] sm:$0xff] %v366_v7  ;;  %v370_v9 = vld [vmem:[%s5955_s30 + $0x48] sm:$0xff]  ;;  %v372_v10 = vld [vmem:[%s5955_s30 + $0x50] sm:$0xff] }
  0x15   : > { %369 = vst [vmem:[%s5960_s12 + $0x40] sm:$0xff] %v368_v8  ;;  %v374_v11 = vld [vmem:[%s5955_s30 + $0x58] sm:$0xff]  ;;  %371 = vst [vmem:[%s5960_s12 + $0x48] sm:$0xff] %v370_v9  ;;  %v376_v12 = vld [vmem:[%s5955_s30 + $0x180] sm:$0xff] }
  0x16   : > { %373 = vst [vmem:[%s5960_s12 + $0x50] sm:$0xff] %v372_v10  ;;  %375 = vst [vmem:[%s5960_s12 + $0x58] sm:$0xff] %v374_v11  ;;  %v378_v13 = vld [vmem:[%s5955_s30 + $0x188] sm:$0xff]  ;;  %v380_v14 = vld [vmem:[%s5955_s30 + $0x190] sm:$0xff] }
  0x17   : > { %377 = vst [vmem:[%s5960_s12 + $0x60] sm:$0xff] %v376_v12  ;;  %379 = vst [vmem:[%s5960_s12 + $0x68] sm:$0xff] %v378_v13  ;;  %v382_v15 = vld [vmem:[%s5955_s30 + $0x198] sm:$0xff]  ;;  %v384_v16 = vld [vmem:[%s5955_s30 + $0x1a0] sm:$0xff] }
  0x18   : > { %381 = vst [vmem:[%s5960_s12 + $0x70] sm:$0xff] %v380_v14  ;;  %v386_v17 = vld [vmem:[%s5955_s30 + $0x1a8] sm:$0xff]  ;;  %383 = vst [vmem:[%s5960_s12 + $0x78] sm:$0xff] %v382_v15  ;;  %v388_v18 = vld [vmem:[%s5955_s30 + $0x1b0] sm:$0xff] }
  0x19   : > { %385 = vst [vmem:[%s5960_s12 + $0x80] sm:$0xff] %v384_v16  ;;  %387 = vst [vmem:[%s5960_s12 + $0x88] sm:$0xff] %v386_v17  ;;  %v390_v19 = vld [vmem:[%s5955_s30 + $0x1b8] sm:$0xff]  ;;  %v392_v20 = vld [vmem:[%s5955_s30 + $0x1c0] sm:$0xff] }
  0x1a   : > { %389 = vst [vmem:[%s5960_s12 + $0x90] sm:$0xff] %v388_v18  ;;  %391 = vst [vmem:[%s5960_s12 + $0x98] sm:$0xff] %v390_v19  ;;  %v394_v21 = vld [vmem:[%s5955_s30 + $0x1c8] sm:$0xff]  ;;  %v396_v22 = vld [vmem:[%s5955_s30 + $0x1d0] sm:$0xff] }
  0x1b   : > { %393 = vst [vmem:[%s5960_s12 + $0xa0] sm:$0xff] %v392_v20  ;;  %v398_v23 = vld [vmem:[%s5955_s30 + $0x1d8] sm:$0xff]  ;;  %395 = vst [vmem:[%s5960_s12 + $0xa8] sm:$0xff] %v394_v21  ;;  %v400_v24 = vld [vmem:[%s5955_s30 + $0x300] sm:$0xff] }
  0x1c   : > { %397 = vst [vmem:[%s5960_s12 + $0xb0] sm:$0xff] %v396_v22  ;;  %399 = vst [vmem:[%s5960_s12 + $0xb8] sm:$0xff] %v398_v23  ;;  %v402_v25 = vld [vmem:[%s5955_s30 + $0x308] sm:$0xff]  ;;  %v404_v26 = vld [vmem:[%s5955_s30 + $0x310] sm:$0xff] }
  0x1d   : > { %401 = vst [vmem:[%s5960_s12 + $0xc0] sm:$0xff] %v400_v24  ;;  %403 = vst [vmem:[%s5960_s12 + $0xc8] sm:$0xff] %v402_v25  ;;  %v406_v27 = vld [vmem:[%s5955_s30 + $0x318] sm:$0xff]  ;;  %v408_v28 = vld [vmem:[%s5955_s30 + $0x320] sm:$0xff] }
  0x1e   : > { %405 = vst [vmem:[%s5960_s12 + $0xd0] sm:$0xff] %v404_v26  ;;  %v410_v29 = vld [vmem:[%s5955_s30 + $0x328] sm:$0xff]  ;;  %407 = vst [vmem:[%s5960_s12 + $0xd8] sm:$0xff] %v406_v27  ;;  %v412_v30 = vld [vmem:[%s5955_s30 + $0x330] sm:$0xff] }
  0x1f   : > { %409 = vst [vmem:[%s5960_s12 + $0xe0] sm:$0xff] %v408_v28  ;;  %411 = vst [vmem:[%s5960_s12 + $0xe8] sm:$0xff] %v410_v29  ;;  %v414_v31 = vld [vmem:[%s5955_s30 + $0x338] sm:$0xff]  ;;  %v416_v32 = vld [vmem:[%s5955_s30 + $0x340] sm:$0xff] }
  0x20   : > { %413 = vst [vmem:[%s5960_s12 + $0xf0] sm:$0xff] %v412_v30  ;;  %415 = vst [vmem:[%s5960_s12 + $0xf8] sm:$0xff] %v414_v31  ;;  %v418_v33 = vld [vmem:[%s5955_s30 + $0x348] sm:$0xff]  ;;  %v420_v34 = vld [vmem:[%s5955_s30 + $0x350] sm:$0xff] }
  0x21   : > { %417 = vst [vmem:[%s5960_s12 + $0x100] sm:$0xff] %v416_v32  ;;  %v422_v35 = vld [vmem:[%s5955_s30 + $0x358] sm:$0xff]  ;;  %419 = vst [vmem:[%s5960_s12 + $0x108] sm:$0xff] %v418_v33  ;;  %v424_v36 = vld [vmem:[%s5955_s30 + $0x480] sm:$0xff] }
  0x22   : > { %421 = vst [vmem:[%s5960_s12 + $0x110] sm:$0xff] %v420_v34  ;;  %423 = vst [vmem:[%s5960_s12 + $0x118] sm:$0xff] %v422_v35  ;;  %v426_v37 = vld [vmem:[%s5955_s30 + $0x488] sm:$0xff]  ;;  %v428_v38 = vld [vmem:[%s5955_s30 + $0x490] sm:$0xff] }
  0x23   : > { %425 = vst [vmem:[%s5960_s12 + $0x120] sm:$0xff] %v424_v36  ;;  %427 = vst [vmem:[%s5960_s12 + $0x128] sm:$0xff] %v426_v37  ;;  %v430_v39 = vld [vmem:[%s5955_s30 + $0x498] sm:$0xff]  ;;  %v432_v40 = vld [vmem:[%s5955_s30 + $0x4a0] sm:$0xff] }
  0x24   : > { %429 = vst [vmem:[%s5960_s12 + $0x130] sm:$0xff] %v428_v38  ;;  %v434_v41 = vld [vmem:[%s5955_s30 + $0x4a8] sm:$0xff]  ;;  %431 = vst [vmem:[%s5960_s12 + $0x138] sm:$0xff] %v430_v39  ;;  %v436_v42 = vld [vmem:[%s5955_s30 + $0x4b0] sm:$0xff] }
  0x25   : > { %433 = vst [vmem:[%s5960_s12 + $0x140] sm:$0xff] %v432_v40  ;;  %435 = vst [vmem:[%s5960_s12 + $0x148] sm:$0xff] %v434_v41  ;;  %v438_v43 = vld [vmem:[%s5955_s30 + $0x4b8] sm:$0xff]  ;;  %v440_v44 = vld [vmem:[%s5955_s30 + $0x4c0] sm:$0xff] }
  0x26   : > { %437 = vst [vmem:[%s5960_s12 + $0x150] sm:$0xff] %v436_v42  ;;  %439 = vst [vmem:[%s5960_s12 + $0x158] sm:$0xff] %v438_v43  ;;  %v442_v45 = vld [vmem:[%s5955_s30 + $0x4c8] sm:$0xff]  ;;  %v444_v46 = vld [vmem:[%s5955_s30 + $0x4d0] sm:$0xff] }
  0x27   : > { %441 = vst [vmem:[%s5960_s12 + $0x160] sm:$0xff] %v440_v44  ;;  %v446_v47 = vld [vmem:[%s5955_s30 + $0x4d8] sm:$0xff]  ;;  %443 = vst [vmem:[%s5960_s12 + $0x168] sm:$0xff] %v442_v45  ;;  %v448_v48 = vld [vmem:[%s5955_s30 + $0x600] sm:$0xff] }
  0x28   : > { %445 = vst [vmem:[%s5960_s12 + $0x170] sm:$0xff] %v444_v46  ;;  %447 = vst [vmem:[%s5960_s12 + $0x178] sm:$0xff] %v446_v47  ;;  %v450_v49 = vld [vmem:[%s5955_s30 + $0x608] sm:$0xff]  ;;  %v452_v50 = vld [vmem:[%s5955_s30 + $0x610] sm:$0xff] }
  0x29   : > { %449 = vst [vmem:[%s5960_s12 + $0x180] sm:$0xff] %v448_v48  ;;  %451 = vst [vmem:[%s5960_s12 + $0x188] sm:$0xff] %v450_v49  ;;  %v454_v51 = vld [vmem:[%s5955_s30 + $0x618] sm:$0xff]  ;;  %v456_v52 = vld [vmem:[%s5955_s30 + $0x620] sm:$0xff] }
  0x2a   : > { %453 = vst [vmem:[%s5960_s12 + $0x190] sm:$0xff] %v452_v50  ;;  %v458_v53 = vld [vmem:[%s5955_s30 + $0x628] sm:$0xff]  ;;  %455 = vst [vmem:[%s5960_s12 + $0x198] sm:$0xff] %v454_v51  ;;  %v460_v54 = vld [vmem:[%s5955_s30 + $0x630] sm:$0xff] }
  0x2b   : > { %457 = vst [vmem:[%s5960_s12 + $0x1a0] sm:$0xff] %v456_v52  ;;  %459 = vst [vmem:[%s5960_s12 + $0x1a8] sm:$0xff] %v458_v53  ;;  %v462_v55 = vld [vmem:[%s5955_s30 + $0x638] sm:$0xff]  ;;  %v464_v56 = vld [vmem:[%s5955_s30 + $0x640] sm:$0xff] }
  0x2c   : > { %461 = vst [vmem:[%s5960_s12 + $0x1b0] sm:$0xff] %v460_v54  ;;  %463 = vst [vmem:[%s5960_s12 + $0x1b8] sm:$0xff] %v462_v55  ;;  %v466_v57 = vld [vmem:[%s5955_s30 + $0x648] sm:$0xff]  ;;  %v468_v58 = vld [vmem:[%s5955_s30 + $0x650] sm:$0xff] }
  0x2d   : > { %465 = vst [vmem:[%s5960_s12 + $0x1c0] sm:$0xff] %v464_v56  ;;  %v470_v59 = vld [vmem:[%s5955_s30 + $0x658] sm:$0xff]  ;;  %467 = vst [vmem:[%s5960_s12 + $0x1c8] sm:$0xff] %v466_v57  ;;  %v472_v60 = vld [vmem:[%s5955_s30 + $0x780] sm:$0xff] }
  0x2e   : > { %469 = vst [vmem:[%s5960_s12 + $0x1d0] sm:$0xff] %v468_v58  ;;  %471 = vst [vmem:[%s5960_s12 + $0x1d8] sm:$0xff] %v470_v59  ;;  %v474_v61 = vld [vmem:[%s5955_s30 + $0x788] sm:$0xff]  ;;  %v476_v62 = vld [vmem:[%s5955_s30 + $0x790] sm:$0xff] }
  0x2f   : > { %473 = vst [vmem:[%s5960_s12 + $0x1e0] sm:$0xff] %v472_v60  ;;  %475 = vst [vmem:[%s5960_s12 + $0x1e8] sm:$0xff] %v474_v61  ;;  %v478_v63 = vld [vmem:[%s5955_s30 + $0x798] sm:$0xff]  ;;  %v480_v0 = vld [vmem:[%s5955_s30 + $0x7a0] sm:$0xff] }
  0x30   : > { %477 = vst [vmem:[%s5960_s12 + $0x1f0] sm:$0xff] %v476_v62  ;;  %v482_v1 = vld [vmem:[%s5955_s30 + $0x7a8] sm:$0xff]  ;;  %479 = vst [vmem:[%s5960_s12 + $0x1f8] sm:$0xff] %v478_v63  ;;  %v484_v2 = vld [vmem:[%s5955_s30 + $0x7b0] sm:$0xff] }
  0x31   : > { %481 = vst [vmem:[%s5960_s12 + $0x200] sm:$0xff] %v480_v0  ;;  %483 = vst [vmem:[%s5960_s12 + $0x208] sm:$0xff] %v482_v1  ;;  %v486_v3 = vld [vmem:[%s5955_s30 + $0x7b8] sm:$0xff]  ;;  %v488_v4 = vld [vmem:[%s5955_s30 + $0x7c0] sm:$0xff] }
  0x32   : > { %485 = vst [vmem:[%s5960_s12 + $0x210] sm:$0xff] %v484_v2  ;;  %487 = vst [vmem:[%s5960_s12 + $0x218] sm:$0xff] %v486_v3  ;;  %v490_v5 = vld [vmem:[%s5955_s30 + $0x7c8] sm:$0xff]  ;;  %v492_v6 = vld [vmem:[%s5955_s30 + $0x7d0] sm:$0xff] }
  0x33   : > { %489 = vst [vmem:[%s5960_s12 + $0x220] sm:$0xff] %v488_v4  ;;  %v494_v7 = vld [vmem:[%s5955_s30 + $0x7d8] sm:$0xff]  ;;  %491 = vst [vmem:[%s5960_s12 + $0x228] sm:$0xff] %v490_v5  ;;  %v496_v8 = vld [vmem:[%s5955_s30 + $0x900] sm:$0xff] }
  0x34   : > { %493 = vst [vmem:[%s5960_s12 + $0x230] sm:$0xff] %v492_v6  ;;  %495 = vst [vmem:[%s5960_s12 + $0x238] sm:$0xff] %v494_v7  ;;  %v498_v9 = vld [vmem:[%s5955_s30 + $0x908] sm:$0xff]  ;;  %v500_v10 = vld [vmem:[%s5955_s30 + $0x910] sm:$0xff] }
  0x35   : > { %497 = vst [vmem:[%s5960_s12 + $0x240] sm:$0xff] %v496_v8  ;;  %499 = vst [vmem:[%s5960_s12 + $0x248] sm:$0xff] %v498_v9  ;;  %v502_v11 = vld [vmem:[%s5955_s30 + $0x918] sm:$0xff]  ;;  %v504_v12 = vld [vmem:[%s5955_s30 + $0x920] sm:$0xff] }
  0x36   : > { %501 = vst [vmem:[%s5960_s12 + $0x250] sm:$0xff] %v500_v10  ;;  %v506_v13 = vld [vmem:[%s5955_s30 + $0x928] sm:$0xff]  ;;  %503 = vst [vmem:[%s5960_s12 + $0x258] sm:$0xff] %v502_v11  ;;  %v508_v14 = vld [vmem:[%s5955_s30 + $0x930] sm:$0xff] }
  0x37   : > { %505 = vst [vmem:[%s5960_s12 + $0x260] sm:$0xff] %v504_v12  ;;  %507 = vst [vmem:[%s5960_s12 + $0x268] sm:$0xff] %v506_v13  ;;  %v510_v15 = vld [vmem:[%s5955_s30 + $0x938] sm:$0xff]  ;;  %v512_v16 = vld [vmem:[%s5955_s30 + $0x940] sm:$0xff] }
  0x38   : > { %509 = vst [vmem:[%s5960_s12 + $0x270] sm:$0xff] %v508_v14  ;;  %511 = vst [vmem:[%s5960_s12 + $0x278] sm:$0xff] %v510_v15  ;;  %v514_v17 = vld [vmem:[%s5955_s30 + $0x948] sm:$0xff]  ;;  %v516_v18 = vld [vmem:[%s5955_s30 + $0x950] sm:$0xff] }
  0x39   : > { %513 = vst [vmem:[%s5960_s12 + $0x280] sm:$0xff] %v512_v16  ;;  %v518_v19 = vld [vmem:[%s5955_s30 + $0x958] sm:$0xff]  ;;  %515 = vst [vmem:[%s5960_s12 + $0x288] sm:$0xff] %v514_v17  ;;  %v520_v20 = vld [vmem:[%s5955_s30 + $0xa80] sm:$0xff] }
  0x3a   : > { %517 = vst [vmem:[%s5960_s12 + $0x290] sm:$0xff] %v516_v18  ;;  %519 = vst [vmem:[%s5960_s12 + $0x298] sm:$0xff] %v518_v19  ;;  %v522_v21 = vld [vmem:[%s5955_s30 + $0xa88] sm:$0xff]  ;;  %v524_v22 = vld [vmem:[%s5955_s30 + $0xa90] sm:$0xff] }
  0x3b   : > { %521 = vst [vmem:[%s5960_s12 + $0x2a0] sm:$0xff] %v520_v20  ;;  %523 = vst [vmem:[%s5960_s12 + $0x2a8] sm:$0xff] %v522_v21  ;;  %v526_v23 = vld [vmem:[%s5955_s30 + $0xa98] sm:$0xff]  ;;  %v528_v24 = vld [vmem:[%s5955_s30 + $0xaa0] sm:$0xff] }
  0x3c   : > { %525 = vst [vmem:[%s5960_s12 + $0x2b0] sm:$0xff] %v524_v22  ;;  %v530_v25 = vld [vmem:[%s5955_s30 + $0xaa8] sm:$0xff]  ;;  %527 = vst [vmem:[%s5960_s12 + $0x2b8] sm:$0xff] %v526_v23  ;;  %v532_v26 = vld [vmem:[%s5955_s30 + $0xab0] sm:$0xff] }
  0x3d   : > { %529 = vst [vmem:[%s5960_s12 + $0x2c0] sm:$0xff] %v528_v24  ;;  %531 = vst [vmem:[%s5960_s12 + $0x2c8] sm:$0xff] %v530_v25  ;;  %v534_v27 = vld [vmem:[%s5955_s30 + $0xab8] sm:$0xff]  ;;  %v536_v28 = vld [vmem:[%s5955_s30 + $0xac0] sm:$0xff] }
  0x3e   : > { %533 = vst [vmem:[%s5960_s12 + $0x2d0] sm:$0xff] %v532_v26  ;;  %535 = vst [vmem:[%s5960_s12 + $0x2d8] sm:$0xff] %v534_v27  ;;  %v538_v29 = vld [vmem:[%s5955_s30 + $0xac8] sm:$0xff]  ;;  %v540_v30 = vld [vmem:[%s5955_s30 + $0xad0] sm:$0xff] }
  0x3f   : > { %537 = vst [vmem:[%s5960_s12 + $0x2e0] sm:$0xff] %v536_v28  ;;  %v542_v31 = vld [vmem:[%s5955_s30 + $0xad8] sm:$0xff]  ;;  %539 = vst [vmem:[%s5960_s12 + $0x2e8] sm:$0xff] %v538_v29  ;;  %v544_v32 = vld [vmem:[%s5955_s30 + $0xc00] sm:$0xff] }
  0x40   : > { %541 = vst [vmem:[%s5960_s12 + $0x2f0] sm:$0xff] %v540_v30  ;;  %543 = vst [vmem:[%s5960_s12 + $0x2f8] sm:$0xff] %v542_v31  ;;  %v546_v33 = vld [vmem:[%s5955_s30 + $0xc08] sm:$0xff]  ;;  %v548_v34 = vld [vmem:[%s5955_s30 + $0xc10] sm:$0xff] }
  0x41   : > { %545 = vst [vmem:[%s5960_s12 + $0x300] sm:$0xff] %v544_v32  ;;  %547 = vst [vmem:[%s5960_s12 + $0x308] sm:$0xff] %v546_v33  ;;  %v550_v35 = vld [vmem:[%s5955_s30 + $0xc18] sm:$0xff]  ;;  %v552_v36 = vld [vmem:[%s5955_s30 + $0xc20] sm:$0xff] }
  0x42   : > { %549 = vst [vmem:[%s5960_s12 + $0x310] sm:$0xff] %v548_v34  ;;  %v554_v37 = vld [vmem:[%s5955_s30 + $0xc28] sm:$0xff]  ;;  %551 = vst [vmem:[%s5960_s12 + $0x318] sm:$0xff] %v550_v35  ;;  %v556_v38 = vld [vmem:[%s5955_s30 + $0xc30] sm:$0xff] }
  0x43   : > { %553 = vst [vmem:[%s5960_s12 + $0x320] sm:$0xff] %v552_v36  ;;  %555 = vst [vmem:[%s5960_s12 + $0x328] sm:$0xff] %v554_v37  ;;  %v558_v39 = vld [vmem:[%s5955_s30 + $0xc38] sm:$0xff]  ;;  %v560_v40 = vld [vmem:[%s5955_s30 + $0xc40] sm:$0xff] }
  0x44   : > { %557 = vst [vmem:[%s5960_s12 + $0x330] sm:$0xff] %v556_v38  ;;  %559 = vst [vmem:[%s5960_s12 + $0x338] sm:$0xff] %v558_v39  ;;  %v562_v41 = vld [vmem:[%s5955_s30 + $0xc48] sm:$0xff]  ;;  %v564_v42 = vld [vmem:[%s5955_s30 + $0xc50] sm:$0xff] }
  0x45   : > { %561 = vst [vmem:[%s5960_s12 + $0x340] sm:$0xff] %v560_v40  ;;  %v566_v43 = vld [vmem:[%s5955_s30 + $0xc58] sm:$0xff]  ;;  %563 = vst [vmem:[%s5960_s12 + $0x348] sm:$0xff] %v562_v41  ;;  %v568_v44 = vld [vmem:[%s5955_s30 + $0xd80] sm:$0xff] }
  0x46   : > { %565 = vst [vmem:[%s5960_s12 + $0x350] sm:$0xff] %v564_v42  ;;  %567 = vst [vmem:[%s5960_s12 + $0x358] sm:$0xff] %v566_v43  ;;  %v570_v45 = vld [vmem:[%s5955_s30 + $0xd88] sm:$0xff]  ;;  %v572_v46 = vld [vmem:[%s5955_s30 + $0xd90] sm:$0xff] }
  0x47   : > { %569 = vst [vmem:[%s5960_s12 + $0x360] sm:$0xff] %v568_v44  ;;  %571 = vst [vmem:[%s5960_s12 + $0x368] sm:$0xff] %v570_v45  ;;  %v574_v47 = vld [vmem:[%s5955_s30 + $0xd98] sm:$0xff]  ;;  %v576_v48 = vld [vmem:[%s5955_s30 + $0xda0] sm:$0xff] }
  0x48   : > { %573 = vst [vmem:[%s5960_s12 + $0x370] sm:$0xff] %v572_v46  ;;  %v578_v49 = vld [vmem:[%s5955_s30 + $0xda8] sm:$0xff]  ;;  %575 = vst [vmem:[%s5960_s12 + $0x378] sm:$0xff] %v574_v47  ;;  %v580_v50 = vld [vmem:[%s5955_s30 + $0xdb0] sm:$0xff] }
  0x49   : > { %577 = vst [vmem:[%s5960_s12 + $0x380] sm:$0xff] %v576_v48  ;;  %579 = vst [vmem:[%s5960_s12 + $0x388] sm:$0xff] %v578_v49  ;;  %v582_v51 = vld [vmem:[%s5955_s30 + $0xdb8] sm:$0xff]  ;;  %v584_v52 = vld [vmem:[%s5955_s30 + $0xdc0] sm:$0xff] }
  0x4a   : > { %581 = vst [vmem:[%s5960_s12 + $0x390] sm:$0xff] %v580_v50  ;;  %583 = vst [vmem:[%s5960_s12 + $0x398] sm:$0xff] %v582_v51  ;;  %v586_v53 = vld [vmem:[%s5955_s30 + $0xdc8] sm:$0xff]  ;;  %v588_v54 = vld [vmem:[%s5955_s30 + $0xdd0] sm:$0xff] }
  0x4b   : > { %585 = vst [vmem:[%s5960_s12 + $0x3a0] sm:$0xff] %v584_v52  ;;  %v590_v55 = vld [vmem:[%s5955_s30 + $0xdd8] sm:$0xff]  ;;  %587 = vst [vmem:[%s5960_s12 + $0x3a8] sm:$0xff] %v586_v53  ;;  %v592_v56 = vld [vmem:[%s5955_s30 + $0xf00] sm:$0xff] }
  0x4c   : > { %589 = vst [vmem:[%s5960_s12 + $0x3b0] sm:$0xff] %v588_v54  ;;  %591 = vst [vmem:[%s5960_s12 + $0x3b8] sm:$0xff] %v590_v55  ;;  %v594_v57 = vld [vmem:[%s5955_s30 + $0xf08] sm:$0xff]  ;;  %v596_v58 = vld [vmem:[%s5955_s30 + $0xf10] sm:$0xff] }
  0x4d   : > { %593 = vst [vmem:[%s5960_s12 + $0x3c0] sm:$0xff] %v592_v56  ;;  %595 = vst [vmem:[%s5960_s12 + $0x3c8] sm:$0xff] %v594_v57  ;;  %v598_v59 = vld [vmem:[%s5955_s30 + $0xf18] sm:$0xff]  ;;  %v600_v60 = vld [vmem:[%s5955_s30 + $0xf20] sm:$0xff] }
  0x4e   : > { %597 = vst [vmem:[%s5960_s12 + $0x3d0] sm:$0xff] %v596_v58  ;;  %v602_v61 = vld [vmem:[%s5955_s30 + $0xf28] sm:$0xff]  ;;  %599 = vst [vmem:[%s5960_s12 + $0x3d8] sm:$0xff] %v598_v59  ;;  %v604_v62 = vld [vmem:[%s5955_s30 + $0xf30] sm:$0xff] }
  0x4f   : > { %601 = vst [vmem:[%s5960_s12 + $0x3e0] sm:$0xff] %v600_v60  ;;  %603 = vst [vmem:[%s5960_s12 + $0x3e8] sm:$0xff] %v602_v61  ;;  %v606_v63 = vld [vmem:[%s5955_s30 + $0xf38] sm:$0xff]  ;;  %v608_v0 = vld [vmem:[%s5955_s30 + $0xf40] sm:$0xff] }
  0x50   : > { %605 = vst [vmem:[%s5960_s12 + $0x3f0] sm:$0xff] %v604_v62  ;;  %607 = vst [vmem:[%s5960_s12 + $0x3f8] sm:$0xff] %v606_v63  ;;  %v610_v1 = vld [vmem:[%s5955_s30 + $0xf48] sm:$0xff]  ;;  %v612_v2 = vld [vmem:[%s5955_s30 + $0xf50] sm:$0xff] }
  0x51   : > { %609 = vst [vmem:[%s5960_s12 + $0x400] sm:$0xff] %v608_v0  ;;  %v614_v3 = vld [vmem:[%s5955_s30 + $0xf58] sm:$0xff]  ;;  %611 = vst [vmem:[%s5960_s12 + $0x408] sm:$0xff] %v610_v1  ;;  %v616_v4 = vld [vmem:[%s5955_s30 + $0x1080] sm:$0xff] }
  0x52   : > { %613 = vst [vmem:[%s5960_s12 + $0x410] sm:$0xff] %v612_v2  ;;  %615 = vst [vmem:[%s5960_s12 + $0x418] sm:$0xff] %v614_v3  ;;  %v618_v5 = vld [vmem:[%s5955_s30 + $0x1088] sm:$0xff]  ;;  %v620_v6 = vld [vmem:[%s5955_s30 + $0x1090] sm:$0xff] }
  0x53   : > { %617 = vst [vmem:[%s5960_s12 + $0x420] sm:$0xff] %v616_v4  ;;  %619 = vst [vmem:[%s5960_s12 + $0x428] sm:$0xff] %v618_v5  ;;  %v622_v7 = vld [vmem:[%s5955_s30 + $0x1098] sm:$0xff]  ;;  %v624_v8 = vld [vmem:[%s5955_s30 + $0x10a0] sm:$0xff] }
  0x54   : > { %621 = vst [vmem:[%s5960_s12 + $0x430] sm:$0xff] %v620_v6  ;;  %v626_v9 = vld [vmem:[%s5955_s30 + $0x10a8] sm:$0xff]  ;;  %623 = vst [vmem:[%s5960_s12 + $0x438] sm:$0xff] %v622_v7  ;;  %v628_v10 = vld [vmem:[%s5955_s30 + $0x10b0] sm:$0xff] }
  0x55   : > { %625 = vst [vmem:[%s5960_s12 + $0x440] sm:$0xff] %v624_v8  ;;  %627 = vst [vmem:[%s5960_s12 + $0x448] sm:$0xff] %v626_v9  ;;  %v630_v11 = vld [vmem:[%s5955_s30 + $0x10b8] sm:$0xff]  ;;  %v632_v12 = vld [vmem:[%s5955_s30 + $0x10c0] sm:$0xff] }
  0x56   : > { %629 = vst [vmem:[%s5960_s12 + $0x450] sm:$0xff] %v628_v10  ;;  %631 = vst [vmem:[%s5960_s12 + $0x458] sm:$0xff] %v630_v11  ;;  %v634_v13 = vld [vmem:[%s5955_s30 + $0x10c8] sm:$0xff]  ;;  %v636_v14 = vld [vmem:[%s5955_s30 + $0x10d0] sm:$0xff] }
  0x57   : > { %633 = vst [vmem:[%s5960_s12 + $0x460] sm:$0xff] %v632_v12  ;;  %v638_v15 = vld [vmem:[%s5955_s30 + $0x10d8] sm:$0xff]  ;;  %635 = vst [vmem:[%s5960_s12 + $0x468] sm:$0xff] %v634_v13  ;;  %v640_v16 = vld [vmem:[%s5955_s30 + $0x1200] sm:$0xff] }
  0x58   : > { %637 = vst [vmem:[%s5960_s12 + $0x470] sm:$0xff] %v636_v14  ;;  %639 = vst [vmem:[%s5960_s12 + $0x478] sm:$0xff] %v638_v15  ;;  %v642_v17 = vld [vmem:[%s5955_s30 + $0x1208] sm:$0xff]  ;;  %v644_v18 = vld [vmem:[%s5955_s30 + $0x1210] sm:$0xff] }
  0x59   : > { %641 = vst [vmem:[%s5960_s12 + $0x480] sm:$0xff] %v640_v16  ;;  %643 = vst [vmem:[%s5960_s12 + $0x488] sm:$0xff] %v642_v17  ;;  %v646_v19 = vld [vmem:[%s5955_s30 + $0x1218] sm:$0xff]  ;;  %v648_v20 = vld [vmem:[%s5955_s30 + $0x1220] sm:$0xff] }
  0x5a   : > { %645 = vst [vmem:[%s5960_s12 + $0x490] sm:$0xff] %v644_v18  ;;  %v650_v21 = vld [vmem:[%s5955_s30 + $0x1228] sm:$0xff]  ;;  %647 = vst [vmem:[%s5960_s12 + $0x498] sm:$0xff] %v646_v19  ;;  %v652_v22 = vld [vmem:[%s5955_s30 + $0x1230] sm:$0xff] }
  0x5b   : > { %649 = vst [vmem:[%s5960_s12 + $0x4a0] sm:$0xff] %v648_v20  ;;  %651 = vst [vmem:[%s5960_s12 + $0x4a8] sm:$0xff] %v650_v21  ;;  %v654_v23 = vld [vmem:[%s5955_s30 + $0x1238] sm:$0xff]  ;;  %v656_v24 = vld [vmem:[%s5955_s30 + $0x1240] sm:$0xff] }
  0x5c   : > { %653 = vst [vmem:[%s5960_s12 + $0x4b0] sm:$0xff] %v652_v22  ;;  %655 = vst [vmem:[%s5960_s12 + $0x4b8] sm:$0xff] %v654_v23  ;;  %v658_v25 = vld [vmem:[%s5955_s30 + $0x1248] sm:$0xff]  ;;  %v660_v26 = vld [vmem:[%s5955_s30 + $0x1250] sm:$0xff] }
  0x5d   : > { %657 = vst [vmem:[%s5960_s12 + $0x4c0] sm:$0xff] %v656_v24  ;;  %v662_v27 = vld [vmem:[%s5955_s30 + $0x1258] sm:$0xff]  ;;  %659 = vst [vmem:[%s5960_s12 + $0x4c8] sm:$0xff] %v658_v25  ;;  %v664_v28 = vld [vmem:[%s5955_s30 + $0x1380] sm:$0xff] }
  0x5e   : > { %661 = vst [vmem:[%s5960_s12 + $0x4d0] sm:$0xff] %v660_v26  ;;  %663 = vst [vmem:[%s5960_s12 + $0x4d8] sm:$0xff] %v662_v27  ;;  %v666_v29 = vld [vmem:[%s5955_s30 + $0x1388] sm:$0xff]  ;;  %v668_v30 = vld [vmem:[%s5955_s30 + $0x1390] sm:$0xff] }
  0x5f   : > { %665 = vst [vmem:[%s5960_s12 + $0x4e0] sm:$0xff] %v664_v28  ;;  %667 = vst [vmem:[%s5960_s12 + $0x4e8] sm:$0xff] %v666_v29  ;;  %v670_v31 = vld [vmem:[%s5955_s30 + $0x1398] sm:$0xff]  ;;  %v672_v32 = vld [vmem:[%s5955_s30 + $0x13a0] sm:$0xff] }
  0x60   : > { %669 = vst [vmem:[%s5960_s12 + $0x4f0] sm:$0xff] %v668_v30  ;;  %v674_v33 = vld [vmem:[%s5955_s30 + $0x13a8] sm:$0xff]  ;;  %671 = vst [vmem:[%s5960_s12 + $0x4f8] sm:$0xff] %v670_v31  ;;  %v676_v34 = vld [vmem:[%s5955_s30 + $0x13b0] sm:$0xff] }
  0x61   : > { %673 = vst [vmem:[%s5960_s12 + $0x500] sm:$0xff] %v672_v32  ;;  %675 = vst [vmem:[%s5960_s12 + $0x508] sm:$0xff] %v674_v33  ;;  %v678_v35 = vld [vmem:[%s5955_s30 + $0x13b8] sm:$0xff]  ;;  %v680_v36 = vld [vmem:[%s5955_s30 + $0x13c0] sm:$0xff] }
  0x62   : > { %677 = vst [vmem:[%s5960_s12 + $0x510] sm:$0xff] %v676_v34  ;;  %679 = vst [vmem:[%s5960_s12 + $0x518] sm:$0xff] %v678_v35  ;;  %v682_v37 = vld [vmem:[%s5955_s30 + $0x13c8] sm:$0xff]  ;;  %v684_v38 = vld [vmem:[%s5955_s30 + $0x13d0] sm:$0xff] }
  0x63   : > { %681 = vst [vmem:[%s5960_s12 + $0x520] sm:$0xff] %v680_v36  ;;  %v686_v39 = vld [vmem:[%s5955_s30 + $0x13d8] sm:$0xff]  ;;  %683 = vst [vmem:[%s5960_s12 + $0x528] sm:$0xff] %v682_v37  ;;  %v688_v40 = vld [vmem:[%s5955_s30 + $0x1500] sm:$0xff] }
  0x64   : > { %685 = vst [vmem:[%s5960_s12 + $0x530] sm:$0xff] %v684_v38  ;;  %687 = vst [vmem:[%s5960_s12 + $0x538] sm:$0xff] %v686_v39  ;;  %v690_v41 = vld [vmem:[%s5955_s30 + $0x1508] sm:$0xff]  ;;  %v692_v42 = vld [vmem:[%s5955_s30 + $0x1510] sm:$0xff] }
  0x65   : > { %689 = vst [vmem:[%s5960_s12 + $0x540] sm:$0xff] %v688_v40  ;;  %691 = vst [vmem:[%s5960_s12 + $0x548] sm:$0xff] %v690_v41  ;;  %v694_v43 = vld [vmem:[%s5955_s30 + $0x1518] sm:$0xff]  ;;  %v696_v44 = vld [vmem:[%s5955_s30 + $0x1520] sm:$0xff] }
  0x66   : > { %693 = vst [vmem:[%s5960_s12 + $0x550] sm:$0xff] %v692_v42  ;;  %v698_v45 = vld [vmem:[%s5955_s30 + $0x1528] sm:$0xff]  ;;  %695 = vst [vmem:[%s5960_s12 + $0x558] sm:$0xff] %v694_v43  ;;  %v700_v46 = vld [vmem:[%s5955_s30 + $0x1530] sm:$0xff] }
  0x67   : > { %697 = vst [vmem:[%s5960_s12 + $0x560] sm:$0xff] %v696_v44  ;;  %699 = vst [vmem:[%s5960_s12 + $0x568] sm:$0xff] %v698_v45  ;;  %v702_v47 = vld [vmem:[%s5955_s30 + $0x1538] sm:$0xff]  ;;  %v704_v48 = vld [vmem:[%s5955_s30 + $0x1540] sm:$0xff] }
  0x68   : > { %701 = vst [vmem:[%s5960_s12 + $0x570] sm:$0xff] %v700_v46  ;;  %703 = vst [vmem:[%s5960_s12 + $0x578] sm:$0xff] %v702_v47  ;;  %v706_v49 = vld [vmem:[%s5955_s30 + $0x1548] sm:$0xff]  ;;  %v708_v50 = vld [vmem:[%s5955_s30 + $0x1550] sm:$0xff] }
  0x69   : > { %705 = vst [vmem:[%s5960_s12 + $0x580] sm:$0xff] %v704_v48  ;;  %v710_v51 = vld [vmem:[%s5955_s30 + $0x1558] sm:$0xff]  ;;  %707 = vst [vmem:[%s5960_s12 + $0x588] sm:$0xff] %v706_v49  ;;  %v712_v52 = vld [vmem:[%s5955_s30 + $0x1680] sm:$0xff] }
  0x6a   : > { %709 = vst [vmem:[%s5960_s12 + $0x590] sm:$0xff] %v708_v50  ;;  %711 = vst [vmem:[%s5960_s12 + $0x598] sm:$0xff] %v710_v51  ;;  %v714_v53 = vld [vmem:[%s5955_s30 + $0x1688] sm:$0xff]  ;;  %v716_v54 = vld [vmem:[%s5955_s30 + $0x1690] sm:$0xff] }
  0x6b   : > { %713 = vst [vmem:[%s5960_s12 + $0x5a0] sm:$0xff] %v712_v52  ;;  %715 = vst [vmem:[%s5960_s12 + $0x5a8] sm:$0xff] %v714_v53  ;;  %v718_v55 = vld [vmem:[%s5955_s30 + $0x1698] sm:$0xff]  ;;  %v720_v56 = vld [vmem:[%s5955_s30 + $0x16a0] sm:$0xff] }
  0x6c   : > { %717 = vst [vmem:[%s5960_s12 + $0x5b0] sm:$0xff] %v716_v54  ;;  %v722_v57 = vld [vmem:[%s5955_s30 + $0x16a8] sm:$0xff]  ;;  %719 = vst [vmem:[%s5960_s12 + $0x5b8] sm:$0xff] %v718_v55  ;;  %v724_v58 = vld [vmem:[%s5955_s30 + $0x16b0] sm:$0xff] }
  0x6d   : > { %721 = vst [vmem:[%s5960_s12 + $0x5c0] sm:$0xff] %v720_v56  ;;  %723 = vst [vmem:[%s5960_s12 + $0x5c8] sm:$0xff] %v722_v57  ;;  %v726_v59 = vld [vmem:[%s5955_s30 + $0x16b8] sm:$0xff]  ;;  %v728_v60 = vld [vmem:[%s5955_s30 + $0x16c0] sm:$0xff] }
  0x6e   : > { %725 = vst [vmem:[%s5960_s12 + $0x5d0] sm:$0xff] %v724_v58  ;;  %727 = vst [vmem:[%s5960_s12 + $0x5d8] sm:$0xff] %v726_v59  ;;  %v730_v61 = vld [vmem:[%s5955_s30 + $0x16c8] sm:$0xff]  ;;  %v732_v62 = vld [vmem:[%s5955_s30 + $0x16d0] sm:$0xff] }
  0x6f   : > { %729 = vst [vmem:[%s5960_s12 + $0x5e0] sm:$0xff] %v728_v60  ;;  %v734_v63 = vld [vmem:[%s5955_s30 + $0x16d8] sm:$0xff]  ;;  %731 = vst [vmem:[%s5960_s12 + $0x5e8] sm:$0xff] %v730_v61  ;;  %v736_v0 = vld [vmem:[%s5955_s30 + $0x1800] sm:$0xff] }
  0x70   : > { %733 = vst [vmem:[%s5960_s12 + $0x5f0] sm:$0xff] %v732_v62  ;;  %735 = vst [vmem:[%s5960_s12 + $0x5f8] sm:$0xff] %v734_v63  ;;  %v738_v1 = vld [vmem:[%s5955_s30 + $0x1808] sm:$0xff]  ;;  %v740_v2 = vld [vmem:[%s5955_s30 + $0x1810] sm:$0xff] }
  0x71   : > { %737 = vst [vmem:[%s5960_s12 + $0x600] sm:$0xff] %v736_v0  ;;  %739 = vst [vmem:[%s5960_s12 + $0x608] sm:$0xff] %v738_v1  ;;  %v742_v3 = vld [vmem:[%s5955_s30 + $0x1818] sm:$0xff]  ;;  %v744_v4 = vld [vmem:[%s5955_s30 + $0x1820] sm:$0xff] }
  0x72   : > { %741 = vst [vmem:[%s5960_s12 + $0x610] sm:$0xff] %v740_v2  ;;  %v746_v5 = vld [vmem:[%s5955_s30 + $0x1828] sm:$0xff]  ;;  %743 = vst [vmem:[%s5960_s12 + $0x618] sm:$0xff] %v742_v3  ;;  %v748_v6 = vld [vmem:[%s5955_s30 + $0x1830] sm:$0xff] }
  0x73   : > { %745 = vst [vmem:[%s5960_s12 + $0x620] sm:$0xff] %v744_v4  ;;  %747 = vst [vmem:[%s5960_s12 + $0x628] sm:$0xff] %v746_v5  ;;  %v750_v7 = vld [vmem:[%s5955_s30 + $0x1838] sm:$0xff]  ;;  %v752_v8 = vld [vmem:[%s5955_s30 + $0x1840] sm:$0xff] }
  0x74   : > { %749 = vst [vmem:[%s5960_s12 + $0x630] sm:$0xff] %v748_v6  ;;  %751 = vst [vmem:[%s5960_s12 + $0x638] sm:$0xff] %v750_v7  ;;  %v754_v9 = vld [vmem:[%s5955_s30 + $0x1848] sm:$0xff]  ;;  %v756_v10 = vld [vmem:[%s5955_s30 + $0x1850] sm:$0xff] }
  0x75   : > { %753 = vst [vmem:[%s5960_s12 + $0x640] sm:$0xff] %v752_v8  ;;  %v758_v11 = vld [vmem:[%s5955_s30 + $0x1858] sm:$0xff]  ;;  %755 = vst [vmem:[%s5960_s12 + $0x648] sm:$0xff] %v754_v9  ;;  %v760_v12 = vld [vmem:[%s5955_s30 + $0x1980] sm:$0xff] }
  0x76   : > { %757 = vst [vmem:[%s5960_s12 + $0x650] sm:$0xff] %v756_v10  ;;  %759 = vst [vmem:[%s5960_s12 + $0x658] sm:$0xff] %v758_v11  ;;  %v762_v13 = vld [vmem:[%s5955_s30 + $0x1988] sm:$0xff]  ;;  %v764_v14 = vld [vmem:[%s5955_s30 + $0x1990] sm:$0xff] }
  0x77   : > { %761 = vst [vmem:[%s5960_s12 + $0x660] sm:$0xff] %v760_v12  ;;  %763 = vst [vmem:[%s5960_s12 + $0x668] sm:$0xff] %v762_v13  ;;  %v766_v15 = vld [vmem:[%s5955_s30 + $0x1998] sm:$0xff]  ;;  %v768_v16 = vld [vmem:[%s5955_s30 + $0x19a0] sm:$0xff] }
  0x78   : > { %765 = vst [vmem:[%s5960_s12 + $0x670] sm:$0xff] %v764_v14  ;;  %v770_v17 = vld [vmem:[%s5955_s30 + $0x19a8] sm:$0xff]  ;;  %767 = vst [vmem:[%s5960_s12 + $0x678] sm:$0xff] %v766_v15  ;;  %v772_v18 = vld [vmem:[%s5955_s30 + $0x19b0] sm:$0xff] }
  0x79   : > { %769 = vst [vmem:[%s5960_s12 + $0x680] sm:$0xff] %v768_v16  ;;  %771 = vst [vmem:[%s5960_s12 + $0x688] sm:$0xff] %v770_v17  ;;  %v774_v19 = vld [vmem:[%s5955_s30 + $0x19b8] sm:$0xff]  ;;  %v776_v20 = vld [vmem:[%s5955_s30 + $0x19c0] sm:$0xff] }
  0x7a   : > { %773 = vst [vmem:[%s5960_s12 + $0x690] sm:$0xff] %v772_v18  ;;  %775 = vst [vmem:[%s5960_s12 + $0x698] sm:$0xff] %v774_v19  ;;  %v778_v21 = vld [vmem:[%s5955_s30 + $0x19c8] sm:$0xff]  ;;  %v780_v22 = vld [vmem:[%s5955_s30 + $0x19d0] sm:$0xff] }
  0x7b   : > { %777 = vst [vmem:[%s5960_s12 + $0x6a0] sm:$0xff] %v776_v20  ;;  %v782_v23 = vld [vmem:[%s5955_s30 + $0x19d8] sm:$0xff]  ;;  %779 = vst [vmem:[%s5960_s12 + $0x6a8] sm:$0xff] %v778_v21  ;;  %v784_v24 = vld [vmem:[%s5955_s30 + $0x1b00] sm:$0xff] }
  0x7c   : > { %781 = vst [vmem:[%s5960_s12 + $0x6b0] sm:$0xff] %v780_v22  ;;  %783 = vst [vmem:[%s5960_s12 + $0x6b8] sm:$0xff] %v782_v23  ;;  %v786_v25 = vld [vmem:[%s5955_s30 + $0x1b08] sm:$0xff]  ;;  %v788_v26 = vld [vmem:[%s5955_s30 + $0x1b10] sm:$0xff] }
  0x7d   : > { %785 = vst [vmem:[%s5960_s12 + $0x6c0] sm:$0xff] %v784_v24  ;;  %787 = vst [vmem:[%s5960_s12 + $0x6c8] sm:$0xff] %v786_v25  ;;  %v790_v27 = vld [vmem:[%s5955_s30 + $0x1b18] sm:$0xff]  ;;  %v792_v28 = vld [vmem:[%s5955_s30 + $0x1b20] sm:$0xff] }
  0x7e   : > { %789 = vst [vmem:[%s5960_s12 + $0x6d0] sm:$0xff] %v788_v26  ;;  %v794_v29 = vld [vmem:[%s5955_s30 + $0x1b28] sm:$0xff]  ;;  %791 = vst [vmem:[%s5960_s12 + $0x6d8] sm:$0xff] %v790_v27  ;;  %v796_v30 = vld [vmem:[%s5955_s30 + $0x1b30] sm:$0xff] }
  0x7f   : > { %793 = vst [vmem:[%s5960_s12 + $0x6e0] sm:$0xff] %v792_v28  ;;  %795 = vst [vmem:[%s5960_s12 + $0x6e8] sm:$0xff] %v794_v29  ;;  %v798_v31 = vld [vmem:[%s5955_s30 + $0x1b38] sm:$0xff]  ;;  %v800_v32 = vld [vmem:[%s5955_s30 + $0x1b40] sm:$0xff] }
  0x80   : > { %797 = vst [vmem:[%s5960_s12 + $0x6f0] sm:$0xff] %v796_v30  ;;  %799 = vst [vmem:[%s5960_s12 + $0x6f8] sm:$0xff] %v798_v31  ;;  %v802_v33 = vld [vmem:[%s5955_s30 + $0x1b48] sm:$0xff]  ;;  %v804_v34 = vld [vmem:[%s5955_s30 + $0x1b50] sm:$0xff] }
  0x81   : > { %801 = vst [vmem:[%s5960_s12 + $0x700] sm:$0xff] %v800_v32  ;;  %v806_v35 = vld [vmem:[%s5955_s30 + $0x1b58] sm:$0xff]  ;;  %803 = vst [vmem:[%s5960_s12 + $0x708] sm:$0xff] %v802_v33  ;;  %v808_v36 = vld [vmem:[%s5955_s30 + $0x1c80] sm:$0xff] }
  0x82   : > { %805 = vst [vmem:[%s5960_s12 + $0x710] sm:$0xff] %v804_v34  ;;  %807 = vst [vmem:[%s5960_s12 + $0x718] sm:$0xff] %v806_v35  ;;  %v810_v37 = vld [vmem:[%s5955_s30 + $0x1c88] sm:$0xff]  ;;  %v812_v38 = vld [vmem:[%s5955_s30 + $0x1c90] sm:$0xff] }
  0x83   : > { %809 = vst [vmem:[%s5960_s12 + $0x720] sm:$0xff] %v808_v36  ;;  %811 = vst [vmem:[%s5960_s12 + $0x728] sm:$0xff] %v810_v37  ;;  %v814_v39 = vld [vmem:[%s5955_s30 + $0x1c98] sm:$0xff]  ;;  %v816_v40 = vld [vmem:[%s5955_s30 + $0x1ca0] sm:$0xff] }
  0x84   : > { %813 = vst [vmem:[%s5960_s12 + $0x730] sm:$0xff] %v812_v38  ;;  %v818_v41 = vld [vmem:[%s5955_s30 + $0x1ca8] sm:$0xff]  ;;  %815 = vst [vmem:[%s5960_s12 + $0x738] sm:$0xff] %v814_v39  ;;  %v820_v42 = vld [vmem:[%s5955_s30 + $0x1cb0] sm:$0xff] }
  0x85   : > { %817 = vst [vmem:[%s5960_s12 + $0x740] sm:$0xff] %v816_v40  ;;  %819 = vst [vmem:[%s5960_s12 + $0x748] sm:$0xff] %v818_v41  ;;  %v822_v43 = vld [vmem:[%s5955_s30 + $0x1cb8] sm:$0xff]  ;;  %v824_v44 = vld [vmem:[%s5955_s30 + $0x1cc0] sm:$0xff] }
  0x86   : > { %821 = vst [vmem:[%s5960_s12 + $0x750] sm:$0xff] %v820_v42  ;;  %823 = vst [vmem:[%s5960_s12 + $0x758] sm:$0xff] %v822_v43  ;;  %v826_v45 = vld [vmem:[%s5955_s30 + $0x1cc8] sm:$0xff]  ;;  %v828_v46 = vld [vmem:[%s5955_s30 + $0x1cd0] sm:$0xff] }
  0x87   : > { %825 = vst [vmem:[%s5960_s12 + $0x760] sm:$0xff] %v824_v44  ;;  %v830_v47 = vld [vmem:[%s5955_s30 + $0x1cd8] sm:$0xff]  ;;  %827 = vst [vmem:[%s5960_s12 + $0x768] sm:$0xff] %v826_v45  ;;  %v832_v48 = vld [vmem:[%s5955_s30 + $0x1e00] sm:$0xff] }
  0x88   : > { %829 = vst [vmem:[%s5960_s12 + $0x770] sm:$0xff] %v828_v46  ;;  %831 = vst [vmem:[%s5960_s12 + $0x778] sm:$0xff] %v830_v47  ;;  %v834_v49 = vld [vmem:[%s5955_s30 + $0x1e08] sm:$0xff]  ;;  %v836_v50 = vld [vmem:[%s5955_s30 + $0x1e10] sm:$0xff] }
  0x89   : > { %833 = vst [vmem:[%s5960_s12 + $0x780] sm:$0xff] %v832_v48  ;;  %835 = vst [vmem:[%s5960_s12 + $0x788] sm:$0xff] %v834_v49  ;;  %v838_v51 = vld [vmem:[%s5955_s30 + $0x1e18] sm:$0xff]  ;;  %v840_v52 = vld [vmem:[%s5955_s30 + $0x1e20] sm:$0xff] }
  0x8a   : > { %837 = vst [vmem:[%s5960_s12 + $0x790] sm:$0xff] %v836_v50  ;;  %v842_v53 = vld [vmem:[%s5955_s30 + $0x1e28] sm:$0xff]  ;;  %839 = vst [vmem:[%s5960_s12 + $0x798] sm:$0xff] %v838_v51  ;;  %v844_v54 = vld [vmem:[%s5955_s30 + $0x1e30] sm:$0xff] }
  0x8b   : > { %841 = vst [vmem:[%s5960_s12 + $0x7a0] sm:$0xff] %v840_v52  ;;  %843 = vst [vmem:[%s5960_s12 + $0x7a8] sm:$0xff] %v842_v53  ;;  %v846_v55 = vld [vmem:[%s5955_s30 + $0x1e38] sm:$0xff]  ;;  %v848_v56 = vld [vmem:[%s5955_s30 + $0x1e40] sm:$0xff] }
  0x8c   : > { %845 = vst [vmem:[%s5960_s12 + $0x7b0] sm:$0xff] %v844_v54  ;;  %847 = vst [vmem:[%s5960_s12 + $0x7b8] sm:$0xff] %v846_v55  ;;  %v850_v57 = vld [vmem:[%s5955_s30 + $0x1e48] sm:$0xff]  ;;  %v852_v58 = vld [vmem:[%s5955_s30 + $0x1e50] sm:$0xff] }
  0x8d   : > { %849 = vst [vmem:[%s5960_s12 + $0x7c0] sm:$0xff] %v848_v56  ;;  %v854_v59 = vld [vmem:[%s5955_s30 + $0x1e58] sm:$0xff]  ;;  %851 = vst [vmem:[%s5960_s12 + $0x7c8] sm:$0xff] %v850_v57  ;;  %v856_v60 = vld [vmem:[%s5955_s30 + $0x1f80] sm:$0xff] }
  0x8e   : > { %853 = vst [vmem:[%s5960_s12 + $0x7d0] sm:$0xff] %v852_v58  ;;  %855 = vst [vmem:[%s5960_s12 + $0x7d8] sm:$0xff] %v854_v59  ;;  %v858_v61 = vld [vmem:[%s5955_s30 + $0x1f88] sm:$0xff]  ;;  %v860_v62 = vld [vmem:[%s5955_s30 + $0x1f90] sm:$0xff] }
  0x8f   : > { %857 = vst [vmem:[%s5960_s12 + $0x7e0] sm:$0xff] %v856_v60  ;;  %859 = vst [vmem:[%s5960_s12 + $0x7e8] sm:$0xff] %v858_v61  ;;  %v862_v63 = vld [vmem:[%s5955_s30 + $0x1f98] sm:$0xff]  ;;  %v864_v0 = vld [vmem:[%s5955_s30 + $0x1fa0] sm:$0xff] }
  0x90   : > { %861 = vst [vmem:[%s5960_s12 + $0x7f0] sm:$0xff] %v860_v62  ;;  %v866_v1 = vld [vmem:[%s5955_s30 + $0x1fa8] sm:$0xff]  ;;  %863 = vst [vmem:[%s5960_s12 + $0x7f8] sm:$0xff] %v862_v63  ;;  %v868_v2 = vld [vmem:[%s5955_s30 + $0x1fb0] sm:$0xff] }
  0x91   : > { %865 = vst [vmem:[%s5960_s12 + $0x800] sm:$0xff] %v864_v0  ;;  %867 = vst [vmem:[%s5960_s12 + $0x808] sm:$0xff] %v866_v1  ;;  %v870_v3 = vld [vmem:[%s5955_s30 + $0x1fb8] sm:$0xff]  ;;  %v872_v4 = vld [vmem:[%s5955_s30 + $0x1fc0] sm:$0xff] }
  0x92   : > { %869 = vst [vmem:[%s5960_s12 + $0x810] sm:$0xff] %v868_v2  ;;  %871 = vst [vmem:[%s5960_s12 + $0x818] sm:$0xff] %v870_v3  ;;  %v874_v5 = vld [vmem:[%s5955_s30 + $0x1fc8] sm:$0xff]  ;;  %v876_v6 = vld [vmem:[%s5955_s30 + $0x1fd0] sm:$0xff] }
  0x93   : > { %873 = vst [vmem:[%s5960_s12 + $0x820] sm:$0xff] %v872_v4  ;;  %v878_v7 = vld [vmem:[%s5955_s30 + $0x1fd8] sm:$0xff]  ;;  %875 = vst [vmem:[%s5960_s12 + $0x828] sm:$0xff] %v874_v5  ;;  %v880_v8 = vld [vmem:[%s5955_s30 + $0x2100] sm:$0xff] }
  0x94   : > { %877 = vst [vmem:[%s5960_s12 + $0x830] sm:$0xff] %v876_v6  ;;  %879 = vst [vmem:[%s5960_s12 + $0x838] sm:$0xff] %v878_v7  ;;  %v882_v9 = vld [vmem:[%s5955_s30 + $0x2108] sm:$0xff]  ;;  %v884_v10 = vld [vmem:[%s5955_s30 + $0x2110] sm:$0xff] }
  0x95   : > { %881 = vst [vmem:[%s5960_s12 + $0x840] sm:$0xff] %v880_v8  ;;  %883 = vst [vmem:[%s5960_s12 + $0x848] sm:$0xff] %v882_v9  ;;  %v886_v11 = vld [vmem:[%s5955_s30 + $0x2118] sm:$0xff]  ;;  %v888_v12 = vld [vmem:[%s5955_s30 + $0x2120] sm:$0xff] }
  0x96   : > { %885 = vst [vmem:[%s5960_s12 + $0x850] sm:$0xff] %v884_v10  ;;  %v890_v13 = vld [vmem:[%s5955_s30 + $0x2128] sm:$0xff]  ;;  %887 = vst [vmem:[%s5960_s12 + $0x858] sm:$0xff] %v886_v11  ;;  %v892_v14 = vld [vmem:[%s5955_s30 + $0x2130] sm:$0xff] }
  0x97   : > { %889 = vst [vmem:[%s5960_s12 + $0x860] sm:$0xff] %v888_v12  ;;  %891 = vst [vmem:[%s5960_s12 + $0x868] sm:$0xff] %v890_v13  ;;  %v894_v15 = vld [vmem:[%s5955_s30 + $0x2138] sm:$0xff]  ;;  %v896_v16 = vld [vmem:[%s5955_s30 + $0x2140] sm:$0xff] }
  0x98   : > { %893 = vst [vmem:[%s5960_s12 + $0x870] sm:$0xff] %v892_v14  ;;  %895 = vst [vmem:[%s5960_s12 + $0x878] sm:$0xff] %v894_v15  ;;  %v898_v17 = vld [vmem:[%s5955_s30 + $0x2148] sm:$0xff]  ;;  %v900_v18 = vld [vmem:[%s5955_s30 + $0x2150] sm:$0xff] }
  0x99   : > { %897 = vst [vmem:[%s5960_s12 + $0x880] sm:$0xff] %v896_v16  ;;  %v902_v19 = vld [vmem:[%s5955_s30 + $0x2158] sm:$0xff]  ;;  %899 = vst [vmem:[%s5960_s12 + $0x888] sm:$0xff] %v898_v17  ;;  %v904_v20 = vld [vmem:[%s5955_s30 + $0x2280] sm:$0xff] }
  0x9a   : > { %901 = vst [vmem:[%s5960_s12 + $0x890] sm:$0xff] %v900_v18  ;;  %903 = vst [vmem:[%s5960_s12 + $0x898] sm:$0xff] %v902_v19  ;;  %v906_v21 = vld [vmem:[%s5955_s30 + $0x2288] sm:$0xff]  ;;  %v908_v22 = vld [vmem:[%s5955_s30 + $0x2290] sm:$0xff] }
  0x9b   : > { %905 = vst [vmem:[%s5960_s12 + $0x8a0] sm:$0xff] %v904_v20  ;;  %907 = vst [vmem:[%s5960_s12 + $0x8a8] sm:$0xff] %v906_v21  ;;  %v910_v23 = vld [vmem:[%s5955_s30 + $0x2298] sm:$0xff]  ;;  %v912_v24 = vld [vmem:[%s5955_s30 + $0x22a0] sm:$0xff] }
  0x9c   : > { %909 = vst [vmem:[%s5960_s12 + $0x8b0] sm:$0xff] %v908_v22  ;;  %v914_v25 = vld [vmem:[%s5955_s30 + $0x22a8] sm:$0xff]  ;;  %911 = vst [vmem:[%s5960_s12 + $0x8b8] sm:$0xff] %v910_v23  ;;  %v916_v26 = vld [vmem:[%s5955_s30 + $0x22b0] sm:$0xff] }
  0x9d   : > { %913 = vst [vmem:[%s5960_s12 + $0x8c0] sm:$0xff] %v912_v24  ;;  %915 = vst [vmem:[%s5960_s12 + $0x8c8] sm:$0xff] %v914_v25  ;;  %v918_v27 = vld [vmem:[%s5955_s30 + $0x22b8] sm:$0xff]  ;;  %v920_v28 = vld [vmem:[%s5955_s30 + $0x22c0] sm:$0xff] }
  0x9e   : > { %917 = vst [vmem:[%s5960_s12 + $0x8d0] sm:$0xff] %v916_v26  ;;  %919 = vst [vmem:[%s5960_s12 + $0x8d8] sm:$0xff] %v918_v27  ;;  %v922_v29 = vld [vmem:[%s5955_s30 + $0x22c8] sm:$0xff]  ;;  %v924_v30 = vld [vmem:[%s5955_s30 + $0x22d0] sm:$0xff] }
  0x9f   : > { %921 = vst [vmem:[%s5960_s12 + $0x8e0] sm:$0xff] %v920_v28  ;;  %v926_v31 = vld [vmem:[%s5955_s30 + $0x22d8] sm:$0xff]  ;;  %923 = vst [vmem:[%s5960_s12 + $0x8e8] sm:$0xff] %v922_v29  ;;  %v928_v32 = vld [vmem:[%s5955_s30 + $0x2400] sm:$0xff] }
  0xa0   : > { %925 = vst [vmem:[%s5960_s12 + $0x8f0] sm:$0xff] %v924_v30  ;;  %927 = vst [vmem:[%s5960_s12 + $0x8f8] sm:$0xff] %v926_v31  ;;  %v930_v33 = vld [vmem:[%s5955_s30 + $0x2408] sm:$0xff]  ;;  %v932_v34 = vld [vmem:[%s5955_s30 + $0x2410] sm:$0xff] }
  0xa1   : > { %929 = vst [vmem:[%s5960_s12 + $0x900] sm:$0xff] %v928_v32  ;;  %931 = vst [vmem:[%s5960_s12 + $0x908] sm:$0xff] %v930_v33  ;;  %v934_v35 = vld [vmem:[%s5955_s30 + $0x2418] sm:$0xff]  ;;  %v936_v36 = vld [vmem:[%s5955_s30 + $0x2420] sm:$0xff] }
  0xa2   : > { %933 = vst [vmem:[%s5960_s12 + $0x910] sm:$0xff] %v932_v34  ;;  %v938_v37 = vld [vmem:[%s5955_s30 + $0x2428] sm:$0xff]  ;;  %935 = vst [vmem:[%s5960_s12 + $0x918] sm:$0xff] %v934_v35  ;;  %v940_v38 = vld [vmem:[%s5955_s30 + $0x2430] sm:$0xff] }
  0xa3   : > { %937 = vst [vmem:[%s5960_s12 + $0x920] sm:$0xff] %v936_v36  ;;  %939 = vst [vmem:[%s5960_s12 + $0x928] sm:$0xff] %v938_v37  ;;  %v942_v39 = vld [vmem:[%s5955_s30 + $0x2438] sm:$0xff]  ;;  %v944_v40 = vld [vmem:[%s5955_s30 + $0x2440] sm:$0xff] }
  0xa4   : > { %941 = vst [vmem:[%s5960_s12 + $0x930] sm:$0xff] %v940_v38  ;;  %943 = vst [vmem:[%s5960_s12 + $0x938] sm:$0xff] %v942_v39  ;;  %v946_v41 = vld [vmem:[%s5955_s30 + $0x2448] sm:$0xff]  ;;  %v948_v42 = vld [vmem:[%s5955_s30 + $0x2450] sm:$0xff] }
  0xa5   : > { %945 = vst [vmem:[%s5960_s12 + $0x940] sm:$0xff] %v944_v40  ;;  %v950_v43 = vld [vmem:[%s5955_s30 + $0x2458] sm:$0xff]  ;;  %947 = vst [vmem:[%s5960_s12 + $0x948] sm:$0xff] %v946_v41  ;;  %v952_v44 = vld [vmem:[%s5955_s30 + $0x2580] sm:$0xff] }
  0xa6   : > { %949 = vst [vmem:[%s5960_s12 + $0x950] sm:$0xff] %v948_v42  ;;  %951 = vst [vmem:[%s5960_s12 + $0x958] sm:$0xff] %v950_v43  ;;  %v954_v45 = vld [vmem:[%s5955_s30 + $0x2588] sm:$0xff]  ;;  %v956_v46 = vld [vmem:[%s5955_s30 + $0x2590] sm:$0xff] }
  0xa7   : > { %953 = vst [vmem:[%s5960_s12 + $0x960] sm:$0xff] %v952_v44  ;;  %955 = vst [vmem:[%s5960_s12 + $0x968] sm:$0xff] %v954_v45  ;;  %v958_v47 = vld [vmem:[%s5955_s30 + $0x2598] sm:$0xff]  ;;  %v960_v48 = vld [vmem:[%s5955_s30 + $0x25a0] sm:$0xff] }
  0xa8   : > { %957 = vst [vmem:[%s5960_s12 + $0x970] sm:$0xff] %v956_v46  ;;  %v962_v49 = vld [vmem:[%s5955_s30 + $0x25a8] sm:$0xff]  ;;  %959 = vst [vmem:[%s5960_s12 + $0x978] sm:$0xff] %v958_v47  ;;  %v964_v50 = vld [vmem:[%s5955_s30 + $0x25b0] sm:$0xff] }
  0xa9   : > { %961 = vst [vmem:[%s5960_s12 + $0x980] sm:$0xff] %v960_v48  ;;  %963 = vst [vmem:[%s5960_s12 + $0x988] sm:$0xff] %v962_v49  ;;  %v966_v51 = vld [vmem:[%s5955_s30 + $0x25b8] sm:$0xff]  ;;  %v968_v52 = vld [vmem:[%s5955_s30 + $0x25c0] sm:$0xff] }
  0xaa   : > { %965 = vst [vmem:[%s5960_s12 + $0x990] sm:$0xff] %v964_v50  ;;  %967 = vst [vmem:[%s5960_s12 + $0x998] sm:$0xff] %v966_v51  ;;  %v970_v53 = vld [vmem:[%s5955_s30 + $0x25c8] sm:$0xff]  ;;  %v972_v54 = vld [vmem:[%s5955_s30 + $0x25d0] sm:$0xff] }
  0xab   : > { %969 = vst [vmem:[%s5960_s12 + $0x9a0] sm:$0xff] %v968_v52  ;;  %v974_v55 = vld [vmem:[%s5955_s30 + $0x25d8] sm:$0xff]  ;;  %971 = vst [vmem:[%s5960_s12 + $0x9a8] sm:$0xff] %v970_v53  ;;  %v976_v56 = vld [vmem:[%s5955_s30 + $0x2700] sm:$0xff] }
  0xac   : > { %973 = vst [vmem:[%s5960_s12 + $0x9b0] sm:$0xff] %v972_v54  ;;  %975 = vst [vmem:[%s5960_s12 + $0x9b8] sm:$0xff] %v974_v55  ;;  %v978_v57 = vld [vmem:[%s5955_s30 + $0x2708] sm:$0xff]  ;;  %v980_v58 = vld [vmem:[%s5955_s30 + $0x2710] sm:$0xff] }
  0xad   : > { %977 = vst [vmem:[%s5960_s12 + $0x9c0] sm:$0xff] %v976_v56  ;;  %979 = vst [vmem:[%s5960_s12 + $0x9c8] sm:$0xff] %v978_v57  ;;  %v982_v59 = vld [vmem:[%s5955_s30 + $0x2718] sm:$0xff]  ;;  %v984_v60 = vld [vmem:[%s5955_s30 + $0x2720] sm:$0xff] }
  0xae   : > { %981 = vst [vmem:[%s5960_s12 + $0x9d0] sm:$0xff] %v980_v58  ;;  %v986_v61 = vld [vmem:[%s5955_s30 + $0x2728] sm:$0xff]  ;;  %983 = vst [vmem:[%s5960_s12 + $0x9d8] sm:$0xff] %v982_v59  ;;  %v988_v62 = vld [vmem:[%s5955_s30 + $0x2730] sm:$0xff] }
  0xaf   : > { %985 = vst [vmem:[%s5960_s12 + $0x9e0] sm:$0xff] %v984_v60  ;;  %987 = vst [vmem:[%s5960_s12 + $0x9e8] sm:$0xff] %v986_v61  ;;  %v990_v63 = vld [vmem:[%s5955_s30 + $0x2738] sm:$0xff]  ;;  %v992_v0 = vld [vmem:[%s5955_s30 + $0x2740] sm:$0xff] }
  0xb0   : > { %989 = vst [vmem:[%s5960_s12 + $0x9f0] sm:$0xff] %v988_v62  ;;  %991 = vst [vmem:[%s5960_s12 + $0x9f8] sm:$0xff] %v990_v63  ;;  %v994_v1 = vld [vmem:[%s5955_s30 + $0x2748] sm:$0xff]  ;;  %v996_v2 = vld [vmem:[%s5955_s30 + $0x2750] sm:$0xff] }
  0xb1   : > { %993 = vst [vmem:[%s5960_s12 + $0xa00] sm:$0xff] %v992_v0  ;;  %v998_v3 = vld [vmem:[%s5955_s30 + $0x2758] sm:$0xff]  ;;  %995 = vst [vmem:[%s5960_s12 + $0xa08] sm:$0xff] %v994_v1  ;;  %v1000_v4 = vld [vmem:[%s5955_s30 + $0x2880] sm:$0xff] }
  0xb2   : > { %997 = vst [vmem:[%s5960_s12 + $0xa10] sm:$0xff] %v996_v2  ;;  %999 = vst [vmem:[%s5960_s12 + $0xa18] sm:$0xff] %v998_v3  ;;  %v1002_v5 = vld [vmem:[%s5955_s30 + $0x2888] sm:$0xff]  ;;  %v1004_v6 = vld [vmem:[%s5955_s30 + $0x2890] sm:$0xff] }
  0xb3   : > { %1001 = vst [vmem:[%s5960_s12 + $0xa20] sm:$0xff] %v1000_v4  ;;  %1003 = vst [vmem:[%s5960_s12 + $0xa28] sm:$0xff] %v1002_v5  ;;  %v1006_v7 = vld [vmem:[%s5955_s30 + $0x2898] sm:$0xff]  ;;  %v1008_v8 = vld [vmem:[%s5955_s30 + $0x28a0] sm:$0xff] }
  0xb4   : > { %1005 = vst [vmem:[%s5960_s12 + $0xa30] sm:$0xff] %v1004_v6  ;;  %v1010_v9 = vld [vmem:[%s5955_s30 + $0x28a8] sm:$0xff]  ;;  %1007 = vst [vmem:[%s5960_s12 + $0xa38] sm:$0xff] %v1006_v7  ;;  %v1012_v10 = vld [vmem:[%s5955_s30 + $0x28b0] sm:$0xff] }
  0xb5   : > { %1009 = vst [vmem:[%s5960_s12 + $0xa40] sm:$0xff] %v1008_v8  ;;  %1011 = vst [vmem:[%s5960_s12 + $0xa48] sm:$0xff] %v1010_v9  ;;  %v1014_v11 = vld [vmem:[%s5955_s30 + $0x28b8] sm:$0xff]  ;;  %v1016_v12 = vld [vmem:[%s5955_s30 + $0x28c0] sm:$0xff] }
  0xb6   : > { %1013 = vst [vmem:[%s5960_s12 + $0xa50] sm:$0xff] %v1012_v10  ;;  %1015 = vst [vmem:[%s5960_s12 + $0xa58] sm:$0xff] %v1014_v11  ;;  %v1018_v13 = vld [vmem:[%s5955_s30 + $0x28c8] sm:$0xff]  ;;  %v1020_v14 = vld [vmem:[%s5955_s30 + $0x28d0] sm:$0xff] }
  0xb7   : > { %1017 = vst [vmem:[%s5960_s12 + $0xa60] sm:$0xff] %v1016_v12  ;;  %v1022_v15 = vld [vmem:[%s5955_s30 + $0x28d8] sm:$0xff]  ;;  %1019 = vst [vmem:[%s5960_s12 + $0xa68] sm:$0xff] %v1018_v13  ;;  %v1024_v16 = vld [vmem:[%s5955_s30 + $0x2a00] sm:$0xff] }
  0xb8   : > { %1021 = vst [vmem:[%s5960_s12 + $0xa70] sm:$0xff] %v1020_v14  ;;  %1023 = vst [vmem:[%s5960_s12 + $0xa78] sm:$0xff] %v1022_v15  ;;  %v1026_v17 = vld [vmem:[%s5955_s30 + $0x2a08] sm:$0xff]  ;;  %v1028_v18 = vld [vmem:[%s5955_s30 + $0x2a10] sm:$0xff] }
  0xb9   : > { %1025 = vst [vmem:[%s5960_s12 + $0xa80] sm:$0xff] %v1024_v16  ;;  %1027 = vst [vmem:[%s5960_s12 + $0xa88] sm:$0xff] %v1026_v17  ;;  %v1030_v19 = vld [vmem:[%s5955_s30 + $0x2a18] sm:$0xff]  ;;  %v1032_v20 = vld [vmem:[%s5955_s30 + $0x2a20] sm:$0xff] }
  0xba   : > { %1029 = vst [vmem:[%s5960_s12 + $0xa90] sm:$0xff] %v1028_v18  ;;  %v1034_v21 = vld [vmem:[%s5955_s30 + $0x2a28] sm:$0xff]  ;;  %1031 = vst [vmem:[%s5960_s12 + $0xa98] sm:$0xff] %v1030_v19  ;;  %v1036_v22 = vld [vmem:[%s5955_s30 + $0x2a30] sm:$0xff] }
  0xbb   : > { %1033 = vst [vmem:[%s5960_s12 + $0xaa0] sm:$0xff] %v1032_v20  ;;  %1035 = vst [vmem:[%s5960_s12 + $0xaa8] sm:$0xff] %v1034_v21  ;;  %v1038_v23 = vld [vmem:[%s5955_s30 + $0x2a38] sm:$0xff]  ;;  %v1040_v24 = vld [vmem:[%s5955_s30 + $0x2a40] sm:$0xff] }
  0xbc   : > { %1037 = vst [vmem:[%s5960_s12 + $0xab0] sm:$0xff] %v1036_v22  ;;  %1039 = vst [vmem:[%s5960_s12 + $0xab8] sm:$0xff] %v1038_v23  ;;  %v1042_v25 = vld [vmem:[%s5955_s30 + $0x2a48] sm:$0xff]  ;;  %v1044_v26 = vld [vmem:[%s5955_s30 + $0x2a50] sm:$0xff] }
  0xbd   : > { %1041 = vst [vmem:[%s5960_s12 + $0xac0] sm:$0xff] %v1040_v24  ;;  %v1046_v27 = vld [vmem:[%s5955_s30 + $0x2a58] sm:$0xff]  ;;  %1043 = vst [vmem:[%s5960_s12 + $0xac8] sm:$0xff] %v1042_v25  ;;  %v1048_v28 = vld [vmem:[%s5955_s30 + $0x2b80] sm:$0xff] }
  0xbe   : > { %1045 = vst [vmem:[%s5960_s12 + $0xad0] sm:$0xff] %v1044_v26  ;;  %1047 = vst [vmem:[%s5960_s12 + $0xad8] sm:$0xff] %v1046_v27  ;;  %v1050_v29 = vld [vmem:[%s5955_s30 + $0x2b88] sm:$0xff]  ;;  %v1052_v30 = vld [vmem:[%s5955_s30 + $0x2b90] sm:$0xff] }
  0xbf   : > { %1049 = vst [vmem:[%s5960_s12 + $0xae0] sm:$0xff] %v1048_v28  ;;  %1051 = vst [vmem:[%s5960_s12 + $0xae8] sm:$0xff] %v1050_v29  ;;  %v1054_v31 = vld [vmem:[%s5955_s30 + $0x2b98] sm:$0xff]  ;;  %v1056_v32 = vld [vmem:[%s5955_s30 + $0x2ba0] sm:$0xff] }
  0xc0   : > { %1053 = vst [vmem:[%s5960_s12 + $0xaf0] sm:$0xff] %v1052_v30  ;;  %v1058_v33 = vld [vmem:[%s5955_s30 + $0x2ba8] sm:$0xff]  ;;  %1055 = vst [vmem:[%s5960_s12 + $0xaf8] sm:$0xff] %v1054_v31  ;;  %v1060_v34 = vld [vmem:[%s5955_s30 + $0x2bb0] sm:$0xff] }
  0xc1   : > { %1057 = vst [vmem:[%s5960_s12 + $0xb00] sm:$0xff] %v1056_v32  ;;  %1059 = vst [vmem:[%s5960_s12 + $0xb08] sm:$0xff] %v1058_v33  ;;  %v1062_v35 = vld [vmem:[%s5955_s30 + $0x2bb8] sm:$0xff]  ;;  %v1064_v36 = vld [vmem:[%s5955_s30 + $0x2bc0] sm:$0xff] }
  0xc2   : > { %1061 = vst [vmem:[%s5960_s12 + $0xb10] sm:$0xff] %v1060_v34  ;;  %1063 = vst [vmem:[%s5960_s12 + $0xb18] sm:$0xff] %v1062_v35  ;;  %v1066_v37 = vld [vmem:[%s5955_s30 + $0x2bc8] sm:$0xff]  ;;  %v1068_v38 = vld [vmem:[%s5955_s30 + $0x2bd0] sm:$0xff] }
  0xc3   : > { %1065 = vst [vmem:[%s5960_s12 + $0xb20] sm:$0xff] %v1064_v36  ;;  %v1070_v39 = vld [vmem:[%s5955_s30 + $0x2bd8] sm:$0xff]  ;;  %1067 = vst [vmem:[%s5960_s12 + $0xb28] sm:$0xff] %v1066_v37  ;;  %v1072_v40 = vld [vmem:[%s5955_s30 + $0x2d00] sm:$0xff] }
  0xc4   : > { %1069 = vst [vmem:[%s5960_s12 + $0xb30] sm:$0xff] %v1068_v38  ;;  %1071 = vst [vmem:[%s5960_s12 + $0xb38] sm:$0xff] %v1070_v39  ;;  %v1074_v41 = vld [vmem:[%s5955_s30 + $0x2d08] sm:$0xff]  ;;  %v1076_v42 = vld [vmem:[%s5955_s30 + $0x2d10] sm:$0xff] }
  0xc5   : > { %1073 = vst [vmem:[%s5960_s12 + $0xb40] sm:$0xff] %v1072_v40  ;;  %1075 = vst [vmem:[%s5960_s12 + $0xb48] sm:$0xff] %v1074_v41  ;;  %v1078_v43 = vld [vmem:[%s5955_s30 + $0x2d18] sm:$0xff]  ;;  %v1080_v44 = vld [vmem:[%s5955_s30 + $0x2d20] sm:$0xff] }
  0xc6   : > { %1077 = vst [vmem:[%s5960_s12 + $0xb50] sm:$0xff] %v1076_v42  ;;  %v1082_v45 = vld [vmem:[%s5955_s30 + $0x2d28] sm:$0xff]  ;;  %1079 = vst [vmem:[%s5960_s12 + $0xb58] sm:$0xff] %v1078_v43  ;;  %v1084_v46 = vld [vmem:[%s5955_s30 + $0x2d30] sm:$0xff] }
  0xc7   : > { %1081 = vst [vmem:[%s5960_s12 + $0xb60] sm:$0xff] %v1080_v44  ;;  %1083 = vst [vmem:[%s5960_s12 + $0xb68] sm:$0xff] %v1082_v45  ;;  %v1086_v47 = vld [vmem:[%s5955_s30 + $0x2d38] sm:$0xff]  ;;  %v1088_v48 = vld [vmem:[%s5955_s30 + $0x2d40] sm:$0xff] }
  0xc8   : > { %1085 = vst [vmem:[%s5960_s12 + $0xb70] sm:$0xff] %v1084_v46  ;;  %1087 = vst [vmem:[%s5960_s12 + $0xb78] sm:$0xff] %v1086_v47  ;;  %v1090_v49 = vld [vmem:[%s5955_s30 + $0x2d48] sm:$0xff]  ;;  %v1092_v50 = vld [vmem:[%s5955_s30 + $0x2d50] sm:$0xff] }
  0xc9   : > { %1089 = vst [vmem:[%s5960_s12 + $0xb80] sm:$0xff] %v1088_v48  ;;  %v1094_v51 = vld [vmem:[%s5955_s30 + $0x2d58] sm:$0xff]  ;;  %1091 = vst [vmem:[%s5960_s12 + $0xb88] sm:$0xff] %v1090_v49  ;;  %v1096_v52 = vld [vmem:[%s5955_s30 + $0x2e80] sm:$0xff] }
  0xca   : > { %1093 = vst [vmem:[%s5960_s12 + $0xb90] sm:$0xff] %v1092_v50  ;;  %1095 = vst [vmem:[%s5960_s12 + $0xb98] sm:$0xff] %v1094_v51  ;;  %v1098_v53 = vld [vmem:[%s5955_s30 + $0x2e88] sm:$0xff]  ;;  %v1100_v54 = vld [vmem:[%s5955_s30 + $0x2e90] sm:$0xff] }
  0xcb   : > { %1097 = vst [vmem:[%s5960_s12 + $0xba0] sm:$0xff] %v1096_v52  ;;  %1099 = vst [vmem:[%s5960_s12 + $0xba8] sm:$0xff] %v1098_v53  ;;  %v1102_v55 = vld [vmem:[%s5955_s30 + $0x2e98] sm:$0xff]  ;;  %v1104_v56 = vld [vmem:[%s5955_s30 + $0x2ea0] sm:$0xff] }
  0xcc   : > { %1101 = vst [vmem:[%s5960_s12 + $0xbb0] sm:$0xff] %v1100_v54  ;;  %v1106_v57 = vld [vmem:[%s5955_s30 + $0x2ea8] sm:$0xff]  ;;  %1103 = vst [vmem:[%s5960_s12 + $0xbb8] sm:$0xff] %v1102_v55  ;;  %v1108_v58 = vld [vmem:[%s5955_s30 + $0x2eb0] sm:$0xff] }
  0xcd   : > { %1105 = vst [vmem:[%s5960_s12 + $0xbc0] sm:$0xff] %v1104_v56  ;;  %1107 = vst [vmem:[%s5960_s12 + $0xbc8] sm:$0xff] %v1106_v57  ;;  %v1110_v59 = vld [vmem:[%s5955_s30 + $0x2eb8] sm:$0xff]  ;;  %v1112_v60 = vld [vmem:[%s5955_s30 + $0x2ec0] sm:$0xff] }
  0xce   : > { %1109 = vst [vmem:[%s5960_s12 + $0xbd0] sm:$0xff] %v1108_v58  ;;  %1111 = vst [vmem:[%s5960_s12 + $0xbd8] sm:$0xff] %v1110_v59  ;;  %v1114_v61 = vld [vmem:[%s5955_s30 + $0x2ec8] sm:$0xff]  ;;  %v1116_v62 = vld [vmem:[%s5955_s30 + $0x2ed0] sm:$0xff] }
  0xcf   : > { %1113 = vst [vmem:[%s5960_s12 + $0xbe0] sm:$0xff] %v1112_v60  ;;  %v1118_v63 = vld [vmem:[%s5955_s30 + $0x2ed8] sm:$0xff]  ;;  %1115 = vst [vmem:[%s5960_s12 + $0xbe8] sm:$0xff] %v1114_v61 }
  0xd0   : > { %1117 = vst [vmem:[%s5960_s12 + $0xbf0] sm:$0xff] %v1116_v62  ;;  %1119 = vst [vmem:[%s5960_s12 + $0xbf8] sm:$0xff] %v1118_v63 }
  0xd1 PF: > { %p5120_p5 = scmp.ge.s32.totalorder %s5855_s19, 1  ;;  %p1132_p6 = scmp.lt.s32.totalorder %s5855_s19, 5 }
  0xd3   : > { %p1133_p7 = pnand %p5120_p5, %p1132_p6 }
  0xd4   : > { %s1139_s13 = sand.u32 (!%p1133_p7), 1, %s5847_s17   ;;  %s1183_s25 = smul.u32 (!%p1133_p7), 24, %s5115_s20 }
  0xd5   : > { %1136 = sbr.rel (%p1133_p7) target bundleno = 1595 (0x63b), region = 83 }
  0xd6   : > { %s5628_s14 = smul.u32 (!%p1133_p7), 3072, %s1139_s13  ;;  %p1184_p8 = scmp.lt.s32.totalorder (!%p1133_p7), %s1183_s25, 95 }
  0xd8   : > { %s7013_s15 = scalar_lea.vmem (!%p1133_p7), [#allocation2], %s5628_s14 }
  0xda   : > { %v5657_v0 = vld [vmem:[%s7551_s1 + $0x38] sm:$0xff]   ;;  %v5857_v1 = vmov 0.0   ;;  %v5658_v2 = vld [vmem:[%s7551_s1 + $0x30] sm:$0xff]   ;;  %vm5858_vm0 = vmmov 0   ;;  %v5659_v3 = vld [vmem:[%s7551_s1 + $0x28] sm:$0xff]   ;;  %v5859_v26 = vmov 0  }
  0xdb   : > { %5607 = vmatprep.subr.bf16.mxu0 %v5857_v1  ;;  %5623 = vmatprep.mubr.msk.bf16.mxu0 %vm5858_vm0, %v5857_v1  ;;  %v5665_v4 = vld [vmem:[%s7553_s3 + $0x74] ss:$8 sps:$4 sm:$0xff]   ;;  %v5667_v5 = vld [vmem:[%s7553_s3 + $0x70] ss:$8 sps:$4 sm:$0xff]   ;;  %v5660_v6 = vld [vmem:[%s7551_s1 + $0x20] sm:$0xff]   ;;  %s7566_s25 = smov (!%p1184_p8, %s1183_s25), 95 }
  0xdc   : > { %5608 = vmatpush3.bf16.msra.mxu0 %v5657_v0  ;;  %v5668_v7 = vld [vmem:[%s7553_s3 + $0x64] ss:$8 sps:$4 sm:$0xff]   ;;  %1417 = vmatprep.subr.bf16.mxu1 %v5665_v4  ;;  %v5670_v8 = vld [vmem:[%s7553_s3 + $0x60] ss:$8 sps:$4 sm:$0xff]   ;;  %v5671_v9 = vld [vmem:[%s7553_s3 + $0x54] ss:$8 sps:$4 sm:$0xff]   ;;  %s7320_s26 = scalar_lea.vmem %s7560_s10, %s7566_s25 }
  0xdd   : > { %5609 = vmatprep.subr.bf16.mxu0 %v5857_v1  ;;  %1418 = vmatpush1.bf16.msra.mxu1 %v5667_v5  ;;  %v5661_v10 = vld [vmem:[%s7551_s1 + $0x18] sm:$0xff]   ;;  %v5662_v12 = vld [vmem:[%s7551_s1 + $0x10] sm:$0xff]   ;;  %v5674_v13 = vld [vmem:[%s7553_s3 + $0x44] ss:$8 sps:$4 sm:$0xff]   ;;  %s5121_s27 = sshll.u32 %s7566_s25, 1 }
  0xde   : > { %1419 = vmatprep.subr.bf16.mxu1 %v5668_v7  ;;  %v5673_v11 = vld [vmem:[%s7553_s3 + $0x50] ss:$8 sps:$4 sm:$0xff]   ;;  %v5676_v14 = vld [vmem:[%s7553_s3 + $0x40] ss:$8 sps:$4 sm:$0xff]   ;;  %v5677_v15 = vld [vmem:[%s7553_s3 + $0x34] ss:$8 sps:$4 sm:$0xff]   ;;  %1449 = vmatprep.mubr.bf16.mxu1 %v5859_v26  ;;  %s7382_s30 = scalar_lea.vmem %s7561_s11, %s5121_s27 }
  0xdf   : > { %v5663_v16 = vld [vmem:[%s7551_s1 + $0x8] sm:$0xff]   ;;  %v5679_v17 = vld [vmem:[%s7553_s3 + $0x30] ss:$8 sps:$4 sm:$0xff]   ;;  %v5664_v19 = vld [vmem:[%s7551_s1] sm:$0xff]  }
  0xe0   : > { %5610 = vmatpush3.bf16.msra.mxu0 %v5658_v2  ;;  %v5680_v18 = vld [vmem:[%s7553_s3 + $0x24] ss:$8 sps:$4 sm:$0xff]   ;;  %v5682_v20 = vld [vmem:[%s7553_s3 + $0x20] ss:$8 sps:$4 sm:$0xff]   ;;  %v5683_v21 = vld [vmem:[%s7553_s3 + $0x14] ss:$8 sps:$4 sm:$0xff]  }
  0xe1   : > { %5611 = vmatprep.subr.bf16.mxu0 %v5857_v1  ;;  %1420 = vmatpush1.bf16.msra.mxu1 %v5670_v8  ;;  %v1195_v22 = vld [vmem:[%s7550_s0] sm:$0x1]  ;;  %v5685_v23 = vld [vmem:[%s7553_s3 + $0x10] ss:$8 sps:$4 sm:$0xff]   ;;  %v5686_v24 = vld [vmem:[%s7553_s3 + $0x4] ss:$8 sps:$4 sm:$0xff]  }
  0xe2   : > { %1421 = vmatprep.subr.bf16.mxu1 %v5671_v9  ;;  %v5688_v25 = vld [vmem:[%s7553_s3] ss:$8 sps:$4 sm:$0xff]   ;;  %v5689_v27 = vld [vmem:[%s7555_s5 + $0x70] ss:$8 sps:$4 sm:$0xff]   ;;  %v5691_v28 = vld [vmem:[%s7555_s5 + $0x74] ss:$8 sps:$4 sm:$0xff]  }
  0xe3   : > { %v5694_v29 = vld [vmem:[%s7555_s5 + $0x64] ss:$8 sps:$4 sm:$0xff]   ;;  %v5692_v30 = vld [vmem:[%s7555_s5 + $0x60] ss:$8 sps:$4 sm:$0xff]   ;;  %v5697_v31 = vld [vmem:[%s7555_s5 + $0x54] ss:$8 sps:$4 sm:$0xff]  }
  0xe4   : > { %5612 = vmatpush3.bf16.msra.mxu0 %v5659_v3  ;;  %v5695_v32 = vld [vmem:[%s7555_s5 + $0x50] ss:$8 sps:$4 sm:$0xff]   ;;  %v5700_v33 = vld [vmem:[%s7555_s5 + $0x44] ss:$8 sps:$4 sm:$0xff]   ;;  %v5698_v34 = vld [vmem:[%s7555_s5 + $0x40] ss:$8 sps:$4 sm:$0xff]  }
  0xe5   : > { %5613 = vmatprep.subr.bf16.mxu0 %v5857_v1  ;;  %1422 = vmatpush1.bf16.msra.mxu1 %v5673_v11  ;;  %v5703_v35 = vld [vmem:[%s7555_s5 + $0x34] ss:$8 sps:$4 sm:$0xff]   ;;  %v5701_v36 = vld [vmem:[%s7555_s5 + $0x30] ss:$8 sps:$4 sm:$0xff]   ;;  %v5706_v37 = vld [vmem:[%s7555_s5 + $0x24] ss:$8 sps:$4 sm:$0xff]  }
  0xe6   : > { %1423 = vmatprep.subr.bf16.mxu1 %v5674_v13  ;;  %v5704_v38 = vld [vmem:[%s7555_s5 + $0x20] ss:$8 sps:$4 sm:$0xff]   ;;  %v5709_v39 = vld [vmem:[%s7555_s5 + $0x14] ss:$8 sps:$4 sm:$0xff]   ;;  %v5707_v40 = vld [vmem:[%s7555_s5 + $0x10] ss:$8 sps:$4 sm:$0xff]  }
  0xe7   : > { %v5712_v41 = vld [vmem:[%s7555_s5 + $0x4] ss:$8 sps:$4 sm:$0xff]   ;;  %v5710_v42 = vld [vmem:[%s7555_s5] ss:$8 sps:$4 sm:$0xff]   ;;  %v5715_v43 = vld [vmem:[%s7555_s5 + $0xf4] ss:$8 sps:$4 sm:$0xff]  }
  0xe8   : > { %5614 = vmatpush3.bf16.msra.mxu0 %v5660_v6  ;;  %v5713_v44 = vld [vmem:[%s7555_s5 + $0xf0] ss:$8 sps:$4 sm:$0xff]   ;;  %v5718_v45 = vld [vmem:[%s7555_s5 + $0xe4] ss:$8 sps:$4 sm:$0xff]   ;;  %v5716_v46 = vld [vmem:[%s7555_s5 + $0xe0] ss:$8 sps:$4 sm:$0xff]  }
  0xe9   : > { %5615 = vmatprep.subr.bf16.mxu0 %v5857_v1  ;;  %1424 = vmatpush1.bf16.msra.mxu1 %v5676_v14  ;;  %v5721_v47 = vld [vmem:[%s7555_s5 + $0xd4] ss:$8 sps:$4 sm:$0xff]   ;;  %v5719_v48 = vld [vmem:[%s7555_s5 + $0xd0] ss:$8 sps:$4 sm:$0xff]   ;;  %v5724_v49 = vld [vmem:[%s7555_s5 + $0xc4] ss:$8 sps:$4 sm:$0xff]  }
  0xea   : > { %1425 = vmatprep.subr.bf16.mxu1 %v5677_v15  ;;  %v5722_v50 = vld [vmem:[%s7555_s5 + $0xc0] ss:$8 sps:$4 sm:$0xff]   ;;  %v5727_v51 = vld [vmem:[%s7555_s5 + $0xb4] ss:$8 sps:$4 sm:$0xff]   ;;  %v5725_v52 = vld [vmem:[%s7555_s5 + $0xb0] ss:$8 sps:$4 sm:$0xff]  }
  0xeb   : > { %v5730_v53 = vld [vmem:[%s7555_s5 + $0xa4] ss:$8 sps:$4 sm:$0xff]   ;;  %v5728_v54 = vld [vmem:[%s7555_s5 + $0xa0] ss:$8 sps:$4 sm:$0xff]   ;;  %v5733_v63 = vld [vmem:[%s7555_s5 + $0x94] ss:$8 sps:$4 sm:$0xff]  }
  0xec   : > { %5616 = vmatpush3.bf16.msra.mxu0 %v5661_v10  ;;  %v5122_v55 = vld [vmem:[%s7552_s2] ss:$0 sm:$0xff]  ;;  %v5731_v0 = vld [vmem:[%s7555_s5 + $0x90] ss:$8 sps:$4 sm:$0xff]   ;;  %v5739_v4 = vld [vmem:[%s7557_s7 + $0x74] ss:$8 sps:$4 sm:$0xff]  }
  0xed   : > { %5617 = vmatprep.subr.bf16.mxu0 %v5857_v1  ;;  %1426 = vmatpush1.bf16.msra.mxu1 %v5679_v17  ;;  %v5734_v2 = vld [vmem:[%s7555_s5 + $0x80] ss:$8 sps:$4 sm:$0xff]   ;;  %v5737_v3 = vld [vmem:[%s7557_s7 + $0x70] ss:$8 sps:$4 sm:$0xff]   ;;  %v5742_v5 = vld [vmem:[%s7557_s7 + $0x64] ss:$8 sps:$4 sm:$0xff]  }
  0xee   : > { %1427 = vmatprep.subr.bf16.mxu1 %v5680_v18  ;;  %v5740_v6 = vld [vmem:[%s7557_s7 + $0x60] ss:$8 sps:$4 sm:$0xff]   ;;  %v5745_v7 = vld [vmem:[%s7557_s7 + $0x54] ss:$8 sps:$4 sm:$0xff]   ;;  %v5743_v8 = vld [vmem:[%s7557_s7 + $0x50] ss:$8 sps:$4 sm:$0xff]  }
  0xef   : > { %v5748_v9 = vld [vmem:[%s7557_s7 + $0x44] ss:$8 sps:$4 sm:$0xff]   ;;  %v5746_v10 = vld [vmem:[%s7557_s7 + $0x40] ss:$8 sps:$4 sm:$0xff]   ;;  %v5751_v11 = vld [vmem:[%s7557_s7 + $0x34] ss:$8 sps:$4 sm:$0xff]  }
  0xf0   : > { %5618 = vmatpush3.bf16.msra.mxu0 %v5662_v12  ;;  %v5749_v12 = vld [vmem:[%s7557_s7 + $0x30] ss:$8 sps:$4 sm:$0xff]   ;;  %v5754_v13 = vld [vmem:[%s7557_s7 + $0x24] ss:$8 sps:$4 sm:$0xff]   ;;  %v5752_v14 = vld [vmem:[%s7557_s7 + $0x20] ss:$8 sps:$4 sm:$0xff]  }
  0xf1   : > { %5619 = vmatprep.subr.bf16.mxu0 %v5857_v1  ;;  %1428 = vmatpush1.bf16.msra.mxu1 %v5682_v20  ;;  %v5757_v15 = vld [vmem:[%s7557_s7 + $0x14] ss:$8 sps:$4 sm:$0xff]   ;;  %v5760_v17 = vld [vmem:[%s7557_s7 + $0x4] ss:$8 sps:$4 sm:$0xff]   ;;  %v5758_v18 = vld [vmem:[%s7557_s7] ss:$8 sps:$4 sm:$0xff]  }
  0xf2   : > { %1429 = vmatprep.subr.bf16.mxu1 %v5683_v21  ;;  %v5761_v20 = vld [vmem:[%s7557_s7 + $0xf0] ss:$8 sps:$4 sm:$0xff]   ;;  %v5766_v21 = vld [vmem:[%s7557_s7 + $0xe4] ss:$8 sps:$4 sm:$0xff]   ;;  %v5770_v26 = vld [vmem:[%s7557_s7 + $0xc0] ss:$8 sps:$4 sm:$0xff]  }
  0xf4   : > { %5620 = vmatpush3.bf16.msra.mxu0 %v5663_v16  ;;  %v5755_v16 = vld [vmem:[%s7557_s7 + $0x10] ss:$8 sps:$4 sm:$0xff]  }
  0xf5   : > { %5621 = vmatprep.subr.bf16.mxu0 %v5857_v1  ;;  %1430 = vmatpush1.bf16.msra.mxu1 %v5685_v23  ;;  %v5736_v1 = vld [vmem:[%s7555_s5 + $0x84] ss:$8 sps:$4 sm:$0xff]   ;;  %v5769_v23 = vld [vmem:[%s7557_s7 + $0xd4] ss:$8 sps:$4 sm:$0xff]  }
  0xf6   : > { %1431 = vmatprep.subr.bf16.mxu1 %v5686_v24  ;;  %v5767_v24 = vld [vmem:[%s7557_s7 + $0xd0] ss:$8 sps:$4 sm:$0xff]  }
  0xf8   : > { %5622 = vmatpush3.bf16.msra.mxu0 %v5664_v19  ;;  %v5763_v19 = vld [vmem:[%s7557_s7 + $0xf4] ss:$8 sps:$4 sm:$0xff]  }
  0xf9   : > { %1432 = vmatpush1.bf16.msra.mxu1 %v5688_v25  ;;  %1666 = vmatprep.subr.bf16.mxu0 %v5691_v28  ;;  %v5772_v25 = vld [vmem:[%s7557_s7 + $0xc4] ss:$8 sps:$4 sm:$0xff]   ;;  %v5773_v28 = vld [vmem:[%s7557_s7 + $0xb0] ss:$8 sps:$4 sm:$0xff]  }
  0xfa   : > { %1915 = vmatprep.subr.bf16.mxu1 %v5739_v4  ;;  %v2068_v4 = vld [vmem:[%s7013_s15 + $0x360] sm:$0xff] }
  0xfb   : > { %5624 = vmatmul.mubr.bf16.vlgmr.msra.gmra.mxu0 %v1195_v22  ;;  %v5764_v22 = vld [vmem:[%s7557_s7 + $0xe0] ss:$8 sps:$4 sm:$0xff]  }
  0xfc   : > { %1667 = vmatpush1.bf16.msra.mxu0 %v5689_v27  ;;  %v5775_v27 = vld [vmem:[%s7557_s7 + $0xb4] ss:$8 sps:$4 sm:$0xff]  }
  0xfd   : > { %1668 = vmatprep.subr.bf16.mxu0 %v5694_v29  ;;  %v5778_v29 = vld [vmem:[%s7557_s7 + $0xa4] ss:$8 sps:$4 sm:$0xff]  }
 0x100   : > { %1669 = vmatpush1.bf16.msra.mxu0 %v5692_v30  ;;  %v5776_v30 = vld [vmem:[%s7557_s7 + $0xa0] ss:$8 sps:$4 sm:$0xff]  }
 0x101   : > { %1670 = vmatprep.subr.bf16.mxu0 %v5697_v31  ;;  %v1327_v31 = vlaneseq }
 0x104   : > { %1671 = vmatpush1.bf16.msra.mxu0 %v5695_v32  ;;  %v6987_v32 = vshrl.u32 %v1327_v31, 7  ;;  %v2272_v31 = vld [vmem:[%s7013_s15 + $0x9c0] sm:$0xff] }
 0x105   : > { %1672 = vmatprep.subr.bf16.mxu0 %v5700_v33 }
 0x106   : > { %v6990_v33 = vsub.s32 0, %v6987_v32 }
 0x108   : > { %1673 = vmatpush1.bf16.msra.mxu0 %v5698_v34  ;;  %v1325_v34 = vld [vmem:[%s7554_s4] sm:$0x3] }
 0x109   : > { %1674 = vmatprep.subr.bf16.mxu0 %v5703_v35  ;;  %v6996_v35 = vsub.s32 1, %v6987_v32 }
 0x10c   : > { %1675 = vmatpush1.bf16.msra.mxu0 %v5701_v36  ;;  %v1330_v36 = vrot.slane %v1325_v34, %v6990_v33 }
 0x10d   : > { %1676 = vmatprep.subr.bf16.mxu0 %v5706_v37  ;;  %v1334_v37 = vrot.slane %v1325_v34, %v6996_v35  ;;  %v2284_v34 = vld [vmem:[%s7013_s15 + $0xa20] sm:$0xff] }
 0x110   : > { %1677 = vmatpush1.bf16.msra.mxu0 %v5704_v38 }
 0x111   : > { %1678 = vmatprep.subr.bf16.mxu0 %v5709_v39 }
 0x114   : > { %1679 = vmatpush1.bf16.msra.mxu0 %v5707_v40 }
 0x115   : > { %1680 = vmatprep.subr.bf16.mxu0 %v5712_v41 }
 0x118   : > { %1681 = vmatpush1.bf16.msra.mxu0 %v5710_v42 }
 0x119   : > { %1682 = vmatprep.subr.bf16.mxu0 %v5715_v43 }
 0x11c   : > { %1683 = vmatpush2.bf16.msra.mxu0 %v5713_v44 }
 0x11d   : > { %1684 = vmatprep.subr.bf16.mxu0 %v5718_v45 }
 0x120   : > { %1685 = vmatpush2.bf16.msra.mxu0 %v5716_v46 }
 0x121   : > { %1686 = vmatprep.subr.bf16.mxu0 %v5721_v47 }
 0x124   : > { %1687 = vmatpush2.bf16.msra.mxu0 %v5719_v48  ;;  %v5781_v48 = vld [vmem:[%s7557_s7 + $0x94] ss:$8 sps:$4 sm:$0xff]  }
 0x125   : > { %1688 = vmatprep.subr.bf16.mxu0 %v5724_v49  ;;  %v5779_v49 = vld [vmem:[%s7557_s7 + $0x90] ss:$8 sps:$4 sm:$0xff]  }
 0x128   : > { %1689 = vmatpush2.bf16.msra.mxu0 %v5722_v50  ;;  %v5784_v50 = vld [vmem:[%s7557_s7 + $0x84] ss:$8 sps:$4 sm:$0xff]  }
 0x129   : > { %1690 = vmatprep.subr.bf16.mxu0 %v5727_v51  ;;  %v5782_v51 = vld [vmem:[%s7557_s7 + $0x80] ss:$8 sps:$4 sm:$0xff]  }
 0x12c   : > { %1691 = vmatpush2.bf16.msra.mxu0 %v5725_v52  ;;  %v2128_v52 = vld [vmem:[%s7013_s15 + $0x540] sm:$0xff] }
 0x12d   : > { %1692 = vmatprep.subr.bf16.mxu0 %v5730_v53  ;;  %v2140_v53 = vld [vmem:[%s7013_s15 + $0x5a0] sm:$0xff] }
 0x130   : > { %1693 = vmatpush2.bf16.msra.mxu0 %v5728_v54  ;;  %v7018_v54 = vld [vmem:[%s7013_s15 + $0x548] sm:$0xff] }
 0x131   : > { %1694 = vmatprep.subr.bf16.mxu0 %v5733_v63  ;;  %v2080_v63 = vld [vmem:[%s7013_s15 + $0x3c0] sm:$0xff] }
 0x134   : > { %1695 = vmatpush2.bf16.msra.mxu0 %v5731_v0  ;;  %v2092_v0 = vld [vmem:[%s7013_s15 + $0x420] sm:$0xff] }
 0x135   : > { %1696 = vmatprep.subr.bf16.mxu0 %v5736_v1 }
 0x138   : > { %1697 = vmatpush2.bf16.msra.mxu0 %v5734_v2  ;;  %v5332_v2 = vcombine.high %v2080_v63, %v2092_v0 }
 0x1bb   : > { %v1301_v56 = vpop.f32.mrf.mxu0 }
 0x1bc   : > { %v1302_v57 = vadd.f32 %v5122_v55, %v1301_v56  ;;  %v5379_v55 = vcombine.low %v2128_v52, %v2140_v53  ;;  %v5380_v56 = vcombine.high %v2128_v52, %v2140_v53 }
 0x1bd   : > { %v5625_v58 = vpop.f32.mrf.mxu0 }
 0x1be   : > { %v1307_v59 = vmax.f32 %v1302_v57, 0.0  ;;  %v7021_v57 = vld [vmem:[%s7013_s15 + $0x5a8] sm:$0xff]  ;;  %v2104_v58 = vld [vmem:[%s7013_s15 + $0x480] sm:$0xff]  ;;  %4390 = vmatprep.subr.bf16.mxu0 %v5380_v56 }
 0x1bf   : > { %v1304_v60 = vpop.f32.mrf.mxu0 }
 0x1c0   : > { %v1308_v61 = vpack.c.bf16 %v1307_v59, %v1307_v59  ;;  %v2116_v59 = vld [vmem:[%s7013_s15 + $0x4e0] sm:$0xff]  ;;  %v5381_v60 = vcombine.low %v7018_v54, %v7021_v57 }
 0x1c1   : > { %v5626_v62 = vpop.f32.mrf.mxu0  ;;  %v5355_v1 = vcombine.low %v2104_v58, %v2116_v59 }
 0x1c2   : > { %1450 = vmatmul.mubr.bf16.vlgmr.msra.gmra.mxu1 %v1308_v61  ;;  %v5382_v61 = vcombine.high %v7018_v54, %v7021_v57  ;;  %v5356_v62 = vcombine.high %v2104_v58, %v2116_v59  ;;  %v2009_v57 = vld [vmem:[%s7013_s15 + $0x188] sm:$0xff] }
 0x1c3   : > { %1916 = vmatpush1.bf16.msra.mxu1 %v5737_v3  ;;  %v2056_v3 = vld [vmem:[%s7013_s15 + $0x300] sm:$0xff] }
 0x1c4   : > { %1917 = vmatprep.subr.bf16.mxu1 %v5742_v5  ;;  %v5331_v5 = vcombine.low %v2080_v63, %v2092_v0  ;;  %v2105_v0 = vld [vmem:[%s7013_s15 + $0x488] sm:$0xff] }
 0x1c7   : > { %1918 = vmatpush1.bf16.msra.mxu1 %v5740_v6  ;;  %v5308_v6 = vcombine.high %v2056_v3, %v2068_v4 }
 0x1c8   : > { %1919 = vmatprep.subr.bf16.mxu1 %v5745_v7  ;;  %v2032_v7 = vld [vmem:[%s7013_s15 + $0x240] sm:$0xff] }
 0x1cb   : > { %1920 = vmatpush1.bf16.msra.mxu1 %v5743_v8  ;;  %v2044_v8 = vld [vmem:[%s7013_s15 + $0x2a0] sm:$0xff] }
 0x1cc   : > { %1921 = vmatprep.subr.bf16.mxu1 %v5748_v9  ;;  %v5307_v9 = vcombine.low %v2056_v3, %v2068_v4 }
 0x1cf   : > { %1922 = vmatpush1.bf16.msra.mxu1 %v5746_v10  ;;  %v5284_v10 = vcombine.high %v2032_v7, %v2044_v8 }
 0x1d0   : > { %1923 = vmatprep.subr.bf16.mxu1 %v5751_v11  ;;  %v2008_v11 = vld [vmem:[%s7013_s15 + $0x180] sm:$0xff] }
 0x1d3   : > { %1924 = vmatpush1.bf16.msra.mxu1 %v5749_v12  ;;  %v2020_v12 = vld [vmem:[%s7013_s15 + $0x1e0] sm:$0xff] }
 0x1d4   : > { %1925 = vmatprep.subr.bf16.mxu1 %v5754_v13  ;;  %v5283_v13 = vcombine.low %v2032_v7, %v2044_v8  ;;  %v2093_v7 = vld [vmem:[%s7013_s15 + $0x428] sm:$0xff] }
 0x1d7   : > { %1926 = vmatpush1.bf16.msra.mxu1 %v5752_v14  ;;  %v5260_v14 = vcombine.high %v2008_v11, %v2020_v12 }
 0x1d8   : > { %1927 = vmatprep.subr.bf16.mxu1 %v5757_v15  ;;  %v1984_v15 = vld [vmem:[%s7013_s15 + $0xc0] sm:$0xff] }
 0x1db   : > { %1928 = vmatpush1.bf16.msra.mxu1 %v5755_v16  ;;  %v1996_v16 = vld [vmem:[%s7013_s15 + $0x120] sm:$0xff] }
 0x1dc   : > { %1929 = vmatprep.subr.bf16.mxu1 %v5760_v17  ;;  %v5259_v17 = vcombine.low %v2008_v11, %v2020_v12  ;;  %v2069_v11 = vld [vmem:[%s7013_s15 + $0x368] sm:$0xff] }
 0x1df   : > { %1930 = vmatpush1.bf16.msra.mxu1 %v5758_v18  ;;  %v5236_v18 = vcombine.high %v1984_v15, %v1996_v16 }
 0x1e0   : > { %1931 = vmatprep.subr.bf16.mxu1 %v5763_v19  ;;  %v1960_v19 = vld [vmem:[%s7013_s15] sm:$0xff] }
 0x1e3   : > { %1932 = vmatpush2.bf16.msra.mxu1 %v5761_v20  ;;  %v1972_v20 = vld [vmem:[%s7013_s15 + $0x60] sm:$0xff] }
 0x1e4   : > { %1933 = vmatprep.subr.bf16.mxu1 %v5766_v21  ;;  %v5235_v21 = vcombine.low %v1984_v15, %v1996_v16  ;;  %v2045_v15 = vld [vmem:[%s7013_s15 + $0x2a8] sm:$0xff] }
 0x1e7   : > { %1934 = vmatpush2.bf16.msra.mxu1 %v5764_v22  ;;  %v5212_v22 = vcombine.high %v1960_v19, %v1972_v20 }
 0x1e8   : > { %1935 = vmatprep.subr.bf16.mxu1 %v5769_v23  ;;  %v2320_v23 = vld [vmem:[%s7013_s15 + $0xb40] sm:$0xff] }
 0x1eb   : > { %1936 = vmatpush2.bf16.msra.mxu1 %v5767_v24  ;;  %v2332_v24 = vld [vmem:[%s7013_s15 + $0xba0] sm:$0xff] }
 0x1ec   : > { %1937 = vmatprep.subr.bf16.mxu1 %v5772_v25  ;;  %v5211_v25 = vcombine.low %v1960_v19, %v1972_v20  ;;  %v1985_v19 = vld [vmem:[%s7013_s15 + $0xc8] sm:$0xff] }
 0x1ed   : > { %v1997_v20 = vld [vmem:[%s7013_s15 + $0x128] sm:$0xff] }
 0x1ef   : > { %1938 = vmatpush2.bf16.msra.mxu1 %v5770_v26  ;;  %v5572_v26 = vcombine.high %v2320_v23, %v2332_v24 }
 0x1f0   : > { %1939 = vmatprep.subr.bf16.mxu1 %v5775_v27  ;;  %v2296_v27 = vld [vmem:[%s7013_s15 + $0xa80] sm:$0xff] }
 0x1f3   : > { %1940 = vmatpush2.bf16.msra.mxu1 %v5773_v28  ;;  %v2308_v28 = vld [vmem:[%s7013_s15 + $0xae0] sm:$0xff] }
 0x1f4   : > { %1941 = vmatprep.subr.bf16.mxu1 %v5778_v29  ;;  %v5571_v29 = vcombine.low %v2320_v23, %v2332_v24  ;;  %v1961_v23 = vld [vmem:[%s7013_s15 + $0x8] sm:$0xff] }
 0x1f5   : > { %v1973_v24 = vld [vmem:[%s7013_s15 + $0x68] sm:$0xff] }
 0x1f7   : > { %1942 = vmatpush2.bf16.msra.mxu1 %v5776_v30  ;;  %v5548_v30 = vcombine.high %v2296_v27, %v2308_v28 }
 0x1f8   : > { %1943 = vmatprep.subr.bf16.mxu1 %v5781_v48 }
 0x1fb   : > { %1944 = vmatpush2.bf16.msra.mxu1 %v5779_v49 }
 0x1fc   : > { %1945 = vmatprep.subr.bf16.mxu1 %v5784_v50 }
 0x1ff   : > { %1946 = vmatpush2.bf16.msra.mxu1 %v5782_v51  ;;  %v1494_v51 = vld [vmem:[%s7556_s6] sm:$0x3] }
 0x200   : > { %4431 = vmatprep.subr.bf16.mxu1 %v5382_v61  ;;  %v1499_v52 = vrot.slane %v1494_v51, %v6990_v33  ;;  %v1503_v53 = vrot.slane %v1494_v51, %v6996_v35  ;;  %v2213_v51 = vld [vmem:[%s7013_s15 + $0x7e8] sm:$0xff] }
 0x282   : > { %v1451_v38 = vpop.f32.mrf.mxu1 }
 0x283   : > { %v1452_v39 = vadd.f32 %v1451_v38, %v1330_v36  ;;  %v5547_v36 = vcombine.low %v2296_v27, %v2308_v28  ;;  %v2248_v38 = vld [vmem:[%s7013_s15 + $0x900] sm:$0xff]  ;;  %v2321_v27 = vld [vmem:[%s7013_s15 + $0xb48] sm:$0xff] }
 0x284   : > { %v1453_v40 = vpop.f32.mrf.mxu1  ;;  %v2333_v28 = vld [vmem:[%s7013_s15 + $0xba8] sm:$0xff] }
 0x285   : > { %v1454_v41 = vadd.f32 %v1453_v40, %v1334_v37  ;;  %v1458_v42 = vmax.f32 %v1452_v39, 0.0  ;;  %v5524_v37 = vcombine.high %v2272_v31, %v2284_v34  ;;  %v2260_v39 = vld [vmem:[%s7013_s15 + $0x960] sm:$0xff]  ;;  %v5523_v40 = vcombine.low %v2272_v31, %v2284_v34  ;;  %v2297_v31 = vld [vmem:[%s7013_s15 + $0xa88] sm:$0xff] }
 0x286   : > { %v1455_v43 = vpop.f32.mrf.mxu1  ;;  %v2309_v34 = vld [vmem:[%s7013_s15 + $0xae8] sm:$0xff] }
 0x287   : > { %v1459_v44 = vmax.f32 %v1454_v41, 0.0  ;;  %v1460_v47 = vpack.c.bf16 %v1458_v42, %v1458_v42  ;;  %v5500_v41 = vcombine.high %v2248_v38, %v2260_v39  ;;  %v2224_v42 = vld [vmem:[%s7013_s15 + $0x840] sm:$0xff] }
 0x288   : > { %v1456_v45 = vpop.f32.mrf.mxu1  ;;  %v2236_v43 = vld [vmem:[%s7013_s15 + $0x8a0] sm:$0xff] }
 0x289   : > { %v1461_v46 = vpack.c.bf16 %v1459_v44, %v1459_v44  ;;  %v5499_v44 = vcombine.low %v2248_v38, %v2260_v39  ;;  %v5476_v45 = vcombine.high %v2224_v42, %v2236_v43  ;;  %v5475_v48 = vcombine.low %v2224_v42, %v2236_v43  ;;  %v2273_v38 = vld [vmem:[%s7013_s15 + $0x9c8] sm:$0xff] }
 0x28a   : > { %v2285_v39 = vld [vmem:[%s7013_s15 + $0xa28] sm:$0xff] }
 0x28b   : > { %1698 = vmatprep.mubr.bf16.mxu0 %v1461_v46  ;;  %v2200_v46 = vld [vmem:[%s7013_s15 + $0x780] sm:$0xff]  ;;  %v2249_v42 = vld [vmem:[%s7013_s15 + $0x908] sm:$0xff] }
 0x28c   : > { %1699 = vmatmul.mubr.bf16.vlgmr.msra.gmra.mxu0 %v1460_v47  ;;  %v2212_v47 = vld [vmem:[%s7013_s15 + $0x7e0] sm:$0xff]  ;;  %v2261_v43 = vld [vmem:[%s7013_s15 + $0x968] sm:$0xff] }
 0x28d   : > { %4391 = vmatpush1.bf16.msra.mxu0 %v5379_v55  ;;  %v5452_v49 = vcombine.high %v2200_v46, %v2212_v47  ;;  %v5451_v50 = vcombine.low %v2200_v46, %v2212_v47  ;;  %v2225_v46 = vld [vmem:[%s7013_s15 + $0x848] sm:$0xff] }
 0x28e   : > { %4392 = vmatprep.subr.bf16.mxu0 %v5356_v62  ;;  %v2237_v47 = vld [vmem:[%s7013_s15 + $0x8a8] sm:$0xff] }
 0x291   : > { %4393 = vmatpush1.bf16.msra.mxu0 %v5355_v1  ;;  %v2117_v1 = vld [vmem:[%s7013_s15 + $0x4e8] sm:$0xff] }
 0x292   : > { %4394 = vmatprep.subr.bf16.mxu0 %v5332_v2  ;;  %v5357_v8 = vcombine.low %v2105_v0, %v2117_v1 }
 0x295   : > { %4395 = vmatpush1.bf16.msra.mxu0 %v5331_v5  ;;  %v5358_v5 = vcombine.high %v2105_v0, %v2117_v1 }
 0x296   : > { %4396 = vmatprep.subr.bf16.mxu0 %v5308_v6  ;;  %v2081_v6 = vld [vmem:[%s7013_s15 + $0x3c8] sm:$0xff] }
 0x297   : > { %v5333_v12 = vcombine.low %v2081_v6, %v2093_v7 }
 0x299   : > { %4397 = vmatpush1.bf16.msra.mxu0 %v5307_v9  ;;  %v5334_v9 = vcombine.high %v2081_v6, %v2093_v7  ;;  %v2165_v6 = vld [vmem:[%s7013_s15 + $0x668] sm:$0xff] }
 0x29a   : > { %4398 = vmatprep.subr.bf16.mxu0 %v5284_v10  ;;  %v2057_v10 = vld [vmem:[%s7013_s15 + $0x308] sm:$0xff] }
 0x29b   : > { %v5309_v16 = vcombine.low %v2057_v10, %v2069_v11 }
 0x29d   : > { %4399 = vmatpush1.bf16.msra.mxu0 %v5283_v13  ;;  %v5310_v13 = vcombine.high %v2057_v10, %v2069_v11  ;;  %v2130_v10 = vld [vmem:[%s7013_s15 + $0x550] sm:$0xff] }
 0x29e   : > { %4400 = vmatprep.subr.bf16.mxu0 %v5260_v14  ;;  %v2033_v14 = vld [vmem:[%s7013_s15 + $0x248] sm:$0xff]  ;;  %v2142_v11 = vld [vmem:[%s7013_s15 + $0x5b0] sm:$0xff] }
 0x29f   : > { %v5286_v54 = vcombine.high %v2033_v14, %v2045_v15 }
 0x2a1   : > { %4401 = vmatpush1.bf16.msra.mxu0 %v5259_v17  ;;  %v5285_v17 = vcombine.low %v2033_v14, %v2045_v15  ;;  %v2143_v14 = vld [vmem:[%s7013_s15 + $0x5b8] sm:$0xff]  ;;  %v5383_v15 = vcombine.low %v2130_v10, %v2142_v11 }
 0x2a2   : > { %4402 = vmatprep.subr.bf16.mxu0 %v5236_v18 }
 0x2a5   : > { %4403 = vmatpush1.bf16.msra.mxu0 %v5235_v21 }
 0x2a6   : > { %4404 = vmatprep.subr.bf16.mxu0 %v5212_v22  ;;  %v5238_v22 = vcombine.high %v1985_v19, %v1997_v20 }
 0x2a9   : > { %4405 = vmatpush1.bf16.msra.mxu0 %v5211_v25  ;;  %v5237_v25 = vcombine.low %v1985_v19, %v1997_v20 }
 0x2aa   : > { %4406 = vmatprep.subr.bf16.mxu0 %v5572_v26  ;;  %v5214_v26 = vcombine.high %v1961_v23, %v1973_v24 }
 0x2ad   : > { %4407 = vmatpush2.bf16.msra.mxu0 %v5571_v29  ;;  %v5213_v29 = vcombine.low %v1961_v23, %v1973_v24 }
 0x2ae   : > { %4408 = vmatprep.subr.bf16.mxu0 %v5548_v30  ;;  %v5574_v30 = vcombine.high %v2321_v27, %v2333_v28 }
 0x2b1   : > { %4409 = vmatpush2.bf16.msra.mxu0 %v5547_v36  ;;  %v5573_v36 = vcombine.low %v2321_v27, %v2333_v28  ;;  %v2118_v27 = vld [vmem:[%s7013_s15 + $0x4f0] sm:$0xff]  ;;  %v2107_v28 = vld [vmem:[%s7013_s15 + $0x498] sm:$0xff] }
 0x2b2   : > { %4410 = vmatprep.subr.bf16.mxu0 %v5524_v37  ;;  %v5550_v37 = vcombine.high %v2297_v31, %v2309_v34 }
 0x2b5   : > { %4411 = vmatpush2.bf16.msra.mxu0 %v5523_v40  ;;  %v5549_v40 = vcombine.low %v2297_v31, %v2309_v34  ;;  %v2082_v34 = vld [vmem:[%s7013_s15 + $0x3d0] sm:$0xff] }
 0x2b6   : > { %4412 = vmatprep.subr.bf16.mxu0 %v5500_v41  ;;  %v5526_v41 = vcombine.high %v2273_v38, %v2285_v39 }
 0x2b9   : > { %4413 = vmatpush2.bf16.msra.mxu0 %v5499_v44  ;;  %v5525_v44 = vcombine.low %v2273_v38, %v2285_v39  ;;  %v2094_v38 = vld [vmem:[%s7013_s15 + $0x430] sm:$0xff]  ;;  %v2083_v39 = vld [vmem:[%s7013_s15 + $0x3d8] sm:$0xff] }
 0x2ba   : > { %4414 = vmatprep.subr.bf16.mxu0 %v5476_v45  ;;  %v5502_v45 = vcombine.high %v2249_v42, %v2261_v43 }
 0x2bd   : > { %4415 = vmatpush2.bf16.msra.mxu0 %v5475_v48  ;;  %v5501_v48 = vcombine.low %v2249_v42, %v2261_v43  ;;  %v5336_v43 = vcombine.high %v2082_v34, %v2094_v38 }
 0x2be   : > { %4416 = vmatprep.subr.bf16.mxu0 %v5452_v49  ;;  %v5478_v49 = vcombine.high %v2225_v46, %v2237_v47 }
 0x2c1   : > { %4417 = vmatpush2.bf16.msra.mxu0 %v5451_v50  ;;  %v2201_v50 = vld [vmem:[%s7013_s15 + $0x788] sm:$0xff] }
 0x34c   : > { %v1700_v55 = vpop.f32.mrf.mxu0 }
 0x34d   : > { %v1701_v56 = vadd.f32 %v1700_v55, %v1499_v52  ;;  %v5477_v52 = vcombine.low %v2225_v46, %v2237_v47  ;;  %v5453_v55 = vcombine.low %v2201_v50, %v2213_v51  ;;  %v2070_v46 = vld [vmem:[%s7013_s15 + $0x370] sm:$0xff]  ;;  %v2059_v47 = vld [vmem:[%s7013_s15 + $0x318] sm:$0xff] }
 0x34e   : > { %v1702_v58 = vpop.f32.mrf.mxu0 }
 0x34f   : > { %v1703_v59 = vadd.f32 %v1702_v58, %v1503_v53  ;;  %v1707_v61 = vmax.f32 %v1701_v56, 0.0  ;;  %v5454_v53 = vcombine.high %v2201_v50, %v2213_v51  ;;  %v2176_v56 = vld [vmem:[%s7013_s15 + $0x6c0] sm:$0xff] }
 0x350   : > { %v1704_v62 = vpop.f32.mrf.mxu0  ;;  %v2188_v58 = vld [vmem:[%s7013_s15 + $0x720] sm:$0xff] }
 0x351   : > { %v1708_v63 = vmax.f32 %v1703_v59, 0.0  ;;  %v1709_v4 = vpack.c.bf16 %v1707_v61, %v1707_v61  ;;  %v2177_v59 = vld [vmem:[%s7013_s15 + $0x6c8] sm:$0xff]  ;;  %v5428_v61 = vcombine.high %v2176_v56, %v2188_v58 }
 0x352   : > { %v1705_v2 = vpop.f32.mrf.mxu0  ;;  %v2189_v62 = vld [vmem:[%s7013_s15 + $0x728] sm:$0xff] }
 0x353   : > { %v1710_v3 = vpack.c.bf16 %v1708_v63, %v1708_v63  ;;  %v5427_v63 = vcombine.low %v2176_v56, %v2188_v58  ;;  %v5429_v0 = vcombine.low %v2177_v59, %v2189_v62  ;;  %v5430_v1 = vcombine.high %v2177_v59, %v2189_v62  ;;  %4418 = vmatprep.subr.bf16.mxu0 %v5428_v61  ;;  %v2152_v2 = vld [vmem:[%s7013_s15 + $0x600] sm:$0xff]  ;;  %v2035_v56 = vld [vmem:[%s7013_s15 + $0x258] sm:$0xff] }
 0x354   : > { %v2047_v58 = vld [vmem:[%s7013_s15 + $0x2b8] sm:$0xff] }
 0x355   : > { %1947 = vmatprep.mubr.bf16.mxu1 %v1710_v3  ;;  %4419 = vmatpush2.bf16.msra.mxu0 %v5427_v63  ;;  %v2164_v3 = vld [vmem:[%s7013_s15 + $0x660] sm:$0xff]  ;;  %v5290_v63 = vcombine.high %v2035_v56, %v2047_v58 }
 0x356   : > { %1948 = vmatmul.mubr.bf16.vlgmr.msra.gmra.mxu1 %v1709_v4  ;;  %v2153_v4 = vld [vmem:[%s7013_s15 + $0x608] sm:$0xff]  ;;  %v5403_v7 = vcombine.low %v2152_v2, %v2164_v3 }
 0x357   : > { %4432 = vmatpush1.bf16.msra.mxu1 %v5381_v60  ;;  %v2021_v60 = vld [vmem:[%s7013_s15 + $0x1e8] sm:$0xff] }
 0x358   : > { %4433 = vmatprep.subr.bf16.mxu1 %v5358_v5  ;;  %v5262_v18 = vcombine.high %v2009_v57, %v2021_v60  ;;  %v5261_v21 = vcombine.low %v2009_v57, %v2021_v60  ;;  %v5404_v5 = vcombine.high %v2152_v2, %v2164_v3  ;;  %v1743_v57 = vld [vmem:[%s7558_s8] sm:$0x3]  ;;  %v2011_v2 = vld [vmem:[%s7013_s15 + $0x198] sm:$0xff] }
 0x359   : > { %v1748_v60 = vrot.slane %v1743_v57, %v6990_v33  ;;  %v2023_v3 = vld [vmem:[%s7013_s15 + $0x1f8] sm:$0xff] }
 0x35a   : > { %4420 = vmatprep.subr.bf16.mxu0 %v5404_v5  ;;  %v5289_v5 = vcombine.low %v2035_v56, %v2047_v58 }
 0x35b   : > { %4434 = vmatpush1.bf16.msra.mxu1 %v5357_v8  ;;  %v5405_v8 = vcombine.low %v2153_v4, %v2165_v6  ;;  %4421 = vmatpush2.bf16.msra.mxu0 %v5403_v7  ;;  %v5266_v7 = vcombine.high %v2011_v2, %v2023_v3 }
 0x35c   : > { %4435 = vmatprep.subr.bf16.mxu1 %v5334_v9  ;;  %v5406_v9 = vcombine.high %v2153_v4, %v2165_v6 }
 0x35f   : > { %4436 = vmatpush1.bf16.msra.mxu1 %v5333_v12  ;;  %v2131_v12 = vld [vmem:[%s7013_s15 + $0x558] sm:$0xff] }
 0x360   : > { %4437 = vmatprep.subr.bf16.mxu1 %v5310_v13  ;;  %v5384_v13 = vcombine.high %v2130_v10, %v2142_v11  ;;  %v1987_v10 = vld [vmem:[%s7013_s15 + $0xd8] sm:$0xff] }
 0x361   : > { %v1999_v11 = vld [vmem:[%s7013_s15 + $0x138] sm:$0xff] }
 0x362   : > { %4472 = vmatprep.subr.bf16.mxu0 %v5384_v13  ;;  %v5265_v13 = vcombine.low %v2011_v2, %v2023_v3 }
 0x363   : > { %4438 = vmatpush1.bf16.msra.mxu1 %v5309_v16  ;;  %v5385_v16 = vcombine.low %v2131_v12, %v2143_v14 }
 0x364   : > { %4439 = vmatprep.subr.bf16.mxu1 %v5286_v54  ;;  %v5386_v54 = vcombine.high %v2131_v12, %v2143_v14 }
 0x367   : > { %4440 = vmatpush1.bf16.msra.mxu1 %v5285_v17  ;;  %v1752_v17 = vrot.slane %v1743_v57, %v6996_v35  ;;  %v1963_v57 = vld [vmem:[%s7013_s15 + $0x18] sm:$0xff] }
 0x368   : > { %4441 = vmatprep.subr.bf16.mxu1 %v5262_v18 }
 0x36b   : > { %4442 = vmatpush1.bf16.msra.mxu1 %v5261_v21 }
 0x36c   : > { %4443 = vmatprep.subr.bf16.mxu1 %v5238_v22 }
 0x36f   : > { %4444 = vmatpush1.bf16.msra.mxu1 %v5237_v25  ;;  %v2106_v25 = vld [vmem:[%s7013_s15 + $0x490] sm:$0xff] }
 0x370   : > { %4445 = vmatprep.subr.bf16.mxu1 %v5214_v26 }
 0x373   : > { %4446 = vmatpush1.bf16.msra.mxu1 %v5213_v29  ;;  %v2119_v29 = vld [vmem:[%s7013_s15 + $0x4f8] sm:$0xff] }
 0x374   : > { %4447 = vmatprep.subr.bf16.mxu1 %v5574_v30  ;;  %v5361_v42 = vcombine.low %v2107_v28, %v2119_v29 }
 0x377   : > { %4448 = vmatpush2.bf16.msra.mxu1 %v5573_v36  ;;  %v5360_v36 = vcombine.high %v2106_v25, %v2118_v27 }
 0x378   : > { %4449 = vmatprep.subr.bf16.mxu1 %v5550_v37  ;;  %v5362_v37 = vcombine.high %v2107_v28, %v2119_v29  ;;  %v2298_v29 = vld [vmem:[%s7013_s15 + $0xa90] sm:$0xff] }
 0x37b   : > { %4450 = vmatpush2.bf16.msra.mxu1 %v5549_v40  ;;  %v2095_v40 = vld [vmem:[%s7013_s15 + $0x438] sm:$0xff] }
 0x37c   : > { %4451 = vmatprep.subr.bf16.mxu1 %v5526_v41  ;;  %v5359_v41 = vcombine.low %v2106_v25, %v2118_v27  ;;  %v5337_v50 = vcombine.low %v2083_v39, %v2095_v40 }
 0x37f   : > { %4452 = vmatpush2.bf16.msra.mxu1 %v5525_v44  ;;  %v5338_v44 = vcombine.high %v2083_v39, %v2095_v40 }
 0x380   : > { %4453 = vmatprep.subr.bf16.mxu1 %v5502_v45  ;;  %v2058_v45 = vld [vmem:[%s7013_s15 + $0x310] sm:$0xff] }
 0x381   : > { %v5312_v51 = vcombine.high %v2058_v45, %v2070_v46  ;;  %v5311_v59 = vcombine.low %v2058_v45, %v2070_v46  ;;  %v2287_v45 = vld [vmem:[%s7013_s15 + $0xa38] sm:$0xff] }
 0x383   : > { %4454 = vmatpush2.bf16.msra.mxu1 %v5501_v48  ;;  %v2071_v48 = vld [vmem:[%s7013_s15 + $0x378] sm:$0xff] }
 0x384   : > { %4455 = vmatprep.subr.bf16.mxu1 %v5478_v49  ;;  %v5335_v49 = vcombine.low %v2082_v34, %v2094_v38  ;;  %v5313_v61 = vcombine.low %v2059_v47, %v2071_v48  ;;  %v2310_v34 = vld [vmem:[%s7013_s15 + $0xaf0] sm:$0xff] }
 0x385   : > { %v5552_v40 = vcombine.high %v2298_v29, %v2310_v34  ;;  %v5551_v46 = vcombine.low %v2298_v29, %v2310_v34  ;;  %v2145_v29 = vld [vmem:[%s7013_s15 + $0x5c8] sm:$0xff] }
 0x387   : > { %4456 = vmatpush2.bf16.msra.mxu1 %v5477_v52  ;;  %v5314_v52 = vcombine.high %v2059_v47, %v2071_v48 }
 0x388   : > { %4457 = vmatprep.subr.bf16.mxu1 %v5454_v53  ;;  %v2034_v53 = vld [vmem:[%s7013_s15 + $0x250] sm:$0xff] }
 0x38b   : > { %4458 = vmatpush2.bf16.msra.mxu1 %v5453_v55  ;;  %v2046_v55 = vld [vmem:[%s7013_s15 + $0x2b0] sm:$0xff] }
 0x38c   : > { %4459 = vmatprep.subr.bf16.mxu1 %v5430_v1  ;;  %v5288_v62 = vcombine.high %v2034_v53, %v2046_v55  ;;  %v2022_v1 = vld [vmem:[%s7013_s15 + $0x1f0] sm:$0xff]  ;;  %v5287_v4 = vcombine.low %v2034_v53, %v2046_v55  ;;  %v2263_v53 = vld [vmem:[%s7013_s15 + $0x978] sm:$0xff] }
 0x38f   : > { %4460 = vmatpush2.bf16.msra.mxu1 %v5429_v0  ;;  %v2010_v0 = vld [vmem:[%s7013_s15 + $0x190] sm:$0xff] }
 0x390   : > { %4461 = vmatprep.subr.bf16.mxu1 %v5406_v9  ;;  %v5264_v6 = vcombine.high %v2010_v0, %v2022_v1  ;;  %v1998_v9 = vld [vmem:[%s7013_s15 + $0x130] sm:$0xff]  ;;  %v5263_v12 = vcombine.low %v2010_v0, %v2022_v1  ;;  %v2239_v0 = vld [vmem:[%s7013_s15 + $0x8b8] sm:$0xff] }
 0x393   : > { %4462 = vmatpush2.bf16.msra.mxu1 %v5405_v8  ;;  %v1986_v8 = vld [vmem:[%s7013_s15 + $0xd0] sm:$0xff] }
 0x394   : > { %4513 = vmatprep.subr.bf16.mxu1 %v5386_v54  ;;  %v5240_v14 = vcombine.high %v1986_v8, %v1998_v9  ;;  %v1974_v54 = vld [vmem:[%s7013_s15 + $0x70] sm:$0xff] }
 0x416   : > { %v1949_v18 = vpop.f32.mrf.mxu1 }
 0x417   : > { %v1950_v19 = vadd.f32 %v1949_v18, %v1748_v60  ;;  %v1975_v60 = vld [vmem:[%s7013_s15 + $0x78] sm:$0xff]  ;;  %v5241_v18 = vcombine.low %v1987_v10, %v1999_v11 }
 0x418   : > { %v1951_v20 = vpop.f32.mrf.mxu1 }
 0x419   : > { %v1952_v21 = vadd.f32 %v1951_v20, %v1752_v17  ;;  %v1956_v22 = vmax.f32 %v1950_v19, 0.0  ;;  %v5239_v17 = vcombine.low %v1986_v8, %v1998_v9  ;;  %v5218_v20 = vcombine.high %v1963_v57, %v1975_v60  ;;  %v2215_v8 = vld [vmem:[%s7013_s15 + $0x7f8] sm:$0xff] }
 0x41a   : > { %v1953_v23 = vpop.f32.mrf.mxu1 }
 0x41b   : > { %v1957_v24 = vmax.f32 %v1952_v21, 0.0  ;;  %v7110_v31 = vpack.c.bf16 %v1956_v22, %v1956_v22  ;;  %v2322_v21 = vld [vmem:[%s7013_s15 + $0xb50] sm:$0xff]  ;;  %v2323_v23 = vld [vmem:[%s7013_s15 + $0xb58] sm:$0xff] }
 0x41c   : > { %v1954_v26 = vpop.f32.mrf.mxu1  ;;  %v2334_v22 = vld [vmem:[%s7013_s15 + $0xbb0] sm:$0xff] }
 0x41d   : > { %v7108_v30 = vpack.c.bf16 %v1957_v24, %v1957_v24  ;;  %v2335_v24 = vld [vmem:[%s7013_s15 + $0xbb8] sm:$0xff]  ;;  %v5217_v26 = vcombine.low %v1963_v57, %v1975_v60  ;;  %v5576_v27 = vcombine.high %v2322_v21, %v2334_v22  ;;  %v5575_v38 = vcombine.low %v2322_v21, %v2334_v22 }
 0x41e   : > { %v5578_v28 = vcombine.high %v2323_v23, %v2335_v24  ;;  %v5577_v39 = vcombine.low %v2323_v23, %v2335_v24  ;;  %v2167_v21 = vld [vmem:[%s7013_s15 + $0x678] sm:$0xff] }
 0x41f   : > { %4422 = vmatprep.mubr.bf16.mxu0 %v7108_v30  ;;  %4463 = vmatprep.mubr.bf16.mxu1 %v7108_v30 }
 0x420   : > { %4423 = vmatmul.mubr.bf16.vlgmr.msra.gmra.mxu0 %v7110_v31  ;;  %4464 = vmatmul.mubr.bf16.vlgmr.msra.gmra.mxu1 %v7110_v31 }
 0x421   : > { %4473 = vmatpush1.bf16.msra.mxu0 %v5383_v15  ;;  %4514 = vmatpush1.bf16.msra.mxu1 %v5385_v16  ;;  %v5242_v15 = vcombine.high %v1987_v10, %v1999_v11  ;;  %v1962_v16 = vld [vmem:[%s7013_s15 + $0x10] sm:$0xff] }
 0x422   : > { %4504 = vmatprep.mubr.bf16.mxu0 %v7108_v30  ;;  %4545 = vmatprep.mubr.bf16.mxu1 %v7108_v30  ;;  %v5216_v19 = vcombine.high %v1962_v16, %v1974_v54  ;;  %v5215_v25 = vcombine.low %v1962_v16, %v1974_v54  ;;  %v2191_v16 = vld [vmem:[%s7013_s15 + $0x738] sm:$0xff] }
 0x423   : > { %4474 = vmatprep.subr.bf16.mxu0 %v5360_v36  ;;  %4515 = vmatprep.subr.bf16.mxu1 %v5362_v37  ;;  %v2299_v36 = vld [vmem:[%s7013_s15 + $0xa98] sm:$0xff] }
 0x424   : > { %v2311_v37 = vld [vmem:[%s7013_s15 + $0xaf8] sm:$0xff] }
 0x425   : > { %4475 = vmatpush1.bf16.msra.mxu0 %v5359_v41  ;;  %4516 = vmatpush1.bf16.msra.mxu1 %v5361_v42  ;;  %v5554_v41 = vcombine.high %v2299_v36, %v2311_v37  ;;  %v2274_v42 = vld [vmem:[%s7013_s15 + $0x9d0] sm:$0xff]  ;;  %v5553_v47 = vcombine.low %v2299_v36, %v2311_v37 }
 0x426   : > { %4476 = vmatprep.subr.bf16.mxu0 %v5336_v43  ;;  %4517 = vmatprep.subr.bf16.mxu1 %v5338_v44  ;;  %v2286_v43 = vld [vmem:[%s7013_s15 + $0xa30] sm:$0xff]  ;;  %v2275_v44 = vld [vmem:[%s7013_s15 + $0x9d8] sm:$0xff] }
 0x427   : > { %v5528_v48 = vcombine.high %v2274_v42, %v2286_v43  ;;  %v5527_v55 = vcombine.low %v2274_v42, %v2286_v43  ;;  %v5529_v56 = vcombine.low %v2275_v44, %v2287_v45  ;;  %v2121_v42 = vld [vmem:[%s7013_s15 + $0x508] sm:$0xff] }
 0x429   : > { %4477 = vmatpush1.bf16.msra.mxu0 %v5335_v49  ;;  %4518 = vmatpush1.bf16.msra.mxu1 %v5337_v50  ;;  %v5530_v49 = vcombine.high %v2275_v44, %v2287_v45  ;;  %v2250_v50 = vld [vmem:[%s7013_s15 + $0x910] sm:$0xff] }
 0x42a   : > { %4478 = vmatprep.subr.bf16.mxu0 %v5312_v51  ;;  %4519 = vmatprep.subr.bf16.mxu1 %v5314_v52  ;;  %v2262_v51 = vld [vmem:[%s7013_s15 + $0x970] sm:$0xff]  ;;  %v2251_v52 = vld [vmem:[%s7013_s15 + $0x918] sm:$0xff] }
 0x42b   : > { %v5504_v58 = vcombine.high %v2250_v50, %v2262_v51  ;;  %v5503_v1 = vcombine.low %v2250_v50, %v2262_v51  ;;  %v5505_v2 = vcombine.low %v2251_v52, %v2263_v53  ;;  %v2097_v50 = vld [vmem:[%s7013_s15 + $0x448] sm:$0xff] }
 0x42d   : > { %4479 = vmatpush1.bf16.msra.mxu0 %v5311_v59  ;;  %4520 = vmatpush1.bf16.msra.mxu1 %v5313_v61  ;;  %v5506_v59 = vcombine.high %v2251_v52, %v2263_v53  ;;  %v2226_v61 = vld [vmem:[%s7013_s15 + $0x850] sm:$0xff] }
 0x42e   : > { %4480 = vmatprep.subr.bf16.mxu0 %v5288_v62  ;;  %4521 = vmatprep.subr.bf16.mxu1 %v5290_v63  ;;  %v2238_v62 = vld [vmem:[%s7013_s15 + $0x8b0] sm:$0xff]  ;;  %v2227_v63 = vld [vmem:[%s7013_s15 + $0x858] sm:$0xff] }
 0x42f   : > { %v5480_v3 = vcombine.high %v2226_v61, %v2238_v62  ;;  %v5479_v9 = vcombine.low %v2226_v61, %v2238_v62  ;;  %v5481_v10 = vcombine.low %v2227_v63, %v2239_v0  ;;  %v2073_v61 = vld [vmem:[%s7013_s15 + $0x388] sm:$0xff] }
 0x431   : > { %4481 = vmatpush1.bf16.msra.mxu0 %v5287_v4  ;;  %4522 = vmatpush1.bf16.msra.mxu1 %v5289_v5  ;;  %v5482_v4 = vcombine.high %v2227_v63, %v2239_v0  ;;  %v2202_v5 = vld [vmem:[%s7013_s15 + $0x790] sm:$0xff] }
 0x432   : > { %4482 = vmatprep.subr.bf16.mxu0 %v5264_v6  ;;  %4523 = vmatprep.subr.bf16.mxu1 %v5266_v7  ;;  %v2214_v6 = vld [vmem:[%s7013_s15 + $0x7f0] sm:$0xff]  ;;  %v2203_v7 = vld [vmem:[%s7013_s15 + $0x798] sm:$0xff] }
 0x433   : > { %v5456_v11 = vcombine.high %v2202_v5, %v2214_v6  ;;  %v5455_v54 = vcombine.low %v2202_v5, %v2214_v6  ;;  %v5457_v57 = vcombine.low %v2203_v7, %v2215_v8  ;;  %v2049_v5 = vld [vmem:[%s7013_s15 + $0x2c8] sm:$0xff] }
 0x435   : > { %4483 = vmatpush1.bf16.msra.mxu0 %v5263_v12  ;;  %4524 = vmatpush1.bf16.msra.mxu1 %v5265_v13  ;;  %v5458_v12 = vcombine.high %v2203_v7, %v2215_v8  ;;  %v2178_v13 = vld [vmem:[%s7013_s15 + $0x6d0] sm:$0xff] }
 0x436   : > { %4484 = vmatprep.subr.bf16.mxu0 %v5240_v14  ;;  %4525 = vmatprep.subr.bf16.mxu1 %v5242_v15  ;;  %v2190_v14 = vld [vmem:[%s7013_s15 + $0x730] sm:$0xff]  ;;  %v2179_v15 = vld [vmem:[%s7013_s15 + $0x6d8] sm:$0xff] }
 0x437   : > { %v5432_v60 = vcombine.high %v2178_v13, %v2190_v14  ;;  %v5431_v22 = vcombine.low %v2178_v13, %v2190_v14  ;;  %v5433_v23 = vcombine.low %v2179_v15, %v2191_v16  ;;  %v2025_v13 = vld [vmem:[%s7013_s15 + $0x208] sm:$0xff] }
 0x439   : > { %4485 = vmatpush1.bf16.msra.mxu0 %v5239_v17  ;;  %4526 = vmatpush1.bf16.msra.mxu1 %v5241_v18  ;;  %v5434_v17 = vcombine.high %v2179_v15, %v2191_v16  ;;  %v2154_v18 = vld [vmem:[%s7013_s15 + $0x610] sm:$0xff] }
 0x43a   : > { %4486 = vmatprep.subr.bf16.mxu0 %v5216_v19  ;;  %4527 = vmatprep.subr.bf16.mxu1 %v5218_v20  ;;  %v2166_v19 = vld [vmem:[%s7013_s15 + $0x670] sm:$0xff]  ;;  %v2155_v20 = vld [vmem:[%s7013_s15 + $0x618] sm:$0xff] }
 0x43b   : > { %v5408_v24 = vcombine.high %v2154_v18, %v2166_v19  ;;  %v5407_v34 = vcombine.low %v2154_v18, %v2166_v19  ;;  %v5409_v36 = vcombine.low %v2155_v20, %v2167_v21  ;;  %v2001_v18 = vld [vmem:[%s7013_s15 + $0x148] sm:$0xff] }
 0x43d   : > { %4487 = vmatpush1.bf16.msra.mxu0 %v5215_v25  ;;  %4528 = vmatpush1.bf16.msra.mxu1 %v5217_v26  ;;  %v5410_v25 = vcombine.high %v2155_v20, %v2167_v21  ;;  %v2132_v26 = vld [vmem:[%s7013_s15 + $0x560] sm:$0xff] }
 0x43e   : > { %4488 = vmatprep.subr.bf16.mxu0 %v5576_v27  ;;  %4529 = vmatprep.subr.bf16.mxu1 %v5578_v28  ;;  %v2144_v27 = vld [vmem:[%s7013_s15 + $0x5c0] sm:$0xff]  ;;  %v2133_v28 = vld [vmem:[%s7013_s15 + $0x568] sm:$0xff] }
 0x43f   : > { %v5388_v37 = vcombine.high %v2132_v26, %v2144_v27  ;;  %v5387_v43 = vcombine.low %v2132_v26, %v2144_v27  ;;  %v5389_v44 = vcombine.low %v2133_v28, %v2145_v29  ;;  %v1977_v26 = vld [vmem:[%s7013_s15 + $0x88] sm:$0xff] }
 0x441   : > { %4489 = vmatpush2.bf16.msra.mxu0 %v5575_v38  ;;  %4530 = vmatpush2.bf16.msra.mxu1 %v5577_v39  ;;  %v5390_v38 = vcombine.high %v2133_v28, %v2145_v29  ;;  %v2108_v39 = vld [vmem:[%s7013_s15 + $0x4a0] sm:$0xff] }
 0x442   : > { %4490 = vmatprep.subr.bf16.mxu0 %v5552_v40  ;;  %4531 = vmatprep.subr.bf16.mxu1 %v5554_v41  ;;  %v2120_v40 = vld [vmem:[%s7013_s15 + $0x500] sm:$0xff]  ;;  %v2109_v41 = vld [vmem:[%s7013_s15 + $0x4a8] sm:$0xff] }
 0x443   : > { %v5364_v45 = vcombine.high %v2108_v39, %v2120_v40  ;;  %v5363_v51 = vcombine.low %v2108_v39, %v2120_v40  ;;  %v5365_v52 = vcombine.low %v2109_v41, %v2121_v42  ;;  %v2337_v39 = vld [vmem:[%s7013_s15 + $0xbc8] sm:$0xff] }
 0x445   : > { %4491 = vmatpush2.bf16.msra.mxu0 %v5551_v46  ;;  %4532 = vmatpush2.bf16.msra.mxu1 %v5553_v47  ;;  %v5366_v46 = vcombine.high %v2109_v41, %v2121_v42  ;;  %v2084_v47 = vld [vmem:[%s7013_s15 + $0x3e0] sm:$0xff] }
 0x446   : > { %4492 = vmatprep.subr.bf16.mxu0 %v5528_v48  ;;  %4533 = vmatprep.subr.bf16.mxu1 %v5530_v49  ;;  %v2096_v48 = vld [vmem:[%s7013_s15 + $0x440] sm:$0xff]  ;;  %v2085_v49 = vld [vmem:[%s7013_s15 + $0x3e8] sm:$0xff] }
 0x447   : > { %v5340_v53 = vcombine.high %v2084_v47, %v2096_v48  ;;  %v5339_v62 = vcombine.low %v2084_v47, %v2096_v48  ;;  %v5341_v63 = vcombine.low %v2085_v49, %v2097_v50  ;;  %v2313_v47 = vld [vmem:[%s7013_s15 + $0xb08] sm:$0xff] }
 0x449   : > { %4493 = vmatpush2.bf16.msra.mxu0 %v5527_v55  ;;  %4534 = vmatpush2.bf16.msra.mxu1 %v5529_v56  ;;  %v5342_v55 = vcombine.high %v2085_v49, %v2097_v50  ;;  %v2060_v56 = vld [vmem:[%s7013_s15 + $0x320] sm:$0xff] }
 0x44a   : > { %4494 = vmatprep.subr.bf16.mxu0 %v5504_v58  ;;  %4535 = vmatprep.subr.bf16.mxu1 %v5506_v59  ;;  %v2072_v58 = vld [vmem:[%s7013_s15 + $0x380] sm:$0xff]  ;;  %v2061_v59 = vld [vmem:[%s7013_s15 + $0x328] sm:$0xff] }
 0x44b   : > { %v5316_v0 = vcombine.high %v2060_v56, %v2072_v58  ;;  %v5315_v6 = vcombine.low %v2060_v56, %v2072_v58  ;;  %v5317_v7 = vcombine.low %v2061_v59, %v2073_v61  ;;  %v2289_v56 = vld [vmem:[%s7013_s15 + $0xa48] sm:$0xff] }
 0x44d   : > { %4495 = vmatpush2.bf16.msra.mxu0 %v5503_v1  ;;  %4536 = vmatpush2.bf16.msra.mxu1 %v5505_v2  ;;  %v5318_v1 = vcombine.high %v2061_v59, %v2073_v61  ;;  %v2036_v2 = vld [vmem:[%s7013_s15 + $0x260] sm:$0xff] }
 0x44e   : > { %4496 = vmatprep.subr.bf16.mxu0 %v5480_v3  ;;  %4537 = vmatprep.subr.bf16.mxu1 %v5482_v4  ;;  %v2048_v3 = vld [vmem:[%s7013_s15 + $0x2c0] sm:$0xff]  ;;  %v2037_v4 = vld [vmem:[%s7013_s15 + $0x268] sm:$0xff] }
 0x44f   : > { %v5292_v8 = vcombine.high %v2036_v2, %v2048_v3  ;;  %v5291_v14 = vcombine.low %v2036_v2, %v2048_v3  ;;  %v5293_v15 = vcombine.low %v2037_v4, %v2049_v5  ;;  %v2265_v2 = vld [vmem:[%s7013_s15 + $0x988] sm:$0xff] }
 0x451   : > { %4497 = vmatpush2.bf16.msra.mxu0 %v5479_v9  ;;  %4538 = vmatpush2.bf16.msra.mxu1 %v5481_v10  ;;  %v5294_v9 = vcombine.high %v2037_v4, %v2049_v5  ;;  %v2012_v10 = vld [vmem:[%s7013_s15 + $0x1a0] sm:$0xff] }
 0x452   : > { %4498 = vmatprep.subr.bf16.mxu0 %v5456_v11  ;;  %4539 = vmatprep.subr.bf16.mxu1 %v5458_v12  ;;  %v2024_v11 = vld [vmem:[%s7013_s15 + $0x200] sm:$0xff]  ;;  %v2013_v12 = vld [vmem:[%s7013_s15 + $0x1a8] sm:$0xff] }
 0x453   : > { %v5268_v16 = vcombine.high %v2012_v10, %v2024_v11  ;;  %v5267_v19 = vcombine.low %v2012_v10, %v2024_v11  ;;  %v5269_v20 = vcombine.low %v2013_v12, %v2025_v13  ;;  %v2241_v10 = vld [vmem:[%s7013_s15 + $0x8c8] sm:$0xff] }
 0x455   : > { %4499 = vmatpush2.bf16.msra.mxu0 %v5455_v54  ;;  %4540 = vmatpush2.bf16.msra.mxu1 %v5457_v57  ;;  %v5270_v54 = vcombine.high %v2013_v12, %v2025_v13  ;;  %v1988_v57 = vld [vmem:[%s7013_s15 + $0xe0] sm:$0xff] }
 0x456   : > { %4500 = vmatprep.subr.bf16.mxu0 %v5432_v60  ;;  %4541 = vmatprep.subr.bf16.mxu1 %v5434_v17  ;;  %v2000_v60 = vld [vmem:[%s7013_s15 + $0x140] sm:$0xff]  ;;  %v1989_v17 = vld [vmem:[%s7013_s15 + $0xe8] sm:$0xff] }
 0x457   : > { %v5244_v21 = vcombine.high %v1988_v57, %v2000_v60  ;;  %v5243_v27 = vcombine.low %v1988_v57, %v2000_v60  ;;  %v5245_v28 = vcombine.low %v1989_v17, %v2001_v18  ;;  %v2217_v57 = vld [vmem:[%s7013_s15 + $0x808] sm:$0xff] }
 0x459   : > { %4501 = vmatpush2.bf16.msra.mxu0 %v5431_v22  ;;  %4542 = vmatpush2.bf16.msra.mxu1 %v5433_v23  ;;  %v5246_v22 = vcombine.high %v1989_v17, %v2001_v18  ;;  %v1964_v23 = vld [vmem:[%s7013_s15 + $0x20] sm:$0xff] }
 0x45a   : > { %4502 = vmatprep.subr.bf16.mxu0 %v5408_v24  ;;  %4543 = vmatprep.subr.bf16.mxu1 %v5410_v25  ;;  %v1976_v24 = vld [vmem:[%s7013_s15 + $0x80] sm:$0xff]  ;;  %v1965_v25 = vld [vmem:[%s7013_s15 + $0x28] sm:$0xff] }
 0x45b   : > { %v5220_v29 = vcombine.high %v1964_v23, %v1976_v24  ;;  %v5219_v40 = vcombine.low %v1964_v23, %v1976_v24  ;;  %v5221_v41 = vcombine.low %v1965_v25, %v1977_v26  ;;  %v2193_v23 = vld [vmem:[%s7013_s15 + $0x748] sm:$0xff] }
 0x45d   : > { %4503 = vmatpush2.bf16.msra.mxu0 %v5407_v34  ;;  %4544 = vmatpush2.bf16.msra.mxu1 %v5409_v36  ;;  %v5222_v34 = vcombine.high %v1965_v25, %v1977_v26  ;;  %v2324_v36 = vld [vmem:[%s7013_s15 + $0xb60] sm:$0xff] }
 0x45e   : > { %4554 = vmatprep.subr.bf16.mxu0 %v5388_v37  ;;  %4595 = vmatprep.subr.bf16.mxu1 %v5390_v38  ;;  %v2336_v37 = vld [vmem:[%s7013_s15 + $0xbc0] sm:$0xff]  ;;  %v2325_v38 = vld [vmem:[%s7013_s15 + $0xb68] sm:$0xff] }
 0x45f   : > { %v5580_v42 = vcombine.high %v2324_v36, %v2336_v37  ;;  %v5579_v48 = vcombine.low %v2324_v36, %v2336_v37  ;;  %v5581_v49 = vcombine.low %v2325_v38, %v2337_v39  ;;  %v2169_v36 = vld [vmem:[%s7013_s15 + $0x688] sm:$0xff] }
 0x460   : > { %4505 = vmatmul.mubr.bf16.vlgmr.msra.gmra.mxu0 %v7110_v31  ;;  %4546 = vmatmul.mubr.bf16.vlgmr.msra.gmra.mxu1 %v7110_v31 }
 0x461   : > { %4555 = vmatpush1.bf16.msra.mxu0 %v5387_v43  ;;  %4586 = vmatprep.mubr.bf16.mxu0 %v7108_v30  ;;  %v5582_v43 = vcombine.high %v2325_v38, %v2337_v39 }
 0x462   : > { %4596 = vmatpush1.bf16.msra.mxu1 %v5389_v44  ;;  %4627 = vmatprep.mubr.bf16.mxu1 %v7108_v30  ;;  %v2300_v44 = vld [vmem:[%s7013_s15 + $0xaa0] sm:$0xff] }
 0x463   : > { %4556 = vmatprep.subr.bf16.mxu0 %v5364_v45  ;;  %4597 = vmatprep.subr.bf16.mxu1 %v5366_v46  ;;  %v2312_v45 = vld [vmem:[%s7013_s15 + $0xb00] sm:$0xff]  ;;  %v2301_v46 = vld [vmem:[%s7013_s15 + $0xaa8] sm:$0xff] }
 0x464   : > { %v5556_v50 = vcombine.high %v2300_v44, %v2312_v45  ;;  %v5555_v58 = vcombine.low %v2300_v44, %v2312_v45  ;;  %v5557_v59 = vcombine.low %v2301_v46, %v2313_v47  ;;  %v2147_v44 = vld [vmem:[%s7013_s15 + $0x5d8] sm:$0xff] }
 0x465   : > { %4557 = vmatpush1.bf16.msra.mxu0 %v5363_v51  ;;  %v5558_v51 = vcombine.high %v2301_v46, %v2313_v47 }
 0x466   : > { %4598 = vmatpush1.bf16.msra.mxu1 %v5365_v52  ;;  %4558 = vmatprep.subr.bf16.mxu0 %v5340_v53  ;;  %v2276_v52 = vld [vmem:[%s7013_s15 + $0x9e0] sm:$0xff] }
 0x467   : > { %4599 = vmatprep.subr.bf16.mxu1 %v5342_v55  ;;  %v2288_v53 = vld [vmem:[%s7013_s15 + $0xa40] sm:$0xff]  ;;  %v2277_v55 = vld [vmem:[%s7013_s15 + $0x9e8] sm:$0xff] }
 0x468   : > { %v5532_v61 = vcombine.high %v2276_v52, %v2288_v53  ;;  %v5531_v3 = vcombine.low %v2276_v52, %v2288_v53  ;;  %v5533_v4 = vcombine.low %v2277_v55, %v2289_v56  ;;  %v2111_v52 = vld [vmem:[%s7013_s15 + $0x4b8] sm:$0xff] }
 0x469   : > { %4559 = vmatpush1.bf16.msra.mxu0 %v5339_v62  ;;  %v5534_v62 = vcombine.high %v2277_v55, %v2289_v56  ;;  %v2123_v53 = vld [vmem:[%s7013_s15 + $0x518] sm:$0xff] }
 0x46a   : > { %4600 = vmatpush1.bf16.msra.mxu1 %v5341_v63  ;;  %4560 = vmatprep.subr.bf16.mxu0 %v5316_v0  ;;  %v2252_v63 = vld [vmem:[%s7013_s15 + $0x920] sm:$0xff] }
 0x46b   : > { %4601 = vmatprep.subr.bf16.mxu1 %v5318_v1  ;;  %v2264_v0 = vld [vmem:[%s7013_s15 + $0x980] sm:$0xff]  ;;  %v2253_v1 = vld [vmem:[%s7013_s15 + $0x928] sm:$0xff] }
 0x46c   : > { %v5508_v5 = vcombine.high %v2252_v63, %v2264_v0  ;;  %v5507_v11 = vcombine.low %v2252_v63, %v2264_v0  ;;  %v5509_v12 = vcombine.low %v2253_v1, %v2265_v2  ;;  %v2099_v63 = vld [vmem:[%s7013_s15 + $0x458] sm:$0xff] }
 0x46d   : > { %4561 = vmatpush1.bf16.msra.mxu0 %v5315_v6  ;;  %v5510_v6 = vcombine.high %v2253_v1, %v2265_v2  ;;  %v5369_v1 = vcombine.low %v2111_v52, %v2123_v53 }
 0x46e   : > { %4602 = vmatpush1.bf16.msra.mxu1 %v5317_v7  ;;  %4562 = vmatprep.subr.bf16.mxu0 %v5292_v8  ;;  %v2228_v7 = vld [vmem:[%s7013_s15 + $0x860] sm:$0xff] }
 0x46f   : > { %4603 = vmatprep.subr.bf16.mxu1 %v5294_v9  ;;  %v2240_v8 = vld [vmem:[%s7013_s15 + $0x8c0] sm:$0xff]  ;;  %v2229_v9 = vld [vmem:[%s7013_s15 + $0x868] sm:$0xff] }
 0x470   : > { %v5484_v13 = vcombine.high %v2228_v7, %v2240_v8  ;;  %v5483_v60 = vcombine.low %v2228_v7, %v2240_v8  ;;  %v5485_v17 = vcombine.low %v2229_v9, %v2241_v10  ;;  %v2075_v7 = vld [vmem:[%s7013_s15 + $0x398] sm:$0xff] }
 0x471   : > { %4563 = vmatpush1.bf16.msra.mxu0 %v5291_v14  ;;  %v5486_v14 = vcombine.high %v2229_v9, %v2241_v10 }
 0x472   : > { %4604 = vmatpush1.bf16.msra.mxu1 %v5293_v15  ;;  %4564 = vmatprep.subr.bf16.mxu0 %v5268_v16  ;;  %v2204_v15 = vld [vmem:[%s7013_s15 + $0x7a0] sm:$0xff] }
 0x473   : > { %4605 = vmatprep.subr.bf16.mxu1 %v5270_v54  ;;  %v2216_v16 = vld [vmem:[%s7013_s15 + $0x800] sm:$0xff]  ;;  %v2205_v54 = vld [vmem:[%s7013_s15 + $0x7a8] sm:$0xff] }
 0x474   : > { %v5460_v18 = vcombine.high %v2204_v15, %v2216_v16  ;;  %v5459_v24 = vcombine.low %v2204_v15, %v2216_v16  ;;  %v5461_v25 = vcombine.low %v2205_v54, %v2217_v57  ;;  %v2051_v15 = vld [vmem:[%s7013_s15 + $0x2d8] sm:$0xff] }
 0x475   : > { %4565 = vmatpush1.bf16.msra.mxu0 %v5267_v19  ;;  %v5462_v19 = vcombine.high %v2205_v54, %v2217_v57 }
 0x476   : > { %4606 = vmatpush1.bf16.msra.mxu1 %v5269_v20  ;;  %4566 = vmatprep.subr.bf16.mxu0 %v5244_v21  ;;  %v2180_v20 = vld [vmem:[%s7013_s15 + $0x6e0] sm:$0xff] }
 0x477   : > { %4607 = vmatprep.subr.bf16.mxu1 %v5246_v22  ;;  %v2192_v21 = vld [vmem:[%s7013_s15 + $0x740] sm:$0xff]  ;;  %v2181_v22 = vld [vmem:[%s7013_s15 + $0x6e8] sm:$0xff] }
 0x478   : > { %v5436_v26 = vcombine.high %v2180_v20, %v2192_v21  ;;  %v5435_v37 = vcombine.low %v2180_v20, %v2192_v21  ;;  %v5437_v38 = vcombine.low %v2181_v22, %v2193_v23  ;;  %v2027_v20 = vld [vmem:[%s7013_s15 + $0x218] sm:$0xff] }
 0x479   : > { %4567 = vmatpush1.bf16.msra.mxu0 %v5243_v27  ;;  %v5438_v27 = vcombine.high %v2181_v22, %v2193_v23 }
 0x47a   : > { %4608 = vmatpush1.bf16.msra.mxu1 %v5245_v28  ;;  %4568 = vmatprep.subr.bf16.mxu0 %v5220_v29  ;;  %v2156_v28 = vld [vmem:[%s7013_s15 + $0x620] sm:$0xff] }
 0x47b   : > { %4609 = vmatprep.subr.bf16.mxu1 %v5222_v34  ;;  %v2168_v29 = vld [vmem:[%s7013_s15 + $0x680] sm:$0xff]  ;;  %v2157_v34 = vld [vmem:[%s7013_s15 + $0x628] sm:$0xff] }
 0x47c   : > { %v5412_v39 = vcombine.high %v2156_v28, %v2168_v29  ;;  %v5411_v45 = vcombine.low %v2156_v28, %v2168_v29  ;;  %v5413_v46 = vcombine.low %v2157_v34, %v2169_v36  ;;  %v2003_v28 = vld [vmem:[%s7013_s15 + $0x158] sm:$0xff] }
 0x47d   : > { %4569 = vmatpush1.bf16.msra.mxu0 %v5219_v40  ;;  %v5414_v40 = vcombine.high %v2157_v34, %v2169_v36 }
 0x47e   : > { %4610 = vmatpush1.bf16.msra.mxu1 %v5221_v41  ;;  %4570 = vmatprep.subr.bf16.mxu0 %v5580_v42  ;;  %v2134_v41 = vld [vmem:[%s7013_s15 + $0x570] sm:$0xff] }
 0x47f   : > { %4611 = vmatprep.subr.bf16.mxu1 %v5582_v43  ;;  %v2146_v42 = vld [vmem:[%s7013_s15 + $0x5d0] sm:$0xff]  ;;  %v2135_v43 = vld [vmem:[%s7013_s15 + $0x578] sm:$0xff] }
 0x480   : > { %v5392_v47 = vcombine.high %v2134_v41, %v2146_v42  ;;  %v5393_v55 = vcombine.low %v2135_v43, %v2147_v44 }
 0x481   : > { %4571 = vmatpush2.bf16.msra.mxu0 %v5579_v48  ;;  %v5394_v48 = vcombine.high %v2135_v43, %v2147_v44 }
 0x482   : > { %4612 = vmatpush2.bf16.msra.mxu1 %v5581_v49  ;;  %4572 = vmatprep.subr.bf16.mxu0 %v5556_v50  ;;  %v2110_v49 = vld [vmem:[%s7013_s15 + $0x4b0] sm:$0xff] }
 0x483   : > { %4613 = vmatprep.subr.bf16.mxu1 %v5558_v51  ;;  %v2122_v50 = vld [vmem:[%s7013_s15 + $0x510] sm:$0xff]  ;;  %v5391_v51 = vcombine.low %v2134_v41, %v2146_v42  ;;  %v1979_v41 = vld [vmem:[%s7013_s15 + $0x98] sm:$0xff] }
 0x484   : > { %v5368_v56 = vcombine.high %v2110_v49, %v2122_v50  ;;  %v5367_v0 = vcombine.low %v2110_v49, %v2122_v50  ;;  %v2339_v49 = vld [vmem:[%s7013_s15 + $0xbd8] sm:$0xff] }
 0x485   : > { %4573 = vmatpush2.bf16.msra.mxu0 %v5555_v58  ;;  %v2086_v58 = vld [vmem:[%s7013_s15 + $0x3f0] sm:$0xff] }
 0x486   : > { %4614 = vmatpush2.bf16.msra.mxu1 %v5557_v59  ;;  %4574 = vmatprep.subr.bf16.mxu0 %v5532_v61  ;;  %v2098_v59 = vld [vmem:[%s7013_s15 + $0x450] sm:$0xff]  ;;  %v5370_v61 = vcombine.high %v2111_v52, %v2123_v53 }
 0x487   : > { %4615 = vmatprep.subr.bf16.mxu1 %v5534_v62  ;;  %v2087_v62 = vld [vmem:[%s7013_s15 + $0x3f8] sm:$0xff]  ;;  %v5344_v2 = vcombine.high %v2086_v58, %v2098_v59  ;;  %v5343_v8 = vcombine.low %v2086_v58, %v2098_v59 }
 0x488   : > { %v5345_v9 = vcombine.low %v2087_v62, %v2099_v63  ;;  %v2303_v58 = vld [vmem:[%s7013_s15 + $0xab8] sm:$0xff] }
 0x489   : > { %4575 = vmatpush2.bf16.msra.mxu0 %v5531_v3  ;;  %v5346_v3 = vcombine.high %v2087_v62, %v2099_v63  ;;  %v2315_v59 = vld [vmem:[%s7013_s15 + $0xb18] sm:$0xff] }
 0x48a   : > { %4616 = vmatpush2.bf16.msra.mxu1 %v5533_v4  ;;  %4576 = vmatprep.subr.bf16.mxu0 %v5508_v5  ;;  %v2062_v4 = vld [vmem:[%s7013_s15 + $0x330] sm:$0xff] }
 0x48b   : > { %4617 = vmatprep.subr.bf16.mxu1 %v5510_v6  ;;  %v2074_v5 = vld [vmem:[%s7013_s15 + $0x390] sm:$0xff]  ;;  %v2063_v6 = vld [vmem:[%s7013_s15 + $0x338] sm:$0xff] }
 0x48c   : > { %v5320_v10 = vcombine.high %v2062_v4, %v2074_v5  ;;  %v5319_v16 = vcombine.low %v2062_v4, %v2074_v5  ;;  %v5321_v54 = vcombine.low %v2063_v6, %v2075_v7  ;;  %v2291_v4 = vld [vmem:[%s7013_s15 + $0xa58] sm:$0xff] }
 0x48d   : > { %4577 = vmatpush2.bf16.msra.mxu0 %v5507_v11  ;;  %v5322_v11 = vcombine.high %v2063_v6, %v2075_v7  ;;  %v5561_v6 = vcombine.low %v2303_v58, %v2315_v59 }
 0x48e   : > { %4618 = vmatpush2.bf16.msra.mxu1 %v5509_v12  ;;  %4578 = vmatprep.subr.bf16.mxu0 %v5484_v13  ;;  %v2038_v12 = vld [vmem:[%s7013_s15 + $0x270] sm:$0xff] }
 0x48f   : > { %4619 = vmatprep.subr.bf16.mxu1 %v5486_v14  ;;  %v2050_v13 = vld [vmem:[%s7013_s15 + $0x2d0] sm:$0xff]  ;;  %v2039_v14 = vld [vmem:[%s7013_s15 + $0x278] sm:$0xff] }
 0x490   : > { %v5296_v57 = vcombine.high %v2038_v12, %v2050_v13  ;;  %v5295_v21 = vcombine.low %v2038_v12, %v2050_v13  ;;  %v5297_v22 = vcombine.low %v2039_v14, %v2051_v15  ;;  %v2267_v12 = vld [vmem:[%s7013_s15 + $0x998] sm:$0xff] }
 0x491   : > { %4579 = vmatpush2.bf16.msra.mxu0 %v5483_v60  ;;  %v5298_v60 = vcombine.high %v2039_v14, %v2051_v15 }
 0x492   : > { %4620 = vmatpush2.bf16.msra.mxu1 %v5485_v17  ;;  %4580 = vmatprep.subr.bf16.mxu0 %v5460_v18  ;;  %v2014_v17 = vld [vmem:[%s7013_s15 + $0x1b0] sm:$0xff] }
 0x493   : > { %4621 = vmatprep.subr.bf16.mxu1 %v5462_v19  ;;  %v2026_v18 = vld [vmem:[%s7013_s15 + $0x210] sm:$0xff]  ;;  %v2015_v19 = vld [vmem:[%s7013_s15 + $0x1b8] sm:$0xff] }
 0x494   : > { %v5272_v23 = vcombine.high %v2014_v17, %v2026_v18  ;;  %v5271_v29 = vcombine.low %v2014_v17, %v2026_v18  ;;  %v5273_v34 = vcombine.low %v2015_v19, %v2027_v20  ;;  %v2243_v17 = vld [vmem:[%s7013_s15 + $0x8d8] sm:$0xff] }
 0x495   : > { %4581 = vmatpush2.bf16.msra.mxu0 %v5459_v24  ;;  %v5274_v24 = vcombine.high %v2015_v19, %v2027_v20 }
 0x496   : > { %4622 = vmatpush2.bf16.msra.mxu1 %v5461_v25  ;;  %4582 = vmatprep.subr.bf16.mxu0 %v5436_v26  ;;  %v1990_v25 = vld [vmem:[%s7013_s15 + $0xf0] sm:$0xff] }
 0x497   : > { %4623 = vmatprep.subr.bf16.mxu1 %v5438_v27  ;;  %v2002_v26 = vld [vmem:[%s7013_s15 + $0x150] sm:$0xff]  ;;  %v1991_v27 = vld [vmem:[%s7013_s15 + $0xf8] sm:$0xff] }
 0x498   : > { %v5248_v36 = vcombine.high %v1990_v25, %v2002_v26  ;;  %v5247_v42 = vcombine.low %v1990_v25, %v2002_v26  ;;  %v5249_v43 = vcombine.low %v1991_v27, %v2003_v28  ;;  %v2219_v25 = vld [vmem:[%s7013_s15 + $0x818] sm:$0xff] }
 0x499   : > { %4583 = vmatpush2.bf16.msra.mxu0 %v5435_v37  ;;  %v5250_v37 = vcombine.high %v1991_v27, %v2003_v28 }
 0x49a   : > { %4624 = vmatpush2.bf16.msra.mxu1 %v5437_v38  ;;  %4584 = vmatprep.subr.bf16.mxu0 %v5412_v39  ;;  %v1966_v38 = vld [vmem:[%s7013_s15 + $0x30] sm:$0xff] }
 0x49b   : > { %4625 = vmatprep.subr.bf16.mxu1 %v5414_v40  ;;  %v1978_v39 = vld [vmem:[%s7013_s15 + $0x90] sm:$0xff]  ;;  %v1967_v40 = vld [vmem:[%s7013_s15 + $0x38] sm:$0xff] }
 0x49c   : > { %v5224_v44 = vcombine.high %v1966_v38, %v1978_v39  ;;  %v5223_v50 = vcombine.low %v1966_v38, %v1978_v39  ;;  %v2195_v38 = vld [vmem:[%s7013_s15 + $0x758] sm:$0xff] }
 0x49d   : > { %4585 = vmatpush2.bf16.msra.mxu0 %v5411_v45  ;;  %v5226_v45 = vcombine.high %v1967_v40, %v1979_v41 }
 0x49e   : > { %4626 = vmatpush2.bf16.msra.mxu1 %v5413_v46  ;;  %4636 = vmatprep.subr.bf16.mxu0 %v5392_v47  ;;  %v2326_v46 = vld [vmem:[%s7013_s15 + $0xb70] sm:$0xff] }
 0x49f   : > { %4677 = vmatprep.subr.bf16.mxu1 %v5394_v48  ;;  %v2338_v47 = vld [vmem:[%s7013_s15 + $0xbd0] sm:$0xff]  ;;  %v2327_v48 = vld [vmem:[%s7013_s15 + $0xb78] sm:$0xff] }
 0x4a0   : > { %4587 = vmatmul.mubr.bf16.vlgmr.msra.gmra.mxu0 %v7110_v31  ;;  %v5584_v52 = vcombine.high %v2326_v46, %v2338_v47  ;;  %v5586_v53 = vcombine.high %v2327_v48, %v2339_v49  ;;  %v5585_v62 = vcombine.low %v2327_v48, %v2339_v49 }
 0x4a1   : > { %4628 = vmatmul.mubr.bf16.vlgmr.msra.gmra.mxu1 %v7110_v31  ;;  %4637 = vmatpush1.bf16.msra.mxu0 %v5391_v51  ;;  %v5225_v51 = vcombine.low %v1967_v40, %v1979_v41 }
 0x4a2   : > { %4668 = vmatprep.mubr.bf16.mxu0 %v7108_v30  ;;  %4678 = vmatpush1.bf16.msra.mxu1 %v5393_v55  ;;  %v2302_v55 = vld [vmem:[%s7013_s15 + $0xab0] sm:$0xff] }
 0x4a3   : > { %4709 = vmatprep.mubr.bf16.mxu1 %v7108_v30  ;;  %4638 = vmatprep.subr.bf16.mxu0 %v5368_v56  ;;  %v2314_v56 = vld [vmem:[%s7013_s15 + $0xb10] sm:$0xff] }
 0x4a4   : > { %4679 = vmatprep.subr.bf16.mxu1 %v5370_v61  ;;  %v5583_v61 = vcombine.low %v2326_v46, %v2338_v47  ;;  %v5560_v63 = vcombine.high %v2302_v55, %v2314_v56  ;;  %v5559_v5 = vcombine.low %v2302_v55, %v2314_v56  ;;  %v2171_v46 = vld [vmem:[%s7013_s15 + $0x698] sm:$0xff]  ;;  %v2149_v55 = vld [vmem:[%s7013_s15 + $0x5e8] sm:$0xff] }
 0x4a5   : > { %4639 = vmatpush1.bf16.msra.mxu0 %v5367_v0  ;;  %v5562_v0 = vcombine.high %v2303_v58, %v2315_v59  ;;  %v7325_v58 = vsub.s32 2, %v6987_v32 }
 0x4a6   : > { %4680 = vmatpush1.bf16.msra.mxu1 %v5369_v1  ;;  %4640 = vmatprep.subr.bf16.mxu0 %v5344_v2  ;;  %v2278_v1 = vld [vmem:[%s7013_s15 + $0x9f0] sm:$0xff] }
 0x4a7   : > { %4681 = vmatprep.subr.bf16.mxu1 %v5346_v3  ;;  %v2290_v2 = vld [vmem:[%s7013_s15 + $0xa50] sm:$0xff]  ;;  %v2279_v3 = vld [vmem:[%s7013_s15 + $0x9f8] sm:$0xff] }
 0x4a8   : > { %v5536_v7 = vcombine.high %v2278_v1, %v2290_v2  ;;  %v5535_v13 = vcombine.low %v2278_v1, %v2290_v2  ;;  %v5537_v14 = vcombine.low %v2279_v3, %v2291_v4  ;;  %v2112_v1 = vld [vmem:[%s7013_s15 + $0x4c0] sm:$0xff] }
 0x4a9   : > { %4641 = vmatpush1.bf16.msra.mxu0 %v5343_v8  ;;  %v5538_v8 = vcombine.high %v2279_v3, %v2291_v4  ;;  %v2124_v2 = vld [vmem:[%s7013_s15 + $0x520] sm:$0xff] }
 0x4aa   : > { %4682 = vmatpush1.bf16.msra.mxu1 %v5345_v9  ;;  %4642 = vmatprep.subr.bf16.mxu0 %v5320_v10  ;;  %v2254_v9 = vld [vmem:[%s7013_s15 + $0x930] sm:$0xff] }
 0x4ab   : > { %4683 = vmatprep.subr.bf16.mxu1 %v5322_v11  ;;  %v2266_v10 = vld [vmem:[%s7013_s15 + $0x990] sm:$0xff]  ;;  %v2255_v11 = vld [vmem:[%s7013_s15 + $0x938] sm:$0xff] }
 0x4ac   : > { %v5512_v15 = vcombine.high %v2254_v9, %v2266_v10  ;;  %v5511_v18 = vcombine.low %v2254_v9, %v2266_v10  ;;  %v5513_v19 = vcombine.low %v2255_v11, %v2267_v12 }
 0x4ad   : > { %4643 = vmatpush1.bf16.msra.mxu0 %v5319_v16  ;;  %v5514_v16 = vcombine.high %v2255_v11, %v2267_v12  ;;  %v5372_v11 = vcombine.high %v2112_v1, %v2124_v2  ;;  %v2088_v12 = vld [vmem:[%s7013_s15 + $0x400] sm:$0xff] }
 0x4ae   : > { %4684 = vmatpush1.bf16.msra.mxu1 %v5321_v54  ;;  %4644 = vmatprep.subr.bf16.mxu0 %v5296_v57  ;;  %v2230_v54 = vld [vmem:[%s7013_s15 + $0x870] sm:$0xff] }
 0x4af   : > { %4685 = vmatprep.subr.bf16.mxu1 %v5298_v60  ;;  %v2242_v57 = vld [vmem:[%s7013_s15 + $0x8d0] sm:$0xff]  ;;  %v2231_v60 = vld [vmem:[%s7013_s15 + $0x878] sm:$0xff] }
 0x4b0   : > { %v5488_v20 = vcombine.high %v2230_v54, %v2242_v57  ;;  %v5487_v26 = vcombine.low %v2230_v54, %v2242_v57  ;;  %v5489_v27 = vcombine.low %v2231_v60, %v2243_v17  ;;  %v2089_v54 = vld [vmem:[%s7013_s15 + $0x408] sm:$0xff] }
 0x4b1   : > { %4645 = vmatpush1.bf16.msra.mxu0 %v5295_v21  ;;  %v5490_v21 = vcombine.high %v2231_v60, %v2243_v17  ;;  %v2101_v57 = vld [vmem:[%s7013_s15 + $0x468] sm:$0xff] }
 0x4b2   : > { %4686 = vmatpush1.bf16.msra.mxu1 %v5297_v22  ;;  %4646 = vmatprep.subr.bf16.mxu0 %v5272_v23  ;;  %v2206_v22 = vld [vmem:[%s7013_s15 + $0x7b0] sm:$0xff] }
 0x4b3   : > { %4687 = vmatprep.subr.bf16.mxu1 %v5274_v24  ;;  %v2218_v23 = vld [vmem:[%s7013_s15 + $0x810] sm:$0xff]  ;;  %v2207_v24 = vld [vmem:[%s7013_s15 + $0x7b8] sm:$0xff] }
 0x4b4   : > { %v5464_v28 = vcombine.high %v2206_v22, %v2218_v23  ;;  %v5463_v39 = vcombine.low %v2206_v22, %v2218_v23  ;;  %v5465_v40 = vcombine.low %v2207_v24, %v2219_v25 }
 0x4b5   : > { %4647 = vmatpush1.bf16.msra.mxu0 %v5271_v29  ;;  %v5466_v29 = vcombine.high %v2207_v24, %v2219_v25  ;;  %v5350_v25 = vcombine.high %v2089_v54, %v2101_v57 }
 0x4b6   : > { %4688 = vmatpush1.bf16.msra.mxu1 %v5273_v34  ;;  %4648 = vmatprep.subr.bf16.mxu0 %v5248_v36  ;;  %v2182_v34 = vld [vmem:[%s7013_s15 + $0x6f0] sm:$0xff] }
 0x4b7   : > { %4689 = vmatprep.subr.bf16.mxu1 %v5250_v37  ;;  %v2194_v36 = vld [vmem:[%s7013_s15 + $0x750] sm:$0xff]  ;;  %v2183_v37 = vld [vmem:[%s7013_s15 + $0x6f8] sm:$0xff] }
 0x4b8   : > { %v5440_v41 = vcombine.high %v2182_v34, %v2194_v36  ;;  %v5439_v47 = vcombine.low %v2182_v34, %v2194_v36  ;;  %v5441_v48 = vcombine.low %v2183_v37, %v2195_v38  ;;  %v2065_v34 = vld [vmem:[%s7013_s15 + $0x348] sm:$0xff] }
 0x4b9   : > { %4649 = vmatpush1.bf16.msra.mxu0 %v5247_v42  ;;  %v5442_v42 = vcombine.high %v2183_v37, %v2195_v38  ;;  %v2077_v36 = vld [vmem:[%s7013_s15 + $0x3a8] sm:$0xff] }
 0x4ba   : > { %4690 = vmatpush1.bf16.msra.mxu1 %v5249_v43  ;;  %4650 = vmatprep.subr.bf16.mxu0 %v5224_v44  ;;  %v2158_v43 = vld [vmem:[%s7013_s15 + $0x630] sm:$0xff] }
 0x4bb   : > { %4691 = vmatprep.subr.bf16.mxu1 %v5226_v45  ;;  %v2170_v44 = vld [vmem:[%s7013_s15 + $0x690] sm:$0xff]  ;;  %v2159_v45 = vld [vmem:[%s7013_s15 + $0x638] sm:$0xff] }
 0x4bc   : > { %v5416_v49 = vcombine.high %v2158_v43, %v2170_v44  ;;  %v5415_v56 = vcombine.low %v2158_v43, %v2170_v44  ;;  %v5417_v59 = vcombine.low %v2159_v45, %v2171_v46  ;;  %v2040_v43 = vld [vmem:[%s7013_s15 + $0x280] sm:$0xff] }
 0x4bd   : > { %4651 = vmatpush1.bf16.msra.mxu0 %v5223_v50  ;;  %v5418_v50 = vcombine.high %v2159_v45, %v2171_v46  ;;  %v2052_v44 = vld [vmem:[%s7013_s15 + $0x2e0] sm:$0xff]  ;;  %v2041_v45 = vld [vmem:[%s7013_s15 + $0x288] sm:$0xff] }
 0x4be   : > { %4692 = vmatpush1.bf16.msra.mxu1 %v5225_v51  ;;  %4652 = vmatprep.subr.bf16.mxu0 %v5584_v52  ;;  %v2136_v51 = vld [vmem:[%s7013_s15 + $0x580] sm:$0xff]  ;;  %v2053_v46 = vld [vmem:[%s7013_s15 + $0x2e8] sm:$0xff] }
 0x4bf   : > { %4693 = vmatprep.subr.bf16.mxu1 %v5586_v53  ;;  %v2148_v52 = vld [vmem:[%s7013_s15 + $0x5e0] sm:$0xff]  ;;  %v2137_v53 = vld [vmem:[%s7013_s15 + $0x588] sm:$0xff] }
 0x4c0   : > { %v5395_v3 = vcombine.low %v2136_v51, %v2148_v52 }
 0x4c1   : > { %4653 = vmatpush2.bf16.msra.mxu0 %v5583_v61  ;;  %v5396_v61 = vcombine.high %v2136_v51, %v2148_v52  ;;  %v5300_v51 = vcombine.high %v2040_v43, %v2052_v44  ;;  %v5302_v52 = vcombine.high %v2041_v45, %v2053_v46 }
 0x4c2   : > { %4694 = vmatpush2.bf16.msra.mxu1 %v5585_v62  ;;  %4654 = vmatprep.subr.bf16.mxu0 %v5560_v63  ;;  %v7328_v62 = vld [vmem:[%s7320_s26] sm:$0xff]  ;;  %v5398_v63 = vcombine.high %v2137_v53, %v2149_v55 }
 0x4c3   : > { %4695 = vmatprep.subr.bf16.mxu1 %v5562_v0  ;;  %v7331_v0 = vsub.s32 3, %v6987_v32  ;;  %v2353_v4 = vrot.slane %v7328_v62, %v6990_v33  ;;  %v2357_v9 = vrot.slane %v7328_v62, %v6996_v35 }
 0x4c5   : > { %4655 = vmatpush2.bf16.msra.mxu0 %v5559_v5  ;;  %v2361_v5 = vrot.slane %v7328_v62, %v7325_v58  ;;  %v2365_v10 = vrot.slane %v7328_v62, %v7331_v0 }
 0x4c6   : > { %4696 = vmatpush2.bf16.msra.mxu1 %v5561_v6  ;;  %4656 = vmatprep.subr.bf16.mxu0 %v5536_v7  ;;  %v2113_v6 = vld [vmem:[%s7013_s15 + $0x4c8] sm:$0xff] }
 0x4c7   : > { %4697 = vmatprep.subr.bf16.mxu1 %v5538_v8  ;;  %v2125_v7 = vld [vmem:[%s7013_s15 + $0x528] sm:$0xff]  ;;  %v5397_v8 = vcombine.low %v2137_v53, %v2149_v55  ;;  %v2016_v53 = vld [vmem:[%s7013_s15 + $0x1c0] sm:$0xff] }
 0x4c8   : > { %v2028_v55 = vld [vmem:[%s7013_s15 + $0x220] sm:$0xff] }
 0x4c9   : > { %4657 = vmatpush2.bf16.msra.mxu0 %v5535_v13  ;;  %v2100_v13 = vld [vmem:[%s7013_s15 + $0x460] sm:$0xff] }
 0x4ca   : > { %4698 = vmatpush2.bf16.msra.mxu1 %v5537_v14  ;;  %4658 = vmatprep.subr.bf16.mxu0 %v5512_v15  ;;  %v5348_v22 = vcombine.high %v2088_v12, %v2100_v13  ;;  %v5347_v37 = vcombine.low %v2088_v12, %v2100_v13 }
 0x4cb   : > { %4699 = vmatprep.subr.bf16.mxu1 %v5514_v16  ;;  %v5374_v16 = vcombine.high %v2113_v6, %v2125_v7 }
 0x4cd   : > { %4659 = vmatpush2.bf16.msra.mxu0 %v5511_v18  ;;  %v5371_v18 = vcombine.low %v2112_v1, %v2124_v2  ;;  %v5301_v1 = vcombine.low %v2041_v45, %v2053_v46  ;;  %v5276_v2 = vcombine.high %v2016_v53, %v2028_v55 }
 0x4ce   : > { %4700 = vmatpush2.bf16.msra.mxu1 %v5513_v19  ;;  %4660 = vmatprep.subr.bf16.mxu0 %v5488_v20 }
 0x4cf   : > { %4701 = vmatprep.subr.bf16.mxu1 %v5490_v21  ;;  %v5373_v21 = vcombine.low %v2113_v6, %v2125_v7  ;;  %v1993_v7 = vld [vmem:[%s7013_s15 + $0x108] sm:$0xff] }
 0x4d1   : > { %4661 = vmatpush2.bf16.msra.mxu0 %v5487_v26  ;;  %v2064_v26 = vld [vmem:[%s7013_s15 + $0x340] sm:$0xff] }
 0x4d2   : > { %4702 = vmatpush2.bf16.msra.mxu1 %v5489_v27  ;;  %4662 = vmatprep.subr.bf16.mxu0 %v5464_v28  ;;  %v2076_v27 = vld [vmem:[%s7013_s15 + $0x3a0] sm:$0xff] }
 0x4d3   : > { %4703 = vmatprep.subr.bf16.mxu1 %v5466_v29 }
 0x4d5   : > { %4663 = vmatpush2.bf16.msra.mxu0 %v5463_v39 }
 0x4d6   : > { %4704 = vmatpush2.bf16.msra.mxu1 %v5465_v40  ;;  %4664 = vmatprep.subr.bf16.mxu0 %v5440_v41  ;;  %v5349_v40 = vcombine.low %v2089_v54, %v2101_v57  ;;  %v5324_v41 = vcombine.high %v2064_v26, %v2076_v27  ;;  %v1968_v57 = vld [vmem:[%s7013_s15 + $0x40] sm:$0xff] }
 0x4d7   : > { %4705 = vmatprep.subr.bf16.mxu1 %v5442_v42  ;;  %v5326_v42 = vcombine.high %v2065_v34, %v2077_v36 }
 0x4d9   : > { %4665 = vmatpush2.bf16.msra.mxu0 %v5439_v47  ;;  %v5860_v47 = vmov 1983009808  }
 0x4da   : > { %4706 = vmatpush2.bf16.msra.mxu1 %v5441_v48  ;;  %4666 = vmatprep.subr.bf16.mxu0 %v5416_v49  ;;  %v4933_v48 = vunpack.c.l.s4 %v5860_v47  ;;  %v5323_v49 = vcombine.low %v2064_v26, %v2076_v27  ;;  %v2328_v26 = vld [vmem:[%s7013_s15 + $0xb80] sm:$0xff] }
 0x4db   : > { %4707 = vmatprep.subr.bf16.mxu1 %v5418_v50  ;;  %v5325_v50 = vcombine.low %v2065_v34, %v2077_v36  ;;  %v2340_v27 = vld [vmem:[%s7013_s15 + $0xbe0] sm:$0xff]  ;;  %v2341_v34 = vld [vmem:[%s7013_s15 + $0xbe8] sm:$0xff] }
 0x4dd   : > { %4667 = vmatpush2.bf16.msra.mxu0 %v5415_v56  ;;  %v2017_v56 = vld [vmem:[%s7013_s15 + $0x1c8] sm:$0xff] }
 0x4de   : > { %4708 = vmatpush2.bf16.msra.mxu1 %v5417_v59  ;;  %4718 = vmatprep.subr.bf16.mxu0 %v5396_v61  ;;  %v2029_v59 = vld [vmem:[%s7013_s15 + $0x228] sm:$0xff]  ;;  %v4934_v61 = vunpack.c.0.s8 %v4933_v48  ;;  %v2280_v48 = vld [vmem:[%s7013_s15 + $0xa00] sm:$0xff] }
 0x4df   : > { %4759 = vmatprep.subr.bf16.mxu1 %v5398_v63  ;;  %v5299_v63 = vcombine.low %v2040_v43, %v2052_v44  ;;  %v5277_v13 = vcombine.low %v2017_v56, %v2029_v59  ;;  %v2317_v43 = vld [vmem:[%s7013_s15 + $0xb28] sm:$0xff]  ;;  %v5587_v44 = vcombine.low %v2328_v26, %v2340_v27 }
 0x4e0   : > { %4669 = vmatmul.mubr.bf16.vlgmr.msra.gmra.mxu0 %v7110_v31  ;;  %v4424_v14 = vpop.f32.mrf.mxu0  ;;  %v4465_v15 = vpop.f32.mrf.mxu1 }
 0x4e1   : > { %4710 = vmatmul.mubr.bf16.vlgmr.msra.gmra.mxu1 %v7110_v31  ;;  %v4425_v60 = vadd.f32 %v4424_v14, %v2353_v4  ;;  %v4466_v17 = vadd.f32 %v4465_v15, %v2361_v5  ;;  %4719 = vmatpush1.bf16.msra.mxu0 %v5395_v3  ;;  %v5278_v3 = vcombine.high %v2017_v56, %v2029_v59  ;;  %v1992_v4 = vld [vmem:[%s7013_s15 + $0x100] sm:$0xff] }
 0x4e2   : > { %4750 = vmatprep.mubr.bf16.mxu0 %v7108_v30  ;;  %4760 = vmatpush1.bf16.msra.mxu1 %v5397_v8  ;;  %v4426_v19 = vpop.f32.mrf.mxu0  ;;  %v4467_v20 = vpop.f32.mrf.mxu1  ;;  %v2004_v5 = vld [vmem:[%s7013_s15 + $0x160] sm:$0xff]  ;;  %v2005_v8 = vld [vmem:[%s7013_s15 + $0x168] sm:$0xff] }
 0x4e3   : > { %5785 = vtanh.f32 %v4425_v60  ;;  %4791 = vmatprep.mubr.bf16.mxu1 %v7108_v30  ;;  %v4427_v23 = vadd.f32 %v4426_v19, %v2357_v9  ;;  %v4468_v24 = vadd.f32 %v4467_v20, %v2365_v10  ;;  %4720 = vmatprep.subr.bf16.mxu0 %v5372_v11  ;;  %v7370_v10 = vsub.s32 %v4934_v61, %v6987_v32  ;;  %v1980_v60 = vld [vmem:[%s7013_s15 + $0xa0] sm:$0xff]  ;;  %v1981_v19 = vld [vmem:[%s7013_s15 + $0xa8] sm:$0xff] }
 0x4e4   : > { %5787 = vtanh.f32 %v4466_v17  ;;  %4761 = vmatprep.subr.bf16.mxu1 %v5374_v16  ;;  %v4428_v28 = vpop.f32.mrf.mxu0  ;;  %v4469_v29 = vpop.f32.mrf.mxu1  ;;  %v5275_v11 = vcombine.low %v2016_v53, %v2028_v55  ;;  %v5252_v14 = vcombine.high %v1992_v4, %v2004_v5  ;;  %v5254_v54 = vcombine.high %v1993_v7, %v2005_v8  ;;  %v2256_v59 = vld [vmem:[%s7013_s15 + $0x940] sm:$0xff] }
 0x4e5   : > { %5789 = vtanh.f32 %v4427_v23  ;;  %4721 = vmatpush1.bf16.msra.mxu0 %v5371_v18  ;;  %v1969_v18 = vld [vmem:[%s7013_s15 + $0x48] sm:$0xff]  ;;  %v5253_v23 = vcombine.low %v1993_v7, %v2005_v8  ;;  %v5227_v36 = vcombine.low %v1968_v57, %v1980_v60  ;;  %v2268_v61 = vld [vmem:[%s7013_s15 + $0x9a0] sm:$0xff] }
 0x4e6   : > { %5791 = vtanh.f32 %v4468_v24  ;;  %4762 = vmatpush1.bf16.msra.mxu1 %v5373_v21  ;;  %v4429_v38 = vpop.f32.mrf.mxu0  ;;  %v4470_v39 = vpop.f32.mrf.mxu1  ;;  %4722 = vmatprep.subr.bf16.mxu0 %v5348_v22  ;;  %v5251_v21 = vcombine.low %v1992_v4, %v2004_v5  ;;  %v5228_v24 = vcombine.high %v1968_v57, %v1980_v60  ;;  %v2329_v29 = vld [vmem:[%s7013_s15 + $0xb88] sm:$0xff]  ;;  %v5516_v4 = vcombine.high %v2256_v59, %v2268_v61  ;;  %v2244_v7 = vld [vmem:[%s7013_s15 + $0x8e0] sm:$0xff] }
 0x4e7   : > { %4763 = vmatprep.subr.bf16.mxu1 %v5350_v25  ;;  %v5230_v25 = vcombine.high %v1969_v18, %v1981_v19  ;;  %v5588_v38 = vcombine.high %v2328_v26, %v2340_v27  ;;  %v5590_v39 = vcombine.high %v2329_v29, %v2341_v34  ;;  %v5589_v45 = vcombine.low %v2329_v29, %v2341_v34  ;;  %v2233_v8 = vld [vmem:[%s7013_s15 + $0x888] sm:$0xff]  ;;  %v2172_v29 = vld [vmem:[%s7013_s15 + $0x6a0] sm:$0xff] }
 0x4e8   : > { %v2221_v57 = vld [vmem:[%s7013_s15 + $0x828] sm:$0xff] }
 0x4e9   : > { %4723 = vmatpush1.bf16.msra.mxu0 %v5347_v37  ;;  %v5229_v37 = vcombine.low %v1969_v18, %v1981_v19  ;;  %v2161_v34 = vld [vmem:[%s7013_s15 + $0x648] sm:$0xff] }
 0x4ea   : > { %4764 = vmatpush1.bf16.msra.mxu1 %v5349_v40  ;;  %4724 = vmatprep.subr.bf16.mxu0 %v5324_v41  ;;  %v2304_v40 = vld [vmem:[%s7013_s15 + $0xac0] sm:$0xff] }
 0x4eb   : > { %4765 = vmatprep.subr.bf16.mxu1 %v5326_v42  ;;  %v2316_v41 = vld [vmem:[%s7013_s15 + $0xb20] sm:$0xff]  ;;  %v2305_v42 = vld [vmem:[%s7013_s15 + $0xac8] sm:$0xff] }
 0x4ec   : > { %v5564_v46 = vcombine.high %v2304_v40, %v2316_v41  ;;  %v5566_v47 = vcombine.high %v2305_v42, %v2317_v43  ;;  %v5565_v53 = vcombine.low %v2305_v42, %v2317_v43  ;;  %v2150_v42 = vld [vmem:[%s7013_s15 + $0x5f0] sm:$0xff]  ;;  %v2139_v43 = vld [vmem:[%s7013_s15 + $0x598] sm:$0xff] }
 0x4ed   : > { %4725 = vmatpush1.bf16.msra.mxu0 %v5323_v49  ;;  %v2292_v49 = vld [vmem:[%s7013_s15 + $0xa60] sm:$0xff] }
 0x4ee   : > { %4766 = vmatpush1.bf16.msra.mxu1 %v5325_v50  ;;  %4726 = vmatprep.subr.bf16.mxu0 %v5300_v51  ;;  %v2281_v50 = vld [vmem:[%s7013_s15 + $0xa08] sm:$0xff]  ;;  %v5540_v55 = vcombine.high %v2280_v48, %v2292_v49 }
 0x4ef   : > { %4767 = vmatprep.subr.bf16.mxu1 %v5302_v52  ;;  %v2293_v51 = vld [vmem:[%s7013_s15 + $0xa68] sm:$0xff]  ;;  %v5563_v52 = vcombine.low %v2304_v40, %v2316_v41  ;;  %v2138_v41 = vld [vmem:[%s7013_s15 + $0x590] sm:$0xff] }
 0x4f0   : > { %v5786_v6 = vpop.eup %5785  ;;  %v5542_v56 = vcombine.high %v2281_v50, %v2293_v51 }
 0x4f1   : > { %v5788_v9 = vpop.eup %5787  ;;  %4727 = vmatpush1.bf16.msra.mxu0 %v5299_v63  ;;  %v2257_v63 = vld [vmem:[%s7013_s15 + $0x948] sm:$0xff] }
 0x4f2   : > { %v5790_v12 = vpop.eup %5789  ;;  %4768 = vmatpush1.bf16.msra.mxu1 %v5301_v1  ;;  %4728 = vmatprep.subr.bf16.mxu0 %v5276_v2  ;;  %v2269_v1 = vld [vmem:[%s7013_s15 + $0x9a8] sm:$0xff]  ;;  %v5539_v2 = vcombine.low %v2280_v48, %v2292_v49  ;;  %v5400_v49 = vcombine.high %v2138_v41, %v2150_v42 }
 0x4f3   : > { %v5792_v15 = vpop.eup %5791  ;;  %v4930_v16 = vcombine.low %v5786_v6, %v5790_v12  ;;  %4769 = vmatprep.subr.bf16.mxu1 %v5278_v3  ;;  %v5541_v3 = vcombine.low %v2281_v50, %v2293_v51  ;;  %v5518_v5 = vcombine.high %v2257_v63, %v2269_v1  ;;  %v2232_v6 = vld [vmem:[%s7013_s15 + $0x880] sm:$0xff]  ;;  %v5517_v12 = vcombine.low %v2257_v63, %v2269_v1  ;;  %v2115_v63 = vld [vmem:[%s7013_s15 + $0x4d8] sm:$0xff] }
 0x4f4   : > { %v4931_v17 = vcombine.low %v5788_v9, %v5792_v15  ;;  %v2245_v9 = vld [vmem:[%s7013_s15 + $0x8e8] sm:$0xff]  ;;  %v2208_v15 = vld [vmem:[%s7013_s15 + $0x7c0] sm:$0xff]  ;;  %v5491_v60 = vcombine.low %v2232_v6, %v2244_v7  ;;  %v7428_v51 = vsub.s32 5, %v6987_v32  ;;  %v2127_v1 = vld [vmem:[%s7013_s15 + $0x538] sm:$0xff] }
 0x4f5   : > { %v4938_v20 = vrot.slane %v4930_v16, %v7370_v10  ;;  %4729 = vmatpush1.bf16.msra.mxu0 %v5275_v11  ;;  %v5515_v11 = vcombine.low %v2256_v59, %v2268_v61  ;;  %v2220_v16 = vld [vmem:[%s7013_s15 + $0x820] sm:$0xff]  ;;  %v5399_v61 = vcombine.low %v2138_v41, %v2150_v42 }
 0x4f6   : > { %v4945_v22 = vrot.slane %v4931_v17, %v7370_v10  ;;  %4770 = vmatpush1.bf16.msra.mxu1 %v5277_v13  ;;  %4730 = vmatprep.subr.bf16.mxu0 %v5252_v14  ;;  %v5492_v13 = vcombine.high %v2232_v6, %v2244_v7  ;;  %v5494_v14 = vcombine.high %v2233_v8, %v2245_v9  ;;  %v2102_v6 = vld [vmem:[%s7013_s15 + $0x470] sm:$0xff] }
 0x4f7   : > { %4771 = vmatprep.subr.bf16.mxu1 %v5254_v54  ;;  %v2209_v54 = vld [vmem:[%s7013_s15 + $0x7c8] sm:$0xff]  ;;  %v5493_v17 = vcombine.low %v2233_v8, %v2245_v9  ;;  %v5468_v18 = vcombine.high %v2208_v15, %v2220_v16  ;;  %v5378_v9 = vcombine.high %v2115_v63, %v2127_v1 }
 0x4f8   : > { %v4946_v28 = vcombine.low %v4938_v20, %v4945_v22  ;;  %v5470_v19 = vcombine.high %v2209_v54, %v2221_v57  ;;  %v2184_v20 = vld [vmem:[%s7013_s15 + $0x700] sm:$0xff]  ;;  %v2185_v22 = vld [vmem:[%s7013_s15 + $0x708] sm:$0xff] }
 0x4f9   : > { %4731 = vmatpush1.bf16.msra.mxu0 %v5251_v21  ;;  %v2196_v21 = vld [vmem:[%s7013_s15 + $0x760] sm:$0xff] }
 0x4fa   : > { %5038 = vst [vmem:[%s7382_s30] sm:$0xff] %v4946_v28  ;;  %4772 = vmatpush1.bf16.msra.mxu1 %v5253_v23  ;;  %4732 = vmatprep.subr.bf16.mxu0 %v5228_v24  ;;  %v2197_v23 = vld [vmem:[%s7013_s15 + $0x768] sm:$0xff]  ;;  %v5467_v24 = vcombine.low %v2208_v15, %v2220_v16  ;;  %v5444_v26 = vcombine.high %v2184_v20, %v2196_v21  ;;  %v2160_v28 = vld [vmem:[%s7013_s15 + $0x640] sm:$0xff] }
 0x4fb   : > { %4773 = vmatprep.subr.bf16.mxu1 %v5230_v25  ;;  %v5469_v25 = vcombine.low %v2209_v54, %v2221_v57  ;;  %v5446_v27 = vcombine.high %v2185_v22, %v2197_v23  ;;  %v5377_v54 = vcombine.low %v2115_v63, %v2127_v1  ;;  %v1995_v63 = vld [vmem:[%s7013_s15 + $0x118] sm:$0xff] }
 0x4fc   : > { %v2007_v1 = vld [vmem:[%s7013_s15 + $0x178] sm:$0xff] }
 0x4fd   : > { %4733 = vmatpush1.bf16.msra.mxu0 %v5227_v36  ;;  %v2173_v36 = vld [vmem:[%s7013_s15 + $0x6a8] sm:$0xff] }
 0x4fe   : > { %4774 = vmatpush1.bf16.msra.mxu1 %v5229_v37  ;;  %4734 = vmatprep.subr.bf16.mxu0 %v5588_v38  ;;  %v5443_v37 = vcombine.low %v2184_v20, %v2196_v21  ;;  %v5445_v38 = vcombine.low %v2185_v22, %v2197_v23  ;;  %v5422_v40 = vcombine.high %v2161_v34, %v2173_v36  ;;  %v2078_v20 = vld [vmem:[%s7013_s15 + $0x3b0] sm:$0xff]  ;;  %v2067_v23 = vld [vmem:[%s7013_s15 + $0x358] sm:$0xff] }
 0x4ff   : > { %4775 = vmatprep.subr.bf16.mxu1 %v5590_v39  ;;  %v5420_v39 = vcombine.high %v2160_v28, %v2172_v29  ;;  %v5421_v48 = vcombine.low %v2161_v34, %v2173_v36  ;;  %v2042_v34 = vld [vmem:[%s7013_s15 + $0x290] sm:$0xff] }
 0x500   : > { %v2054_v36 = vld [vmem:[%s7013_s15 + $0x2f0] sm:$0xff] }
 0x501   : > { %4735 = vmatpush2.bf16.msra.mxu0 %v5587_v44  ;;  %v2151_v44 = vld [vmem:[%s7013_s15 + $0x5f8] sm:$0xff]  ;;  %v5304_v41 = vcombine.high %v2042_v34, %v2054_v36 }
 0x502   : > { %4776 = vmatpush2.bf16.msra.mxu1 %v5589_v45  ;;  %4736 = vmatprep.subr.bf16.mxu0 %v5564_v46  ;;  %v5419_v45 = vcombine.low %v2160_v28, %v2172_v29  ;;  %v7422_v46 = vsub.s32 4, %v6987_v32  ;;  %v5402_v50 = vcombine.high %v2139_v43, %v2151_v44 }
 0x503   : > { %4777 = vmatprep.subr.bf16.mxu1 %v5566_v47  ;;  %v7425_v47 = vsub.s32 6, %v6987_v32 }
 0x505   : > { %4737 = vmatpush2.bf16.msra.mxu0 %v5563_v52  ;;  %v7431_v52 = vsub.s32 7, %v6987_v32  ;;  %v2377_v59 = vrot.slane %v7328_v62, %v7425_v47  ;;  %v5401_v32 = vcombine.low %v2139_v43, %v2151_v44  ;;  %v2018_v43 = vld [vmem:[%s7013_s15 + $0x1d0] sm:$0xff] }
 0x506   : > { %4778 = vmatpush2.bf16.msra.mxu1 %v5565_v53  ;;  %4738 = vmatprep.subr.bf16.mxu0 %v5540_v55  ;;  %v2114_v53 = vld [vmem:[%s7013_s15 + $0x4d0] sm:$0xff] }
 0x507   : > { %4779 = vmatprep.subr.bf16.mxu1 %v5542_v56  ;;  %v2126_v55 = vld [vmem:[%s7013_s15 + $0x530] sm:$0xff]  ;;  %v2369_v56 = vrot.slane %v7328_v62, %v7422_v46 }
 0x508   : > { %v5375_v15 = vcombine.low %v2114_v53, %v2126_v55  ;;  %v2030_v44 = vld [vmem:[%s7013_s15 + $0x230] sm:$0xff] }
 0x509   : > { %4739 = vmatpush2.bf16.msra.mxu0 %v5539_v2  ;;  %v2373_v2 = vrot.slane %v7328_v62, %v7428_v51 }
 0x50a   : > { %4780 = vmatpush2.bf16.msra.mxu1 %v5541_v3  ;;  %4740 = vmatprep.subr.bf16.mxu0 %v5516_v4  ;;  %v2381_v3 = vrot.slane %v7328_v62, %v7431_v52  ;;  %v5376_v4 = vcombine.high %v2114_v53, %v2126_v55  ;;  %v5280_v53 = vcombine.high %v2018_v43, %v2030_v44 }
 0x50b   : > { %4781 = vmatprep.subr.bf16.mxu1 %v5518_v5  ;;  %v2090_v5 = vld [vmem:[%s7013_s15 + $0x410] sm:$0xff] }
 0x50c   : > { %v5352_v57 = vcombine.high %v2090_v5, %v2102_v6 }
 0x50d   : > { %4741 = vmatpush2.bf16.msra.mxu0 %v5515_v11  ;;  %v2091_v11 = vld [vmem:[%s7013_s15 + $0x418] sm:$0xff] }
 0x50e   : > { %4782 = vmatpush2.bf16.msra.mxu1 %v5517_v12  ;;  %4742 = vmatprep.subr.bf16.mxu0 %v5492_v13  ;;  %v2103_v12 = vld [vmem:[%s7013_s15 + $0x478] sm:$0xff] }
 0x50f   : > { %4783 = vmatprep.subr.bf16.mxu1 %v5494_v14 }
 0x511   : > { %4743 = vmatpush2.bf16.msra.mxu0 %v5491_v60 }
 0x512   : > { %4784 = vmatpush2.bf16.msra.mxu1 %v5493_v17  ;;  %4744 = vmatprep.subr.bf16.mxu0 %v5468_v18  ;;  %v5354_v18 = vcombine.high %v2091_v11, %v2103_v12 }
 0x513   : > { %4785 = vmatprep.subr.bf16.mxu1 %v5470_v19  ;;  %v2066_v19 = vld [vmem:[%s7013_s15 + $0x350] sm:$0xff] }
 0x514   : > { %v5328_v28 = vcombine.high %v2066_v19, %v2078_v20 }
 0x515   : > { %4745 = vmatpush2.bf16.msra.mxu0 %v5467_v24  ;;  %v2079_v24 = vld [vmem:[%s7013_s15 + $0x3b8] sm:$0xff] }
 0x516   : > { %4786 = vmatpush2.bf16.msra.mxu1 %v5469_v25  ;;  %4746 = vmatprep.subr.bf16.mxu0 %v5444_v26  ;;  %v5351_v25 = vcombine.low %v2090_v5, %v2102_v6  ;;  %v5330_v29 = vcombine.high %v2067_v23, %v2079_v24 }
 0x517   : > { %4787 = vmatprep.subr.bf16.mxu1 %v5446_v27  ;;  %v5353_v27 = vcombine.low %v2091_v11, %v2103_v12  ;;  %v1982_v11 = vld [vmem:[%s7013_s15 + $0xb0] sm:$0xff] }
 0x519   : > { %4747 = vmatpush2.bf16.msra.mxu0 %v5443_v37  ;;  %v2043_v37 = vld [vmem:[%s7013_s15 + $0x298] sm:$0xff] }
 0x51a   : > { %4788 = vmatpush2.bf16.msra.mxu1 %v5445_v38  ;;  %4748 = vmatprep.subr.bf16.mxu0 %v5420_v39  ;;  %v2055_v38 = vld [vmem:[%s7013_s15 + $0x2f8] sm:$0xff]  ;;  %v5327_v39 = vcombine.low %v2066_v19, %v2078_v20 }
 0x51b   : > { %4789 = vmatprep.subr.bf16.mxu1 %v5422_v40  ;;  %v5329_v40 = vcombine.low %v2067_v23, %v2079_v24  ;;  %v5306_v42 = vcombine.high %v2043_v37, %v2055_v38  ;;  %v2331_v20 = vld [vmem:[%s7013_s15 + $0xb98] sm:$0xff] }
 0x51d   : > { %4749 = vmatpush2.bf16.msra.mxu0 %v5419_v45  ;;  %v2019_v45 = vld [vmem:[%s7013_s15 + $0x1d8] sm:$0xff] }
 0x51e   : > { %4790 = vmatpush2.bf16.msra.mxu1 %v5421_v48  ;;  %4800 = vmatprep.subr.bf16.mxu0 %v5400_v49  ;;  %v2031_v48 = vld [vmem:[%s7013_s15 + $0x238] sm:$0xff]  ;;  %v5303_v49 = vcombine.low %v2042_v34, %v2054_v36 }
 0x51f   : > { %4841 = vmatprep.subr.bf16.mxu1 %v5402_v50  ;;  %v5305_v50 = vcombine.low %v2043_v37, %v2055_v38  ;;  %v5282_v55 = vcombine.high %v2019_v45, %v2031_v48  ;;  %v2282_v38 = vld [vmem:[%s7013_s15 + $0xa10] sm:$0xff] }
 0x520   : > { %v4506_v7 = vpop.f32.mrf.mxu0  ;;  %v4547_v8 = vpop.f32.mrf.mxu1  ;;  %4751 = vmatmul.mubr.bf16.vlgmr.msra.gmra.mxu0 %v7110_v31 }
 0x521   : > { %v4507_v13 = vadd.f32 %v4506_v7, %v2369_v56  ;;  %v4548_v14 = vadd.f32 %v4547_v8, %v2377_v59  ;;  %4792 = vmatmul.mubr.bf16.vlgmr.msra.gmra.mxu1 %v7110_v31  ;;  %4801 = vmatpush1.bf16.msra.mxu0 %v5399_v61  ;;  %v1994_v56 = vld [vmem:[%s7013_s15 + $0x110] sm:$0xff]  ;;  %v5258_v8 = vcombine.high %v1995_v63, %v2007_v1 }
 0x522   : > { %4832 = vmatprep.mubr.bf16.mxu0 %v7108_v30  ;;  %4842 = vmatpush1.bf16.msra.mxu1 %v5401_v32  ;;  %v4508_v62 = vpop.f32.mrf.mxu0  ;;  %v4549_v16 = vpop.f32.mrf.mxu1  ;;  %v2006_v59 = vld [vmem:[%s7013_s15 + $0x170] sm:$0xff] }
 0x523   : > { %5793 = vtanh.f32 %v4507_v13  ;;  %4873 = vmatprep.mubr.bf16.mxu1 %v7108_v30  ;;  %v4509_v60 = vadd.f32 %v4508_v62, %v2373_v2  ;;  %v4550_v17 = vadd.f32 %v4549_v16, %v2381_v3  ;;  %4802 = vmatprep.subr.bf16.mxu0 %v5376_v4  ;;  %v5279_v2 = vcombine.low %v2018_v43, %v2030_v44  ;;  %v1971_v13 = vld [vmem:[%s7013_s15 + $0x58] sm:$0xff] }
 0x524   : > { %5795 = vtanh.f32 %v4548_v14  ;;  %v4510_v21 = vpop.f32.mrf.mxu0  ;;  %v4551_v22 = vpop.f32.mrf.mxu1  ;;  %4843 = vmatprep.subr.bf16.mxu1 %v5378_v9  ;;  %v5281_v4 = vcombine.low %v2019_v45, %v2031_v48  ;;  %v5256_v5 = vcombine.high %v1994_v56, %v2006_v59  ;;  %v1970_v9 = vld [vmem:[%s7013_s15 + $0x50] sm:$0xff]  ;;  %v1983_v14 = vld [vmem:[%s7013_s15 + $0xb8] sm:$0xff]  ;;  %v5255_v62 = vcombine.low %v1994_v56, %v2006_v59 }
 0x525   : > { %5797 = vtanh.f32 %v4509_v60  ;;  %4803 = vmatpush1.bf16.msra.mxu0 %v5375_v15  ;;  %v5234_v60 = vcombine.high %v1971_v13, %v1983_v14  ;;  %v2343_v21 = vld [vmem:[%s7013_s15 + $0xbf8] sm:$0xff]  ;;  %v5231_v22 = vcombine.low %v1970_v9, %v1982_v11  ;;  %v5233_v23 = vcombine.low %v1971_v13, %v1983_v14  ;;  %v2258_v48 = vld [vmem:[%s7013_s15 + $0x950] sm:$0xff] }
 0x526   : > { %5799 = vtanh.f32 %v4550_v17  ;;  %4844 = vmatpush1.bf16.msra.mxu1 %v5377_v54  ;;  %v4511_v30 = vpop.f32.mrf.mxu0  ;;  %v4552_v26 = vpop.f32.mrf.mxu1  ;;  %4804 = vmatprep.subr.bf16.mxu0 %v5352_v57  ;;  %v5257_v54 = vcombine.low %v1995_v63, %v2007_v1  ;;  %v5232_v57 = vcombine.high %v1970_v9, %v1982_v11  ;;  %v2330_v17 = vld [vmem:[%s7013_s15 + $0xb90] sm:$0xff]  ;;  %v5593_v34 = vcombine.low %v2331_v20, %v2343_v21  ;;  %v2211_v9 = vld [vmem:[%s7013_s15 + $0x7d8] sm:$0xff] }
 0x527   : > { %4845 = vmatprep.subr.bf16.mxu1 %v5354_v18  ;;  %v2342_v18 = vld [vmem:[%s7013_s15 + $0xbf0] sm:$0xff]  ;;  %v2223_v11 = vld [vmem:[%s7013_s15 + $0x838] sm:$0xff] }
 0x528   : > { %v5592_v24 = vcombine.high %v2330_v17, %v2342_v18  ;;  %v2306_v30 = vld [vmem:[%s7013_s15 + $0xad0] sm:$0xff] }
 0x529   : > { %4805 = vmatpush1.bf16.msra.mxu0 %v5351_v25  ;;  %v5594_v25 = vcombine.high %v2331_v20, %v2343_v21  ;;  %v2318_v26 = vld [vmem:[%s7013_s15 + $0xb30] sm:$0xff] }
 0x52a   : > { %4846 = vmatpush1.bf16.msra.mxu1 %v5353_v27  ;;  %4806 = vmatprep.subr.bf16.mxu0 %v5328_v28  ;;  %v2307_v27 = vld [vmem:[%s7013_s15 + $0xad8] sm:$0xff]  ;;  %v5568_v36 = vcombine.high %v2306_v30, %v2318_v26  ;;  %v2234_v63 = vld [vmem:[%s7013_s15 + $0x890] sm:$0xff] }
 0x52b   : > { %4847 = vmatprep.subr.bf16.mxu1 %v5330_v29  ;;  %v2319_v28 = vld [vmem:[%s7013_s15 + $0xb38] sm:$0xff]  ;;  %v5591_v29 = vcombine.low %v2330_v17, %v2342_v18  ;;  %v2246_v1 = vld [vmem:[%s7013_s15 + $0x8f0] sm:$0xff]  ;;  %v5473_v17 = vcombine.low %v2211_v9, %v2223_v11 }
 0x52c   : > { %v5570_v37 = vcombine.high %v2307_v27, %v2319_v28  ;;  %v5569_v43 = vcombine.low %v2307_v27, %v2319_v28  ;;  %v2162_v20 = vld [vmem:[%s7013_s15 + $0x650] sm:$0xff] }
 0x52d   : > { %4807 = vmatpush1.bf16.msra.mxu0 %v5327_v39  ;;  %v2294_v39 = vld [vmem:[%s7013_s15 + $0xa70] sm:$0xff] }
 0x52e   : > { %4848 = vmatpush1.bf16.msra.mxu1 %v5329_v40  ;;  %4808 = vmatprep.subr.bf16.mxu0 %v5304_v41  ;;  %v2283_v40 = vld [vmem:[%s7013_s15 + $0xa18] sm:$0xff]  ;;  %v5544_v44 = vcombine.high %v2282_v38, %v2294_v39  ;;  %v2174_v21 = vld [vmem:[%s7013_s15 + $0x6b0] sm:$0xff] }
 0x52f   : > { %4849 = vmatprep.subr.bf16.mxu1 %v5306_v42  ;;  %v2295_v41 = vld [vmem:[%s7013_s15 + $0xa78] sm:$0xff]  ;;  %v5567_v42 = vcombine.low %v2306_v30, %v2318_v26  ;;  %v5424_v30 = vcombine.high %v2162_v20, %v2174_v21  ;;  %v5423_v27 = vcombine.low %v2162_v20, %v2174_v21 }
 0x530   : > { %v5794_v61 = vpop.eup %5793  ;;  %v5546_v45 = vcombine.high %v2283_v40, %v2295_v41  ;;  %v5545_v56 = vcombine.low %v2283_v40, %v2295_v41 }
 0x531   : > { %v5796_v32 = vpop.eup %5795  ;;  %4809 = vmatpush1.bf16.msra.mxu0 %v5303_v49  ;;  %v2270_v49 = vld [vmem:[%s7013_s15 + $0x9b0] sm:$0xff] }
 0x532   : > { %v5798_v3 = vpop.eup %5797  ;;  %4850 = vmatpush1.bf16.msra.mxu1 %v5305_v50  ;;  %4810 = vmatprep.subr.bf16.mxu0 %v5280_v53  ;;  %v2259_v50 = vld [vmem:[%s7013_s15 + $0x958] sm:$0xff]  ;;  %v5520_v59 = vcombine.high %v2258_v48, %v2270_v49 }
 0x533   : > { %v5800_v6 = vpop.eup %5799  ;;  %v4947_v7 = vcombine.low %v5794_v61, %v5798_v3  ;;  %4851 = vmatprep.subr.bf16.mxu1 %v5282_v55  ;;  %v2271_v53 = vld [vmem:[%s7013_s15 + $0x9b8] sm:$0xff]  ;;  %v5543_v55 = vcombine.low %v2282_v38, %v2294_v39  ;;  %v5519_v3 = vcombine.low %v2258_v48, %v2270_v49 }
 0x534   : > { %v4948_v12 = vcombine.low %v5796_v32, %v5800_v6  ;;  %v5522_v61 = vcombine.high %v2259_v50, %v2271_v53  ;;  %v2235_v32 = vld [vmem:[%s7013_s15 + $0x898] sm:$0xff] }
 0x535   : > { %v4955_v15 = vrot.slane %v4947_v7, %v7370_v10  ;;  %4811 = vmatpush1.bf16.msra.mxu0 %v5279_v2  ;;  %v2247_v2 = vld [vmem:[%s7013_s15 + $0x8f8] sm:$0xff]  ;;  %v2210_v7 = vld [vmem:[%s7013_s15 + $0x7d0] sm:$0xff] }
 0x536   : > { %v4962_v16 = vrot.slane %v4948_v12, %v7370_v10  ;;  %4852 = vmatpush1.bf16.msra.mxu1 %v5281_v4  ;;  %4812 = vmatprep.subr.bf16.mxu0 %v5256_v5  ;;  %v5521_v4 = vcombine.low %v2259_v50, %v2271_v53  ;;  %v5496_v5 = vcombine.high %v2234_v63, %v2246_v1 }
 0x537   : > { %4853 = vmatprep.subr.bf16.mxu1 %v5258_v8  ;;  %v5498_v6 = vcombine.high %v2235_v32, %v2247_v2  ;;  %v2222_v8 = vld [vmem:[%s7013_s15 + $0x830] sm:$0xff]  ;;  %v5495_v12 = vcombine.low %v2234_v63, %v2246_v1  ;;  %v5497_v13 = vcombine.low %v2235_v32, %v2247_v2 }
 0x538   : > { %v4963_v19 = vcombine.low %v4955_v15, %v4962_v16  ;;  %v5472_v14 = vcombine.high %v2210_v7, %v2222_v8  ;;  %v5474_v15 = vcombine.high %v2211_v9, %v2223_v11  ;;  %v2198_v16 = vld [vmem:[%s7013_s15 + $0x770] sm:$0xff] }
 0x539   : > { %4813 = vmatpush1.bf16.msra.mxu0 %v5255_v62  ;;  %v2186_v62 = vld [vmem:[%s7013_s15 + $0x710] sm:$0xff] }
 0x53a   : > { %5039 = vst [vmem:[%s7382_s30 + $0x8] sm:$0xff] %v4963_v19  ;;  %4854 = vmatpush1.bf16.msra.mxu1 %v5257_v54  ;;  %4814 = vmatprep.subr.bf16.mxu0 %v5232_v57  ;;  %v2187_v54 = vld [vmem:[%s7013_s15 + $0x718] sm:$0xff]  ;;  %v5448_v18 = vcombine.high %v2186_v62, %v2198_v16 }
 0x53b   : > { %4855 = vmatprep.subr.bf16.mxu1 %v5234_v60  ;;  %v2199_v57 = vld [vmem:[%s7013_s15 + $0x778] sm:$0xff]  ;;  %v5471_v60 = vcombine.low %v2210_v7, %v2222_v8 }
 0x53c   : > { %v5450_v19 = vcombine.high %v2187_v54, %v2199_v57 }
 0x53d   : > { %4815 = vmatpush1.bf16.msra.mxu0 %v5231_v22  ;;  %v2163_v22 = vld [vmem:[%s7013_s15 + $0x658] sm:$0xff] }
 0x53e   : > { %4856 = vmatpush1.bf16.msra.mxu1 %v5233_v23  ;;  %4816 = vmatprep.subr.bf16.mxu0 %v5592_v24  ;;  %v2175_v23 = vld [vmem:[%s7013_s15 + $0x6b8] sm:$0xff]  ;;  %v5447_v24 = vcombine.low %v2186_v62, %v2198_v16 }
 0x53f   : > { %4857 = vmatprep.subr.bf16.mxu1 %v5594_v25  ;;  %v5449_v25 = vcombine.low %v2187_v54, %v2199_v57  ;;  %v5426_v26 = vcombine.high %v2163_v22, %v2175_v23  ;;  %v5425_v28 = vcombine.low %v2163_v22, %v2175_v23 }
 0x541   : > { %4817 = vmatpush2.bf16.msra.mxu0 %v5591_v29  ;;  %v2345_v29 = vld [vmem:[%s7320_s26 + $0x8] sm:$0xff] }
 0x542   : > { %4858 = vmatpush2.bf16.msra.mxu1 %v5593_v34  ;;  %4818 = vmatprep.subr.bf16.mxu0 %v5568_v36  ;;  %v2385_v34 = vrot.slane %v2345_v29, %v6990_v33  ;;  %v2393_v36 = vrot.slane %v2345_v29, %v7325_v58  ;;  %v2397_v39 = vrot.slane %v2345_v29, %v7331_v0 }
 0x543   : > { %4859 = vmatprep.subr.bf16.mxu1 %v5570_v37  ;;  %v2389_v37 = vrot.slane %v2345_v29, %v6996_v35  ;;  %v2413_v8 = vrot.slane %v2345_v29, %v7431_v52 }
 0x545   : > { %4819 = vmatpush2.bf16.msra.mxu0 %v5567_v42 }
 0x546   : > { %4860 = vmatpush2.bf16.msra.mxu1 %v5569_v43  ;;  %4820 = vmatprep.subr.bf16.mxu0 %v5544_v44 }
 0x547   : > { %4861 = vmatprep.subr.bf16.mxu1 %v5546_v45 }
 0x549   : > { %4821 = vmatpush2.bf16.msra.mxu0 %v5543_v55 }
 0x54a   : > { %4862 = vmatpush2.bf16.msra.mxu1 %v5545_v56  ;;  %4822 = vmatprep.subr.bf16.mxu0 %v5520_v59 }
 0x54b   : > { %4863 = vmatprep.subr.bf16.mxu1 %v5522_v61 }
 0x54d   : > { %4823 = vmatpush2.bf16.msra.mxu0 %v5519_v3 }
 0x54e   : > { %4864 = vmatpush2.bf16.msra.mxu1 %v5521_v4  ;;  %4824 = vmatprep.subr.bf16.mxu0 %v5496_v5  ;;  %v2401_v4 = vrot.slane %v2345_v29, %v7422_v46  ;;  %v2409_v5 = vrot.slane %v2345_v29, %v7425_v47 }
 0x54f   : > { %4865 = vmatprep.subr.bf16.mxu1 %v5498_v6  ;;  %v2405_v6 = vrot.slane %v2345_v29, %v7428_v51 }
 0x551   : > { %4825 = vmatpush2.bf16.msra.mxu0 %v5495_v12 }
 0x552   : > { %4866 = vmatpush2.bf16.msra.mxu1 %v5497_v13  ;;  %4826 = vmatprep.subr.bf16.mxu0 %v5472_v14 }
 0x553   : > { %4867 = vmatprep.subr.bf16.mxu1 %v5474_v15 }
 0x555   : > { %4827 = vmatpush2.bf16.msra.mxu0 %v5471_v60 }
 0x556   : > { %4868 = vmatpush2.bf16.msra.mxu1 %v5473_v17  ;;  %4828 = vmatprep.subr.bf16.mxu0 %v5448_v18 }
 0x557   : > { %4869 = vmatprep.subr.bf16.mxu1 %v5450_v19 }
 0x559   : > { %4829 = vmatpush2.bf16.msra.mxu0 %v5447_v24 }
 0x55a   : > { %4870 = vmatpush2.bf16.msra.mxu1 %v5449_v25  ;;  %4830 = vmatprep.subr.bf16.mxu0 %v5424_v30  ;;  %v2346_v30 = vld [vmem:[%s7320_s26 + $0x10] sm:$0xff] }
 0x55b   : > { %4871 = vmatprep.subr.bf16.mxu1 %v5426_v26  ;;  %v2417_v26 = vrot.slane %v2346_v30, %v6990_v33 }
 0x55d   : > { %4831 = vmatpush2.bf16.msra.mxu0 %v5423_v27  ;;  %v2425_v27 = vrot.slane %v2346_v30, %v7325_v58 }
 0x55e   : > { %4872 = vmatpush2.bf16.msra.mxu1 %v5425_v28  ;;  %v2421_v28 = vrot.slane %v2346_v30, %v6996_v35 }
 0x560   : > { %v4588_v38 = vpop.f32.mrf.mxu0  ;;  %4833 = vmatmul.mubr.bf16.vlgmr.msra.gmra.mxu0 %v7110_v31 }
 0x561   : > { %v4589_v40 = vadd.f32 %v4588_v38, %v2385_v34  ;;  %v4629_v41 = vpop.f32.mrf.mxu1  ;;  %4874 = vmatmul.mubr.bf16.vlgmr.msra.gmra.mxu1 %v7110_v31  ;;  %v2429_v34 = vrot.slane %v2346_v30, %v7331_v0 }
 0x562   : > { %v4630_v42 = vadd.f32 %v4629_v41, %v2393_v36  ;;  %v4590_v43 = vpop.f32.mrf.mxu0 }
 0x563   : > { %5801 = vtanh.f32 %v4589_v40  ;;  %v4591_v44 = vadd.f32 %v4590_v43, %v2389_v37  ;;  %v4631_v45 = vpop.f32.mrf.mxu1 }
 0x564   : > { %5803 = vtanh.f32 %v4630_v42  ;;  %v4632_v48 = vadd.f32 %v4631_v45, %v2397_v39  ;;  %v4592_v49 = vpop.f32.mrf.mxu0 }
 0x565   : > { %5805 = vtanh.f32 %v4591_v44  ;;  %v4633_v50 = vpop.f32.mrf.mxu1 }
 0x566   : > { %5807 = vtanh.f32 %v4632_v48  ;;  %v4593_v53 = vpop.f32.mrf.mxu0 }
 0x567   : > { %v4634_v55 = vpop.f32.mrf.mxu1 }
 0x570   : > { %v5802_v56 = vpop.eup %5801 }
 0x571   : > { %v5804_v59 = vpop.eup %5803 }
 0x572   : > { %v5806_v61 = vpop.eup %5805 }
 0x573   : > { %v5808_v63 = vpop.eup %5807  ;;  %v4964_v1 = vcombine.low %v5802_v56, %v5806_v61  ;;  %v2441_v61 = vrot.slane %v2346_v30, %v7425_v47 }
 0x574   : > { %v4965_v31 = vcombine.low %v5804_v59, %v5808_v63  ;;  %v2433_v59 = vrot.slane %v2346_v30, %v7422_v46  ;;  %v2437_v63 = vrot.slane %v2346_v30, %v7428_v51 }
 0x575   : > { %v4972_v32 = vrot.slane %v4964_v1, %v7370_v10 }
 0x576   : > { %v4979_v2 = vrot.slane %v4965_v31, %v7370_v10  ;;  %v2445_v31 = vrot.slane %v2346_v30, %v7431_v52 }
 0x578   : > { %v4980_v3 = vcombine.low %v4972_v32, %v4979_v2 }
 0x57a   : > { %5040 = vst [vmem:[%s7382_s30 + $0x10] sm:$0xff] %v4980_v3 }
 0x5a0   : > { %v4670_v7 = vpop.f32.mrf.mxu0 }
 0x5a1   : > { %v4671_v9 = vadd.f32 %v4670_v7, %v2401_v4  ;;  %v4711_v11 = vpop.f32.mrf.mxu1 }
 0x5a2   : > { %v4712_v12 = vadd.f32 %v4711_v11, %v2409_v5  ;;  %v4672_v13 = vpop.f32.mrf.mxu0 }
 0x5a3   : > { %5809 = vtanh.f32 %v4671_v9  ;;  %v4673_v14 = vadd.f32 %v4672_v13, %v2405_v6  ;;  %v4713_v15 = vpop.f32.mrf.mxu1 }
 0x5a4   : > { %5811 = vtanh.f32 %v4712_v12  ;;  %v4714_v62 = vadd.f32 %v4713_v15, %v2413_v8  ;;  %v4674_v16 = vpop.f32.mrf.mxu0 }
 0x5a5   : > { %5813 = vtanh.f32 %v4673_v14  ;;  %v4715_v54 = vpop.f32.mrf.mxu1 }
 0x5a6   : > { %5815 = vtanh.f32 %v4714_v62  ;;  %v4675_v57 = vpop.f32.mrf.mxu0 }
 0x5a7   : > { %v4716_v60 = vpop.f32.mrf.mxu1 }
 0x5b0   : > { %v5810_v17 = vpop.eup %5809 }
 0x5b1   : > { %v5812_v18 = vpop.eup %5811 }
 0x5b2   : > { %v5814_v19 = vpop.eup %5813 }
 0x5b3   : > { %v5816_v20 = vpop.eup %5815  ;;  %v4981_v21 = vcombine.low %v5810_v17, %v5814_v19 }
 0x5b4   : > { %v4982_v22 = vcombine.low %v5812_v18, %v5816_v20 }
 0x5b5   : > { %v4989_v23 = vrot.slane %v4981_v21, %v7370_v10 }
 0x5b6   : > { %v4996_v24 = vrot.slane %v4982_v22, %v7370_v10 }
 0x5b8   : > { %v4997_v25 = vcombine.low %v4989_v23, %v4996_v24 }
 0x5ba   : > { %5041 = vst [vmem:[%s7382_s30 + $0x18] sm:$0xff] %v4997_v25 }
 0x5e0   : > { %v4752_v29 = vpop.f32.mrf.mxu0 }
 0x5e1   : > { %v4753_v36 = vadd.f32 %v4752_v29, %v2417_v26  ;;  %v4793_v37 = vpop.f32.mrf.mxu1 }
 0x5e2   : > { %v4794_v38 = vadd.f32 %v4793_v37, %v2425_v27  ;;  %v4754_v39 = vpop.f32.mrf.mxu0 }
 0x5e3   : > { %5817 = vtanh.f32 %v4753_v36  ;;  %v4755_v40 = vadd.f32 %v4754_v39, %v2421_v28  ;;  %v4795_v41 = vpop.f32.mrf.mxu1 }
 0x5e4   : > { %5819 = vtanh.f32 %v4794_v38  ;;  %v4796_v42 = vadd.f32 %v4795_v41, %v2429_v34  ;;  %v4756_v43 = vpop.f32.mrf.mxu0 }
 0x5e5   : > { %5821 = vtanh.f32 %v4755_v40  ;;  %v4797_v33 = vpop.f32.mrf.mxu1 }
 0x5e6   : > { %5823 = vtanh.f32 %v4796_v42  ;;  %v4757_v58 = vpop.f32.mrf.mxu0 }
 0x5e7   : > { %v4798_v44 = vpop.f32.mrf.mxu1 }
 0x5f0   : > { %v5818_v35 = vpop.eup %5817 }
 0x5f1   : > { %v5820_v45 = vpop.eup %5819 }
 0x5f2   : > { %v5822_v48 = vpop.eup %5821 }
 0x5f3   : > { %v5824_v0 = vpop.eup %5823  ;;  %v4998_v49 = vcombine.low %v5818_v35, %v5822_v48 }
 0x5f4   : > { %v4999_v50 = vcombine.low %v5820_v45, %v5824_v0 }
 0x5f5   : > { %v5006_v53 = vrot.slane %v4998_v49, %v7370_v10 }
 0x5f6   : > { %v5013_v55 = vrot.slane %v4999_v50, %v7370_v10 }
 0x5f8   : > { %v5014_v56 = vcombine.low %v5006_v53, %v5013_v55 }
 0x5fa   : > { %5042 = vst [vmem:[%s7382_s30 + $0x20] sm:$0xff] %v5014_v56 }
 0x620   : > { %v4834_v1 = vpop.f32.mrf.mxu0 }
 0x621   : > { %v4835_v32 = vadd.f32 %v4834_v1, %v2433_v59  ;;  %v4875_v2 = vpop.f32.mrf.mxu1 }
 0x622   : > { %v4876_v3 = vadd.f32 %v4875_v2, %v2441_v61  ;;  %v4836_v4 = vpop.f32.mrf.mxu0 }
 0x623   : > { %5825 = vtanh.f32 %v4835_v32  ;;  %v4837_v5 = vadd.f32 %v4836_v4, %v2437_v63  ;;  %v4877_v6 = vpop.f32.mrf.mxu1 }
 0x624   : > { %5827 = vtanh.f32 %v4876_v3  ;;  %v4878_v7 = vadd.f32 %v4877_v6, %v2445_v31  ;;  %v4838_v8 = vpop.f32.mrf.mxu0 }
 0x625   : > { %5829 = vtanh.f32 %v4837_v5  ;;  %v4879_v46 = vpop.f32.mrf.mxu1 }
 0x626   : > { %5831 = vtanh.f32 %v4878_v7  ;;  %v4839_v47 = vpop.f32.mrf.mxu0 }
 0x627   : > { %v4880_v9 = vpop.f32.mrf.mxu1 }
 0x630   : > { %v5826_v51 = vpop.eup %5825 }
 0x631   : > { %v5828_v11 = vpop.eup %5827 }
 0x632   : > { %v5830_v12 = vpop.eup %5829 }
 0x633   : > { %v5832_v52 = vpop.eup %5831  ;;  %v5015_v13 = vcombine.low %v5826_v51, %v5830_v12 }
 0x634   : > { %v5016_v14 = vcombine.low %v5828_v11, %v5832_v52 }
 0x635   : > { %v5023_v15 = vrot.slane %v5015_v13, %v7370_v10 }
 0x636   : > { %v5030_v62 = vrot.slane %v5016_v14, %v7370_v10 }
 0x638   : > { %v5031_v16 = vcombine.low %v5023_v15, %v5030_v62 }
 0x63a   : > { %5043 = vst [vmem:[%s7382_s30 + $0x28] sm:$0xff] %v5031_v16 }
 0x63b PF: > { %p18_p9 = scmp.ge.s32.totalorder %s5938_s21, 6   ;;  %s7562_s17 = smov %s5851_s18 }
 0x63c   : > { %s7563_s18 = smov %s5947_s24  ;;  %s7564_s19 = smov %s5938_s21 }
 0x63d   :  { %20 = sbr.rel (!%p18_p9) target bundleno = 2 (0x2), region = 125 }

</bundles_post_ra>
